<compile_context>
chip_gen: v7x
topology: tpu7x:2x2x1
jax: 0.10.0
libtpu: 0.0.40
codegen_flags: <defaults>
</compile_context>

<pallas_src>
import functools

import jax
import jax.numpy as jnp
from jax import lax
from jax.experimental import pallas as pl
from jax.experimental.pallas import tpu as pltpu


def _round_up(x, m):
    return ((x + m - 1) // m) * m


def lstm_mp_kernel(depth,
                   bgraph_smem,          # (Np*Kp,) int32  SMEM, neighbor ids (0 = pad)
                   fmess_ref,            # (Np, Dp)  bf16  VMEM
                   w_iou_x_ref,          # (Dp, 3Hp) bf16  fused i|o|u x-weights
                   w_iou_h_ref,          # (Hp, 3Hp) bf16  fused i|o|u h-weights
                   b_iou_ref,            # (1, 3Hp)  f32
                   w_f_x_ref,            # (Dp, Hp)  bf16
                   w_f_h_ref,            # (Hp, Hp)  bf16
                   b_f_ref,              # (1, Hp)   f32
                   hc_ref,               # OUT (Np, 2Hp) f32 — doubles as the h|c state
                   nei_ref):             # scratch (Np*Kp, 2Hp) f32 — gathered neighbors
    Np, _ = fmess_ref.shape
    Hp = w_f_h_ref.shape[0]
    Kp = nei_ref.shape[0] // Np
    f32 = jnp.float32
    bf16 = jnp.bfloat16

    # ---- loop-invariant x-dependent pre-activations (bf16 MXU, f32 acc) ----
    x = fmess_ref[...]
    pre_iou = (jnp.dot(x, w_iou_x_ref[...], preferred_element_type=f32)
               + b_iou_ref[...])                              # (Np, 3Hp) f32
    pre_f = (jnp.dot(x, w_f_x_ref[...], preferred_element_type=f32)
             + b_f_ref[...])[:, None, :]                      # (Np, 1, Hp) — implicit K-bcast

    w_iou_h = w_iou_h_ref[...]
    w_f_h = w_f_h_ref[...]

    # State (h | c) lives in the output ref; row 0 is re-zeroed every step so a
    # neighbor id of 0 (the pad id) contributes exactly 0 to the gather — this
    # matches the reference's per-iteration mask on row 0.
    hc_ref[...] = jnp.zeros_like(hc_ref)
    keep = (lax.broadcasted_iota(jnp.int32, (Np, 1), 0) != 0).astype(f32)

    def gather_neighbors():
        # O(N*K) row gather driven by SMEM scalar reads (no one-hot matmul).
        def row(n, carry):
            base = n * Kp
            for k in range(Kp):                               # static inner unroll
                idx = bgraph_smem[base + k]
                nei_ref[pl.ds(base + k, 1), :] = hc_ref[pl.ds(idx, 1), :]
            return carry
        lax.fori_loop(0, Np, row, 0)

    def step():
        gather_neighbors()
        h_nei = nei_ref[:, :Hp]                               # (Np*Kp, Hp) f32
        c_nei = nei_ref[:, Hp:].reshape(Np, Kp, Hp)           # (Np, Kp, Hp) f32

        h_sum = jnp.sum(h_nei.reshape(Np, Kp, Hp), axis=1)    # (Np, Hp)

        # Fused i|o|u gates: one (Np, 3Hp) matmul; bf16 operands, f32 acc.
        gates = pre_iou + jnp.dot(h_sum.astype(bf16), w_iou_h,
                                  preferred_element_type=f32)
        i = jax.nn.sigmoid(gates[:, :Hp])
        o = jax.nn.sigmoid(gates[:, Hp:2 * Hp])
        u = jnp.tanh(gates[:, 2 * Hp:])

        # f-gate per neighbor; x-term broadcast over K implicitly.
        f = jax.nn.sigmoid(
            jnp.dot(h_nei.astype(bf16), w_f_h,
                    preferred_element_type=f32).reshape(Np, Kp, Hp)
            + pre_f)
        fc_sum = jnp.sum(f * c_nei, axis=1)                   # (Np, Hp)

        c_new = i * u + fc_sum
        h_new = o * jnp.tanh(c_new)
        # Write halves straight into the fused state (no concatenate); mask row 0.
        hc_ref[:, :Hp] = h_new * keep
        hc_ref[:, Hp:] = c_new * keep

    if depth <= 8:
        for _ in range(depth):        # small static depth: full unroll
            step()
    else:
        def body(_, carry):
            step()
            return carry
        lax.fori_loop(0, depth, body, 0, unroll=2)


def lstm_forward(fmess, bgraph, params, depth):
    """Pallas equivalent of LSTM.forward(fmess, bgraph) -> (h, c)."""
    N, D = fmess.shape
    K = bgraph.shape[1]
    H = params["W_i"][0].shape[1]

    Np = _round_up(max(N, 8), 8)          # sublane-pad message axis
    Dp = _round_up(D, 128)                # lane-pad input features
    Hp = _round_up(H, 128)                # lane-pad hidden: H/2H/3H all 128-multiples
    Kp = _round_up(max(K, 1), 8)          # sublane-pad neighbor axis
    NK = Np * Kp

    f32, bf16 = jnp.float32, jnp.bfloat16

    # Padded inputs: pad rows/cols with zeros; pad neighbor id = 0 (row 0 of the
    # state is always zero, so padded slots contribute nothing).
    x = jnp.zeros((Np, Dp), f32).at[:N, :D].set(fmess.astype(f32)).astype(bf16)
    bg = jnp.zeros((Np, Kp), jnp.int32).at[:N, :K].set(bgraph.astype(jnp.int32))
    bg_flat = bg.reshape(NK)              # flat 1-D for SMEM (no lane padding)

    # Wrapper-side weight split + zero-pad to (Dp/Hp, Hp) + i|o|u fusion + bf16.
    def split_pad(name):
        W, b = params[name]               # W: (D+H, H), b: (1, H)
        wx = jnp.zeros((Dp, Hp), f32).at[:D, :H].set(W[:D])
        wh = jnp.zeros((Hp, Hp), f32).at[:H, :H].set(W[D:])
        bp = jnp.zeros((1, Hp), f32).at[:, :H].set(b)
        return wx, wh, bp

    wi_x, wi_h, bi = split_pad("W_i")
    wo_x, wo_h, bo = split_pad("W_o")
    wu_x, wu_h, bu = split_pad("W")
    wf_x, wf_h, bf_ = split_pad("W_f")
    w_iou_x = jnp.concatenate([wi_x, wo_x, wu_x], axis=1).astype(bf16)   # (Dp, 3Hp)
    w_iou_h = jnp.concatenate([wi_h, wo_h, wu_h], axis=1).astype(bf16)   # (Hp, 3Hp)
    b_iou = jnp.concatenate([bi, bo, bu], axis=1)                        # (1, 3Hp) f32

    args = (bg_flat, x, w_iou_x, w_iou_h, b_iou,
            wf_x.astype(bf16), wf_h.astype(bf16), bf_)

    smem = pltpu.MemorySpace.SMEM
    vmem = pltpu.MemorySpace.VMEM
    in_specs = ([pl.BlockSpec(memory_space=smem)]
                + [pl.BlockSpec(memory_space=vmem)] * (len(args) - 1))

    # VMEM footprint: state + neighbor scratch + weights + a few (Np, 3Hp)/(NK, Hp)
    # transients.  Cap against the physical budget of the current generation.
    est_bytes = (4 * (Np * 2 * Hp + 3 * NK * 2 * Hp + 8 * Np * 3 * Hp)
                 + 2 * ((Dp + Hp) * 4 * Hp + Np * Dp))
    try:
        cap = pltpu.get_tpu_info().vmem_capacity_bytes
    except Exception:  # pragma: no cover - conservative fallback
        cap = 64 << 20
    vmem_limit = int(min(max(4 * est_bytes, 8 << 20), (cap * 3) // 4))

    flops = (depth * (2 * Np * Hp * 3 * Hp + 2 * NK * Hp * Hp)
             + 2 * Np * Dp * 4 * Hp)
    transcendentals = depth * Np * (3 * Hp + (Kp + 1) * Hp)
    bytes_accessed = (sum(int(a.size) * a.dtype.itemsize for a in args)
                      + Np * 2 * Hp * 4)

    hc = pl.pallas_call(
        functools.partial(lstm_mp_kernel, depth),
        out_shape=jax.ShapeDtypeStruct((Np, 2 * Hp), f32),
        in_specs=in_specs,
        out_specs=pl.BlockSpec(memory_space=vmem),
        scratch_shapes=[pltpu.VMEM((NK, 2 * Hp), f32)],
        compiler_params=pltpu.CompilerParams(vmem_limit_bytes=vmem_limit),
        cost_estimate=pl.CostEstimate(flops=int(flops),
                                      transcendentals=int(transcendentals),
                                      bytes_accessed=int(bytes_accessed)),
    )(*args)
    return hc[:N, :H], hc[:N, Hp:Hp + H]


def init_params(key, input_size, hidden_size):
    """Deterministic init matching torch.nn.Linear shapes (stored transposed)."""
    bound = 1.0 / float(jnp.sqrt(float(input_size + hidden_size)))
    keys = jax.random.split(key, 8)

    def linear(kw, kb):
        W = jax.random.uniform(kw, (input_size + hidden_size, hidden_size),
                               jnp.float32, -bound, bound)
        b = jax.random.uniform(kb, (1, hidden_size), jnp.float32, -bound, bound)
        return W, b

    return {
        "W_i": linear(keys[0], keys[1]),
        "W_o": linear(keys[2], keys[3]),
        "W_f": linear(keys[4], keys[5]),
        "W":   linear(keys[6], keys[7]),
    }


def lstm_forward_ref(fmess, bgraph, params, depth):
    """Pure-JAX reference mirroring the PyTorch forward exactly (all f32)."""
    N, D = fmess.shape
    K = bgraph.shape[1]
    H = params["W_i"][0].shape[1]
    h = jnp.zeros((N, H), jnp.float32)
    c = jnp.zeros((N, H), jnp.float32)
    mask = jnp.ones((N, 1), jnp.float32).at[0, 0].set(0.0)

    def gate(name, inp):
        W, b = params[name]
        return inp @ W + b

    for _ in range(depth):
        h_nei = h[bgraph]                       # (N, K, H) == index_select_ND
        c_nei = c[bgraph]
        h_sum = h_nei.sum(axis=1)
        x_exp = jnp.broadcast_to(fmess[:, None, :], (N, K, D))
        i = jax.nn.sigmoid(gate("W_i", jnp.concatenate([fmess, h_sum], -1)))
        o = jax.nn.sigmoid(gate("W_o", jnp.concatenate([fmess, h_sum], -1)))
        u = jnp.tanh(gate("W", jnp.concatenate([fmess, h_sum], -1)))
        f = jax.nn.sigmoid(gate("W_f", jnp.concatenate([x_exp, h_nei], -1)))
        c = i * u + (f * c_nei).sum(axis=1)
        h = o * jnp.tanh(c)
        h = h * mask
        c = c * mask
    return h, c


if __name__ == "__main__":
    N, K = 16, 6            # messages, max neighbors
    D, H = 32, 32           # input_size, hidden_size
    DEPTH = 3

    key = jax.random.PRNGKey(0)
    k_f, k_g, k_p = jax.random.split(key, 3)

    fmess = jax.random.normal(k_f, (N, D), jnp.float32)
    bgraph = jax.random.randint(k_g, (N, K), 0, N, jnp.int32)

    # The kernel consumes bf16 weights (f32 accumulation).  Round the weights
    # to bf16 once and feed the identical values to both paths, so the check
    # only measures activation-cast error of the kernel's bf16 matmuls.
    params = jax.tree_util.tree_map(
        lambda a: a.astype(jnp.bfloat16).astype(jnp.float32),
        init_params(k_p, D, H))

    h, c = lstm_forward(fmess, bgraph, params, DEPTH)
    jax.block_until_ready((h, c))

    h_ref, c_ref = lstm_forward_ref(fmess, bgraph, params, DEPTH)
    assert h.shape == (N, H) and c.shape == (N, H)
    assert jnp.allclose(h, h_ref, rtol=2e-2, atol=2e-2), \
        f"max |dh| = {float(jnp.max(jnp.abs(h - h_ref)))}"
    assert jnp.allclose(c, c_ref, rtol=2e-2, atol=2e-2), \
        f"max |dc| = {float(jnp.max(jnp.abs(c - c_ref)))}"

    print("KERNEL_OK")
</pallas_src>

<mosaic_0001>
module attributes {stable_mosaic.version = 11 : i64} {
  func.func @lstm_mp_kernel(%arg0: memref<128xi32, #tpu.memory_space<smem>>, %arg1: memref<16x128xbf16, #tpu.memory_space<vmem>>, %arg2: memref<128x384xbf16, #tpu.memory_space<vmem>>, %arg3: memref<128x384xbf16, #tpu.memory_space<vmem>>, %arg4: memref<1x384xf32, #tpu.memory_space<vmem>>, %arg5: memref<128x128xbf16, #tpu.memory_space<vmem>>, %arg6: memref<128x128xbf16, #tpu.memory_space<vmem>>, %arg7: memref<1x128xf32, #tpu.memory_space<vmem>>, %arg8: memref<16x256xf32, #tpu.memory_space<vmem>>, %arg9: memref<128x256xf32, #tpu.memory_space<vmem>>) attributes {dimension_semantics = [], scalar_prefetch = 0 : i64, scratch_operands = 1 : i64, tpu.core_type = #tpu.core_type<tc>} {
    %c0 = arith.constant 0 : index
    %c0_0 = arith.constant 0 : index
    %0 = vector.load %arg1[%c0, %c0_0] : memref<16x128xbf16, #tpu.memory_space<vmem>>, vector<16x128xbf16>
    %c0_1 = arith.constant 0 : index
    %c0_2 = arith.constant 0 : index
    %1 = vector.load %arg2[%c0_1, %c0_2] : memref<128x384xbf16, #tpu.memory_space<vmem>>, vector<128x384xbf16>
    %cst = arith.constant dense<0.000000e+00> : vector<16x384xf32>
    %2 = tpu.matmul %0, %1, %cst {dimension_numbers = #tpu.dot_dimension_numbers<[1], [0], [0], [1], [0, 0, 1, 1], [], []>} : vector<16x128xbf16>, vector<128x384xbf16>, vector<16x384xf32> -> vector<16x384xf32>
    %c0_3 = arith.constant 0 : index
    %c0_4 = arith.constant 0 : index
    %3 = vector.load %arg4[%c0_3, %c0_4] : memref<1x384xf32, #tpu.memory_space<vmem>>, vector<1x384xf32>
    %4 = vector.broadcast %3 : vector<1x384xf32> to vector<16x384xf32>
    %5 = arith.addf %2, %4 : vector<16x384xf32>
    %c0_5 = arith.constant 0 : index
    %c0_6 = arith.constant 0 : index
    %6 = vector.load %arg5[%c0_5, %c0_6] : memref<128x128xbf16, #tpu.memory_space<vmem>>, vector<128x128xbf16>
    %cst_7 = arith.constant dense<0.000000e+00> : vector<16x128xf32>
    %7 = tpu.matmul %0, %6, %cst_7 {dimension_numbers = #tpu.dot_dimension_numbers<[1], [0], [0], [1], [0, 0, 1, 1], [], []>} : vector<16x128xbf16>, vector<128x128xbf16>, vector<16x128xf32> -> vector<16x128xf32>
    %c0_8 = arith.constant 0 : index
    %c0_9 = arith.constant 0 : index
    %8 = vector.load %arg7[%c0_8, %c0_9] : memref<1x128xf32, #tpu.memory_space<vmem>>, vector<1x128xf32>
    %9 = vector.broadcast %8 : vector<1x128xf32> to vector<16x128xf32>
    %10 = arith.addf %7, %9 : vector<16x128xf32>
    %11 = vector.shape_cast %10 : vector<16x128xf32> to vector<16x1x128xf32>
    %c0_10 = arith.constant 0 : index
    %c0_11 = arith.constant 0 : index
    %12 = vector.load %arg3[%c0_10, %c0_11] : memref<128x384xbf16, #tpu.memory_space<vmem>>, vector<128x384xbf16>
    %c0_12 = arith.constant 0 : index
    %c0_13 = arith.constant 0 : index
    %13 = vector.load %arg6[%c0_12, %c0_13] : memref<128x128xbf16, #tpu.memory_space<vmem>>, vector<128x128xbf16>
    %cst_14 = arith.constant 0.000000e+00 : f32
    %14 = vector.broadcast %cst_14 : f32 to vector<16x256xf32>
    %c0_15 = arith.constant 0 : index
    %c0_16 = arith.constant 0 : index
    %15 = vector.load %arg8[%c0_15, %c0_16] : memref<16x256xf32, #tpu.memory_space<vmem>>, vector<16x256xf32>
    tpu.vector_store %arg8[%c0_15, %c0_16], %14 {strides = array<i32>} : memref<16x256xf32, #tpu.memory_space<vmem>>, vector<16x256xf32>,
    %16 = tpu.iota {dimensions = array<i32: 0>} : vector<16x1xi32>
    %c0_i32 = arith.constant 0 : i32
    %17 = vector.broadcast %c0_i32 : i32 to vector<16x1xi32>
    %18 = arith.cmpi ne, %16, %17 : vector<16x1xi32>
    %19 = arith.extui %18 : vector<16x1xi1> to vector<16x1xi32>
    %20 = arith.sitofp %19 : vector<16x1xi32> to vector<16x1xf32>
    %c0_i32_17 = arith.constant 0 : i32
    %c16_i32 = arith.constant 16 : i32
    %21 = arith.addi %c0_i32_17, %c16_i32 : i32
    %c1_i32 = arith.constant 1 : i32
    scf.for %arg10 = %c0_i32_17 to %21 step %c1_i32  : i32 {
      %c8_i32 = arith.constant 8 : i32
      %156 = arith.muli %arg10, %c8_i32 : i32
      %c0_i32_71 = arith.constant 0 : i32
      %157 = arith.addi %156, %c0_i32_71 : i32
      %158 = arith.index_cast %157 : i32 to index
      %159 = memref.load %arg0[%158] : memref<128xi32, #tpu.memory_space<smem>>
      %160 = arith.index_cast %159 : i32 to index
      %c0_72 = arith.constant 0 : index
      %161 = vector.load %arg8[%160, %c0_72] : memref<16x256xf32, #tpu.memory_space<vmem>>, vector<1x256xf32>
      %c0_i32_73 = arith.constant 0 : i32
      %162 = arith.addi %156, %c0_i32_73 : i32
      %163 = arith.index_cast %162 : i32 to index
      %c0_74 = arith.constant 0 : index
      %164 = vector.load %arg9[%163, %c0_74] : memref<128x256xf32, #tpu.memory_space<vmem>>, vector<1x256xf32>
      tpu.vector_store %arg9[%163, %c0_74], %161 {strides = array<i32>} : memref<128x256xf32, #tpu.memory_space<vmem>>, vector<1x256xf32>,
      %c1_i32_75 = arith.constant 1 : i32
      %165 = arith.addi %156, %c1_i32_75 : i32
      %166 = arith.index_cast %165 : i32 to index
      %167 = memref.load %arg0[%166] : memref<128xi32, #tpu.memory_space<smem>>
      %168 = arith.index_cast %167 : i32 to index
      %c0_76 = arith.constant 0 : index
      %169 = vector.load %arg8[%168, %c0_76] : memref<16x256xf32, #tpu.memory_space<vmem>>, vector<1x256xf32>
      %c1_i32_77 = arith.constant 1 : i32
      %170 = arith.addi %156, %c1_i32_77 : i32
      %171 = arith.index_cast %170 : i32 to index
      %c0_78 = arith.constant 0 : index
      %172 = vector.load %arg9[%171, %c0_78] : memref<128x256xf32, #tpu.memory_space<vmem>>, vector<1x256xf32>
      tpu.vector_store %arg9[%171, %c0_78], %169 {strides = array<i32>} : memref<128x256xf32, #tpu.memory_space<vmem>>, vector<1x256xf32>,
      %c2_i32 = arith.constant 2 : i32
      %173 = arith.addi %156, %c2_i32 : i32
      %174 = arith.index_cast %173 : i32 to index
      %175 = memref.load %arg0[%174] : memref<128xi32, #tpu.memory_space<smem>>
      %176 = arith.index_cast %175 : i32 to index
      %c0_79 = arith.constant 0 : index
      %177 = vector.load %arg8[%176, %c0_79] : memref<16x256xf32, #tpu.memory_space<vmem>>, vector<1x256xf32>
      %c2_i32_80 = arith.constant 2 : i32
      %178 = arith.addi %156, %c2_i32_80 : i32
      %179 = arith.index_cast %178 : i32 to index
      %c0_81 = arith.constant 0 : index
      %180 = vector.load %arg9[%179, %c0_81] : memref<128x256xf32, #tpu.memory_space<vmem>>, vector<1x256xf32>
      tpu.vector_store %arg9[%179, %c0_81], %177 {strides = array<i32>} : memref<128x256xf32, #tpu.memory_space<vmem>>, vector<1x256xf32>,
      %c3_i32 = arith.constant 3 : i32
      %181 = arith.addi %156, %c3_i32 : i32
      %182 = arith.index_cast %181 : i32 to index
      %183 = memref.load %arg0[%182] : memref<128xi32, #tpu.memory_space<smem>>
      %184 = arith.index_cast %183 : i32 to index
      %c0_82 = arith.constant 0 : index
      %185 = vector.load %arg8[%184, %c0_82] : memref<16x256xf32, #tpu.memory_space<vmem>>, vector<1x256xf32>
      %c3_i32_83 = arith.constant 3 : i32
      %186 = arith.addi %156, %c3_i32_83 : i32
      %187 = arith.index_cast %186 : i32 to index
      %c0_84 = arith.constant 0 : index
      %188 = vector.load %arg9[%187, %c0_84] : memref<128x256xf32, #tpu.memory_space<vmem>>, vector<1x256xf32>
      tpu.vector_store %arg9[%187, %c0_84], %185 {strides = array<i32>} : memref<128x256xf32, #tpu.memory_space<vmem>>, vector<1x256xf32>,
      %c4_i32 = arith.constant 4 : i32
      %189 = arith.addi %156, %c4_i32 : i32
      %190 = arith.index_cast %189 : i32 to index
      %191 = memref.load %arg0[%190] : memref<128xi32, #tpu.memory_space<smem>>
      %192 = arith.index_cast %191 : i32 to index
      %c0_85 = arith.constant 0 : index
      %193 = vector.load %arg8[%192, %c0_85] : memref<16x256xf32, #tpu.memory_space<vmem>>, vector<1x256xf32>
      %c4_i32_86 = arith.constant 4 : i32
      %194 = arith.addi %156, %c4_i32_86 : i32
      %195 = arith.index_cast %194 : i32 to index
      %c0_87 = arith.constant 0 : index
      %196 = vector.load %arg9[%195, %c0_87] : memref<128x256xf32, #tpu.memory_space<vmem>>, vector<1x256xf32>
      tpu.vector_store %arg9[%195, %c0_87], %193 {strides = array<i32>} : memref<128x256xf32, #tpu.memory_space<vmem>>, vector<1x256xf32>,
      %c5_i32 = arith.constant 5 : i32
      %197 = arith.addi %156, %c5_i32 : i32
      %198 = arith.index_cast %197 : i32 to index
      %199 = memref.load %arg0[%198] : memref<128xi32, #tpu.memory_space<smem>>
      %200 = arith.index_cast %199 : i32 to index
      %c0_88 = arith.constant 0 : index
      %201 = vector.load %arg8[%200, %c0_88] : memref<16x256xf32, #tpu.memory_space<vmem>>, vector<1x256xf32>
      %c5_i32_89 = arith.constant 5 : i32
      %202 = arith.addi %156, %c5_i32_89 : i32
      %203 = arith.index_cast %202 : i32 to index
      %c0_90 = arith.constant 0 : index
      %204 = vector.load %arg9[%203, %c0_90] : memref<128x256xf32, #tpu.memory_space<vmem>>, vector<1x256xf32>
      tpu.vector_store %arg9[%203, %c0_90], %201 {strides = array<i32>} : memref<128x256xf32, #tpu.memory_space<vmem>>, vector<1x256xf32>,
      %c6_i32 = arith.constant 6 : i32
      %205 = arith.addi %156, %c6_i32 : i32
      %206 = arith.index_cast %205 : i32 to index
      %207 = memref.load %arg0[%206] : memref<128xi32, #tpu.memory_space<smem>>
      %208 = arith.index_cast %207 : i32 to index
      %c0_91 = arith.constant 0 : index
      %209 = vector.load %arg8[%208, %c0_91] : memref<16x256xf32, #tpu.memory_space<vmem>>, vector<1x256xf32>
      %c6_i32_92 = arith.constant 6 : i32
      %210 = arith.addi %156, %c6_i32_92 : i32
      %211 = arith.index_cast %210 : i32 to index
      %c0_93 = arith.constant 0 : index
      %212 = vector.load %arg9[%211, %c0_93] : memref<128x256xf32, #tpu.memory_space<vmem>>, vector<1x256xf32>
      tpu.vector_store %arg9[%211, %c0_93], %209 {strides = array<i32>} : memref<128x256xf32, #tpu.memory_space<vmem>>, vector<1x256xf32>,
      %c7_i32 = arith.constant 7 : i32
      %213 = arith.addi %156, %c7_i32 : i32
      %214 = arith.index_cast %213 : i32 to index
      %215 = memref.load %arg0[%214] : memref<128xi32, #tpu.memory_space<smem>>
      %216 = arith.index_cast %215 : i32 to index
      %c0_94 = arith.constant 0 : index
      %217 = vector.load %arg8[%216, %c0_94] : memref<16x256xf32, #tpu.memory_space<vmem>>, vector<1x256xf32>
      %c7_i32_95 = arith.constant 7 : i32
      %218 = arith.addi %156, %c7_i32_95 : i32
      %219 = arith.index_cast %218 : i32 to index
      %c0_96 = arith.constant 0 : index
      %220 = vector.load %arg9[%219, %c0_96] : memref<128x256xf32, #tpu.memory_space<vmem>>, vector<1x256xf32>
      tpu.vector_store %arg9[%219, %c0_96], %217 {strides = array<i32>} : memref<128x256xf32, #tpu.memory_space<vmem>>, vector<1x256xf32>,
    }
    %c16_i32_18 = arith.constant 16 : i32
    %c0_19 = arith.constant 0 : index
    %c0_20 = arith.constant 0 : index
    %22 = vector.load %arg9[%c0_19, %c0_20] : memref<128x256xf32, #tpu.memory_space<vmem>>, vector<128x128xf32>
    %c0_21 = arith.constant 0 : index
    %c128 = arith.constant 128 : index
    %23 = vector.load %arg9[%c0_21, %c128] : memref<128x256xf32, #tpu.memory_space<vmem>>, vector<128x128xf32>
    %24 = vector.shape_cast %23 : vector<128x128xf32> to vector<16x8x128xf32>
    %25 = vector.shape_cast %22 : vector<128x128xf32> to vector<16x8x128xf32>
    %cst_22 = arith.constant dense<0.000000e+00> : vector<16x128xf32>
    %26 = vector.multi_reduction <add>, %25, %cst_22 [1] : vector<16x8x128xf32> to vector<16x128xf32>
    %27 = arith.truncf %26 : vector<16x128xf32> to vector<16x128xbf16>
    %cst_23 = arith.constant dense<0.000000e+00> : vector<16x384xf32>
    %28 = tpu.matmul %27, %12, %cst_23 {dimension_numbers = #tpu.dot_dimension_numbers<[1], [0], [0], [1], [0, 0, 1, 1], [], []>} : vector<16x128xbf16>, vector<128x384xbf16>, vector<16x384xf32> -> vector<16x384xf32>
    %29 = arith.addf %5, %28 : vector<16x384xf32>
    %30 = vector.extract_strided_slice %29 {offsets = [0, 0], sizes = [16, 128], strides = [1, 1]} : vector<16x384xf32> to vector<16x128xf32>
    %31 = arith.negf %30 : vector<16x128xf32>
    %32 = math.exp %31 : vector<16x128xf32>
    %cst_24 = arith.constant 1.000000e+00 : f32
    %33 = vector.broadcast %cst_24 : f32 to vector<16x128xf32>
    %34 = arith.addf %33, %32 : vector<16x128xf32>
    %35 = arith.divf %33, %34 : vector<16x128xf32>
    %36 = vector.extract_strided_slice %29 {offsets = [0, 128], sizes = [16, 128], strides = [1, 1]} : vector<16x384xf32> to vector<16x128xf32>
    %37 = arith.negf %36 : vector<16x128xf32>
    %38 = math.exp %37 : vector<16x128xf32>
    %cst_25 = arith.constant 1.000000e+00 : f32
    %39 = vector.broadcast %cst_25 : f32 to vector<16x128xf32>
    %40 = arith.addf %39, %38 : vector<16x128xf32>
    %41 = arith.divf %39, %40 : vector<16x128xf32>
    %42 = vector.extract_strided_slice %29 {offsets = [0, 256], sizes = [16, 128], strides = [1, 1]} : vector<16x384xf32> to vector<16x128xf32>
    %43 = math.tanh %42 : vector<16x128xf32>
    %44 = arith.truncf %22 : vector<128x128xf32> to vector<128x128xbf16>
    %cst_26 = arith.constant dense<0.000000e+00> : vector<128x128xf32>
    %45 = tpu.matmul %44, %13, %cst_26 {dimension_numbers = #tpu.dot_dimension_numbers<[1], [0], [0], [1], [0, 0, 1, 1], [], []>} : vector<128x128xbf16>, vector<128x128xbf16>, vector<128x128xf32> -> vector<128x128xf32>
    %46 = vector.shape_cast %45 : vector<128x128xf32> to vector<16x8x128xf32>
    %47 = vector.broadcast %11 : vector<16x1x128xf32> to vector<16x8x128xf32>
    %48 = arith.addf %46, %47 : vector<16x8x128xf32>
    %49 = arith.negf %48 : vector<16x8x128xf32>
    %50 = math.exp %49 : vector<16x8x128xf32>
    %cst_27 = arith.constant 1.000000e+00 : f32
    %51 = vector.broadcast %cst_27 : f32 to vector<16x8x128xf32>
    %52 = arith.addf %51, %50 : vector<16x8x128xf32>
    %53 = arith.divf %51, %52 : vector<16x8x128xf32>
    %54 = arith.mulf %53, %24 : vector<16x8x128xf32>
    %cst_28 = arith.constant dense<0.000000e+00> : vector<16x128xf32>
    %55 = vector.multi_reduction <add>, %54, %cst_28 [1] : vector<16x8x128xf32> to vector<16x128xf32>
    %56 = arith.mulf %35, %43 : vector<16x128xf32>
    %57 = arith.addf %56, %55 : vector<16x128xf32>
    %58 = math.tanh %57 : vector<16x128xf32>
    %59 = arith.mulf %41, %58 : vector<16x128xf32>
    %60 = vector.broadcast %20 : vector<16x1xf32> to vector<16x128xf32>
    %61 = arith.mulf %59, %60 : vector<16x128xf32>
    %c0_29 = arith.constant 0 : index
    %c0_30 = arith.constant 0 : index
    %62 = vector.load %arg8[%c0_29, %c0_30] : memref<16x256xf32, #tpu.memory_space<vmem>>, vector<16x128xf32>
    tpu.vector_store %arg8[%c0_29, %c0_30], %61 {strides = array<i32>} : memref<16x256xf32, #tpu.memory_space<vmem>>, vector<16x128xf32>,
    %63 = vector.broadcast %20 : vector<16x1xf32> to vector<16x128xf32>
    %64 = arith.mulf %57, %63 : vector<16x128xf32>
    %c0_31 = arith.constant 0 : index
    %c128_32 = arith.constant 128 : index
    %65 = vector.load %arg8[%c0_31, %c128_32] : memref<16x256xf32, #tpu.memory_space<vmem>>, vector<16x128xf32>
    tpu.vector_store %arg8[%c0_31, %c128_32], %64 {strides = array<i32>} : memref<16x256xf32, #tpu.memory_space<vmem>>, vector<16x128xf32>,
    %c0_i32_33 = arith.constant 0 : i32
    %c16_i32_34 = arith.constant 16 : i32
    %66 = arith.addi %c0_i32_33, %c16_i32_34 : i32
    %c1_i32_35 = arith.constant 1 : i32
    scf.for %arg10 = %c0_i32_33 to %66 step %c1_i32_35  : i32 {
      %c8_i32 = arith.constant 8 : i32
      %156 = arith.muli %arg10, %c8_i32 : i32
      %c0_i32_71 = arith.constant 0 : i32
      %157 = arith.addi %156, %c0_i32_71 : i32
      %158 = arith.index_cast %157 : i32 to index
      %159 = memref.load %arg0[%158] : memref<128xi32, #tpu.memory_space<smem>>
      %160 = arith.index_cast %159 : i32 to index
      %c0_72 = arith.constant 0 : index
      %161 = vector.load %arg8[%160, %c0_72] : memref<16x256xf32, #tpu.memory_space<vmem>>, vector<1x256xf32>
      %c0_i32_73 = arith.constant 0 : i32
      %162 = arith.addi %156, %c0_i32_73 : i32
      %163 = arith.index_cast %162 : i32 to index
      %c0_74 = arith.constant 0 : index
      %164 = vector.load %arg9[%163, %c0_74] : memref<128x256xf32, #tpu.memory_space<vmem>>, vector<1x256xf32>
      tpu.vector_store %arg9[%163, %c0_74], %161 {strides = array<i32>} : memref<128x256xf32, #tpu.memory_space<vmem>>, vector<1x256xf32>,
      %c1_i32_75 = arith.constant 1 : i32
      %165 = arith.addi %156, %c1_i32_75 : i32
      %166 = arith.index_cast %165 : i32 to index
      %167 = memref.load %arg0[%166] : memref<128xi32, #tpu.memory_space<smem>>
      %168 = arith.index_cast %167 : i32 to index
      %c0_76 = arith.constant 0 : index
      %169 = vector.load %arg8[%168, %c0_76] : memref<16x256xf32, #tpu.memory_space<vmem>>, vector<1x256xf32>
      %c1_i32_77 = arith.constant 1 : i32
      %170 = arith.addi %156, %c1_i32_77 : i32
      %171 = arith.index_cast %170 : i32 to index
      %c0_78 = arith.constant 0 : index
      %172 = vector.load %arg9[%171, %c0_78] : memref<128x256xf32, #tpu.memory_space<vmem>>, vector<1x256xf32>
      tpu.vector_store %arg9[%171, %c0_78], %169 {strides = array<i32>} : memref<128x256xf32, #tpu.memory_space<vmem>>, vector<1x256xf32>,
      %c2_i32 = arith.constant 2 : i32
      %173 = arith.addi %156, %c2_i32 : i32
      %174 = arith.index_cast %173 : i32 to index
      %175 = memref.load %arg0[%174] : memref<128xi32, #tpu.memory_space<smem>>
      %176 = arith.index_cast %175 : i32 to index
      %c0_79 = arith.constant 0 : index
      %177 = vector.load %arg8[%176, %c0_79] : memref<16x256xf32, #tpu.memory_space<vmem>>, vector<1x256xf32>
      %c2_i32_80 = arith.constant 2 : i32
      %178 = arith.addi %156, %c2_i32_80 : i32
      %179 = arith.index_cast %178 : i32 to index
      %c0_81 = arith.constant 0 : index
      %180 = vector.load %arg9[%179, %c0_81] : memref<128x256xf32, #tpu.memory_space<vmem>>, vector<1x256xf32>
      tpu.vector_store %arg9[%179, %c0_81], %177 {strides = array<i32>} : memref<128x256xf32, #tpu.memory_space<vmem>>, vector<1x256xf32>,
      %c3_i32 = arith.constant 3 : i32
      %181 = arith.addi %156, %c3_i32 : i32
      %182 = arith.index_cast %181 : i32 to index
      %183 = memref.load %arg0[%182] : memref<128xi32, #tpu.memory_space<smem>>
      %184 = arith.index_cast %183 : i32 to index
      %c0_82 = arith.constant 0 : index
      %185 = vector.load %arg8[%184, %c0_82] : memref<16x256xf32, #tpu.memory_space<vmem>>, vector<1x256xf32>
      %c3_i32_83 = arith.constant 3 : i32
      %186 = arith.addi %156, %c3_i32_83 : i32
      %187 = arith.index_cast %186 : i32 to index
      %c0_84 = arith.constant 0 : index
      %188 = vector.load %arg9[%187, %c0_84] : memref<128x256xf32, #tpu.memory_space<vmem>>, vector<1x256xf32>
      tpu.vector_store %arg9[%187, %c0_84], %185 {strides = array<i32>} : memref<128x256xf32, #tpu.memory_space<vmem>>, vector<1x256xf32>,
      %c4_i32 = arith.constant 4 : i32
      %189 = arith.addi %156, %c4_i32 : i32
      %190 = arith.index_cast %189 : i32 to index
      %191 = memref.load %arg0[%190] : memref<128xi32, #tpu.memory_space<smem>>
      %192 = arith.index_cast %191 : i32 to index
      %c0_85 = arith.constant 0 : index
      %193 = vector.load %arg8[%192, %c0_85] : memref<16x256xf32, #tpu.memory_space<vmem>>, vector<1x256xf32>
      %c4_i32_86 = arith.constant 4 : i32
      %194 = arith.addi %156, %c4_i32_86 : i32
      %195 = arith.index_cast %194 : i32 to index
      %c0_87 = arith.constant 0 : index
      %196 = vector.load %arg9[%195, %c0_87] : memref<128x256xf32, #tpu.memory_space<vmem>>, vector<1x256xf32>
      tpu.vector_store %arg9[%195, %c0_87], %193 {strides = array<i32>} : memref<128x256xf32, #tpu.memory_space<vmem>>, vector<1x256xf32>,
      %c5_i32 = arith.constant 5 : i32
      %197 = arith.addi %156, %c5_i32 : i32
      %198 = arith.index_cast %197 : i32 to index
      %199 = memref.load %arg0[%198] : memref<128xi32, #tpu.memory_space<smem>>
      %200 = arith.index_cast %199 : i32 to index
      %c0_88 = arith.constant 0 : index
      %201 = vector.load %arg8[%200, %c0_88] : memref<16x256xf32, #tpu.memory_space<vmem>>, vector<1x256xf32>
      %c5_i32_89 = arith.constant 5 : i32
      %202 = arith.addi %156, %c5_i32_89 : i32
      %203 = arith.index_cast %202 : i32 to index
      %c0_90 = arith.constant 0 : index
      %204 = vector.load %arg9[%203, %c0_90] : memref<128x256xf32, #tpu.memory_space<vmem>>, vector<1x256xf32>
      tpu.vector_store %arg9[%203, %c0_90], %201 {strides = array<i32>} : memref<128x256xf32, #tpu.memory_space<vmem>>, vector<1x256xf32>,
      %c6_i32 = arith.constant 6 : i32
      %205 = arith.addi %156, %c6_i32 : i32
      %206 = arith.index_cast %205 : i32 to index
      %207 = memref.load %arg0[%206] : memref<128xi32, #tpu.memory_space<smem>>
      %208 = arith.index_cast %207 : i32 to index
      %c0_91 = arith.constant 0 : index
      %209 = vector.load %arg8[%208, %c0_91] : memref<16x256xf32, #tpu.memory_space<vmem>>, vector<1x256xf32>
      %c6_i32_92 = arith.constant 6 : i32
      %210 = arith.addi %156, %c6_i32_92 : i32
      %211 = arith.index_cast %210 : i32 to index
      %c0_93 = arith.constant 0 : index
      %212 = vector.load %arg9[%211, %c0_93] : memref<128x256xf32, #tpu.memory_space<vmem>>, vector<1x256xf32>
      tpu.vector_store %arg9[%211, %c0_93], %209 {strides = array<i32>} : memref<128x256xf32, #tpu.memory_space<vmem>>, vector<1x256xf32>,
      %c7_i32 = arith.constant 7 : i32
      %213 = arith.addi %156, %c7_i32 : i32
      %214 = arith.index_cast %213 : i32 to index
      %215 = memref.load %arg0[%214] : memref<128xi32, #tpu.memory_space<smem>>
      %216 = arith.index_cast %215 : i32 to index
      %c0_94 = arith.constant 0 : index
      %217 = vector.load %arg8[%216, %c0_94] : memref<16x256xf32, #tpu.memory_space<vmem>>, vector<1x256xf32>
      %c7_i32_95 = arith.constant 7 : i32
      %218 = arith.addi %156, %c7_i32_95 : i32
      %219 = arith.index_cast %218 : i32 to index
      %c0_96 = arith.constant 0 : index
      %220 = vector.load %arg9[%219, %c0_96] : memref<128x256xf32, #tpu.memory_space<vmem>>, vector<1x256xf32>
      tpu.vector_store %arg9[%219, %c0_96], %217 {strides = array<i32>} : memref<128x256xf32, #tpu.memory_space<vmem>>, vector<1x256xf32>,
    }
    %c16_i32_36 = arith.constant 16 : i32
    %c0_37 = arith.constant 0 : index
    %c0_38 = arith.constant 0 : index
    %67 = vector.load %arg9[%c0_37, %c0_38] : memref<128x256xf32, #tpu.memory_space<vmem>>, vector<128x128xf32>
    %c0_39 = arith.constant 0 : index
    %c128_40 = arith.constant 128 : index
    %68 = vector.load %arg9[%c0_39, %c128_40] : memref<128x256xf32, #tpu.memory_space<vmem>>, vector<128x128xf32>
    %69 = vector.shape_cast %68 : vector<128x128xf32> to vector<16x8x128xf32>
    %70 = vector.shape_cast %67 : vector<128x128xf32> to vector<16x8x128xf32>
    %cst_41 = arith.constant dense<0.000000e+00> : vector<16x128xf32>
    %71 = vector.multi_reduction <add>, %70, %cst_41 [1] : vector<16x8x128xf32> to vector<16x128xf32>
    %72 = arith.truncf %71 : vector<16x128xf32> to vector<16x128xbf16>
    %cst_42 = arith.constant dense<0.000000e+00> : vector<16x384xf32>
    %73 = tpu.matmul %72, %12, %cst_42 {dimension_numbers = #tpu.dot_dimension_numbers<[1], [0], [0], [1], [0, 0, 1, 1], [], []>} : vector<16x128xbf16>, vector<128x384xbf16>, vector<16x384xf32> -> vector<16x384xf32>
    %74 = arith.addf %5, %73 : vector<16x384xf32>
    %75 = vector.extract_strided_slice %74 {offsets = [0, 0], sizes = [16, 128], strides = [1, 1]} : vector<16x384xf32> to vector<16x128xf32>
    %76 = arith.negf %75 : vector<16x128xf32>
    %77 = math.exp %76 : vector<16x128xf32>
    %cst_43 = arith.constant 1.000000e+00 : f32
    %78 = vector.broadcast %cst_43 : f32 to vector<16x128xf32>
    %79 = arith.addf %78, %77 : vector<16x128xf32>
    %80 = arith.divf %78, %79 : vector<16x128xf32>
    %81 = vector.extract_strided_slice %74 {offsets = [0, 128], sizes = [16, 128], strides = [1, 1]} : vector<16x384xf32> to vector<16x128xf32>
    %82 = arith.negf %81 : vector<16x128xf32>
    %83 = math.exp %82 : vector<16x128xf32>
    %cst_44 = arith.constant 1.000000e+00 : f32
    %84 = vector.broadcast %cst_44 : f32 to vector<16x128xf32>
    %85 = arith.addf %84, %83 : vector<16x128xf32>
    %86 = arith.divf %84, %85 : vector<16x128xf32>
    %87 = vector.extract_strided_slice %74 {offsets = [0, 256], sizes = [16, 128], strides = [1, 1]} : vector<16x384xf32> to vector<16x128xf32>
    %88 = math.tanh %87 : vector<16x128xf32>
    %89 = arith.truncf %67 : vector<128x128xf32> to vector<128x128xbf16>
    %cst_45 = arith.constant dense<0.000000e+00> : vector<128x128xf32>
    %90 = tpu.matmul %89, %13, %cst_45 {dimension_numbers = #tpu.dot_dimension_numbers<[1], [0], [0], [1], [0, 0, 1, 1], [], []>} : vector<128x128xbf16>, vector<128x128xbf16>, vector<128x128xf32> -> vector<128x128xf32>
    %91 = vector.shape_cast %90 : vector<128x128xf32> to vector<16x8x128xf32>
    %92 = vector.broadcast %11 : vector<16x1x128xf32> to vector<16x8x128xf32>
    %93 = arith.addf %91, %92 : vector<16x8x128xf32>
    %94 = arith.negf %93 : vector<16x8x128xf32>
    %95 = math.exp %94 : vector<16x8x128xf32>
    %cst_46 = arith.constant 1.000000e+00 : f32
    %96 = vector.broadcast %cst_46 : f32 to vector<16x8x128xf32>
    %97 = arith.addf %96, %95 : vector<16x8x128xf32>
    %98 = arith.divf %96, %97 : vector<16x8x128xf32>
    %99 = arith.mulf %98, %69 : vector<16x8x128xf32>
    %cst_47 = arith.constant dense<0.000000e+00> : vector<16x128xf32>
    %100 = vector.multi_reduction <add>, %99, %cst_47 [1] : vector<16x8x128xf32> to vector<16x128xf32>
    %101 = arith.mulf %80, %88 : vector<16x128xf32>
    %102 = arith.addf %101, %100 : vector<16x128xf32>
    %103 = math.tanh %102 : vector<16x128xf32>
    %104 = arith.mulf %86, %103 : vector<16x128xf32>
    %105 = vector.broadcast %20 : vector<16x1xf32> to vector<16x128xf32>
    %106 = arith.mulf %104, %105 : vector<16x128xf32>
    %c0_48 = arith.constant 0 : index
    %c0_49 = arith.constant 0 : index
    %107 = vector.load %arg8[%c0_48, %c0_49] : memref<16x256xf32, #tpu.memory_space<vmem>>, vector<16x128xf32>
    tpu.vector_store %arg8[%c0_48, %c0_49], %106 {strides = array<i32>} : memref<16x256xf32, #tpu.memory_space<vmem>>, vector<16x128xf32>,
    %108 = vector.broadcast %20 : vector<16x1xf32> to vector<16x128xf32>
    %109 = arith.mulf %102, %108 : vector<16x128xf32>
    %c0_50 = arith.constant 0 : index
    %c128_51 = arith.constant 128 : index
    %110 = vector.load %arg8[%c0_50, %c128_51] : memref<16x256xf32, #tpu.memory_space<vmem>>, vector<16x128xf32>
    tpu.vector_store %arg8[%c0_50, %c128_51], %109 {strides = array<i32>} : memref<16x256xf32, #tpu.memory_space<vmem>>, vector<16x128xf32>,
    %c0_i32_52 = arith.constant 0 : i32
    %c16_i32_53 = arith.constant 16 : i32
    %111 = arith.addi %c0_i32_52, %c16_i32_53 : i32
    %c1_i32_54 = arith.constant 1 : i32
    scf.for %arg10 = %c0_i32_52 to %111 step %c1_i32_54  : i32 {
      %c8_i32 = arith.constant 8 : i32
      %156 = arith.muli %arg10, %c8_i32 : i32
      %c0_i32_71 = arith.constant 0 : i32
      %157 = arith.addi %156, %c0_i32_71 : i32
      %158 = arith.index_cast %157 : i32 to index
      %159 = memref.load %arg0[%158] : memref<128xi32, #tpu.memory_space<smem>>
      %160 = arith.index_cast %159 : i32 to index
      %c0_72 = arith.constant 0 : index
      %161 = vector.load %arg8[%160, %c0_72] : memref<16x256xf32, #tpu.memory_space<vmem>>, vector<1x256xf32>
      %c0_i32_73 = arith.constant 0 : i32
      %162 = arith.addi %156, %c0_i32_73 : i32
      %163 = arith.index_cast %162 : i32 to index
      %c0_74 = arith.constant 0 : index
      %164 = vector.load %arg9[%163, %c0_74] : memref<128x256xf32, #tpu.memory_space<vmem>>, vector<1x256xf32>
      tpu.vector_store %arg9[%163, %c0_74], %161 {strides = array<i32>} : memref<128x256xf32, #tpu.memory_space<vmem>>, vector<1x256xf32>,
      %c1_i32_75 = arith.constant 1 : i32
      %165 = arith.addi %156, %c1_i32_75 : i32
      %166 = arith.index_cast %165 : i32 to index
      %167 = memref.load %arg0[%166] : memref<128xi32, #tpu.memory_space<smem>>
      %168 = arith.index_cast %167 : i32 to index
      %c0_76 = arith.constant 0 : index
      %169 = vector.load %arg8[%168, %c0_76] : memref<16x256xf32, #tpu.memory_space<vmem>>, vector<1x256xf32>
      %c1_i32_77 = arith.constant 1 : i32
      %170 = arith.addi %156, %c1_i32_77 : i32
      %171 = arith.index_cast %170 : i32 to index
      %c0_78 = arith.constant 0 : index
      %172 = vector.load %arg9[%171, %c0_78] : memref<128x256xf32, #tpu.memory_space<vmem>>, vector<1x256xf32>
      tpu.vector_store %arg9[%171, %c0_78], %169 {strides = array<i32>} : memref<128x256xf32, #tpu.memory_space<vmem>>, vector<1x256xf32>,
      %c2_i32 = arith.constant 2 : i32
      %173 = arith.addi %156, %c2_i32 : i32
      %174 = arith.index_cast %173 : i32 to index
      %175 = memref.load %arg0[%174] : memref<128xi32, #tpu.memory_space<smem>>
      %176 = arith.index_cast %175 : i32 to index
      %c0_79 = arith.constant 0 : index
      %177 = vector.load %arg8[%176, %c0_79] : memref<16x256xf32, #tpu.memory_space<vmem>>, vector<1x256xf32>
      %c2_i32_80 = arith.constant 2 : i32
      %178 = arith.addi %156, %c2_i32_80 : i32
      %179 = arith.index_cast %178 : i32 to index
      %c0_81 = arith.constant 0 : index
      %180 = vector.load %arg9[%179, %c0_81] : memref<128x256xf32, #tpu.memory_space<vmem>>, vector<1x256xf32>
      tpu.vector_store %arg9[%179, %c0_81], %177 {strides = array<i32>} : memref<128x256xf32, #tpu.memory_space<vmem>>, vector<1x256xf32>,
      %c3_i32 = arith.constant 3 : i32
      %181 = arith.addi %156, %c3_i32 : i32
      %182 = arith.index_cast %181 : i32 to index
      %183 = memref.load %arg0[%182] : memref<128xi32, #tpu.memory_space<smem>>
      %184 = arith.index_cast %183 : i32 to index
      %c0_82 = arith.constant 0 : index
      %185 = vector.load %arg8[%184, %c0_82] : memref<16x256xf32, #tpu.memory_space<vmem>>, vector<1x256xf32>
      %c3_i32_83 = arith.constant 3 : i32
      %186 = arith.addi %156, %c3_i32_83 : i32
      %187 = arith.index_cast %186 : i32 to index
      %c0_84 = arith.constant 0 : index
      %188 = vector.load %arg9[%187, %c0_84] : memref<128x256xf32, #tpu.memory_space<vmem>>, vector<1x256xf32>
      tpu.vector_store %arg9[%187, %c0_84], %185 {strides = array<i32>} : memref<128x256xf32, #tpu.memory_space<vmem>>, vector<1x256xf32>,
      %c4_i32 = arith.constant 4 : i32
      %189 = arith.addi %156, %c4_i32 : i32
      %190 = arith.index_cast %189 : i32 to index
      %191 = memref.load %arg0[%190] : memref<128xi32, #tpu.memory_space<smem>>
      %192 = arith.index_cast %191 : i32 to index
      %c0_85 = arith.constant 0 : index
      %193 = vector.load %arg8[%192, %c0_85] : memref<16x256xf32, #tpu.memory_space<vmem>>, vector<1x256xf32>
      %c4_i32_86 = arith.constant 4 : i32
      %194 = arith.addi %156, %c4_i32_86 : i32
      %195 = arith.index_cast %194 : i32 to index
      %c0_87 = arith.constant 0 : index
      %196 = vector.load %arg9[%195, %c0_87] : memref<128x256xf32, #tpu.memory_space<vmem>>, vector<1x256xf32>
      tpu.vector_store %arg9[%195, %c0_87], %193 {strides = array<i32>} : memref<128x256xf32, #tpu.memory_space<vmem>>, vector<1x256xf32>,
      %c5_i32 = arith.constant 5 : i32
      %197 = arith.addi %156, %c5_i32 : i32
      %198 = arith.index_cast %197 : i32 to index
      %199 = memref.load %arg0[%198] : memref<128xi32, #tpu.memory_space<smem>>
      %200 = arith.index_cast %199 : i32 to index
      %c0_88 = arith.constant 0 : index
      %201 = vector.load %arg8[%200, %c0_88] : memref<16x256xf32, #tpu.memory_space<vmem>>, vector<1x256xf32>
      %c5_i32_89 = arith.constant 5 : i32
      %202 = arith.addi %156, %c5_i32_89 : i32
      %203 = arith.index_cast %202 : i32 to index
      %c0_90 = arith.constant 0 : index
      %204 = vector.load %arg9[%203, %c0_90] : memref<128x256xf32, #tpu.memory_space<vmem>>, vector<1x256xf32>
      tpu.vector_store %arg9[%203, %c0_90], %201 {strides = array<i32>} : memref<128x256xf32, #tpu.memory_space<vmem>>, vector<1x256xf32>,
      %c6_i32 = arith.constant 6 : i32
      %205 = arith.addi %156, %c6_i32 : i32
      %206 = arith.index_cast %205 : i32 to index
      %207 = memref.load %arg0[%206] : memref<128xi32, #tpu.memory_space<smem>>
      %208 = arith.index_cast %207 : i32 to index
      %c0_91 = arith.constant 0 : index
      %209 = vector.load %arg8[%208, %c0_91] : memref<16x256xf32, #tpu.memory_space<vmem>>, vector<1x256xf32>
      %c6_i32_92 = arith.constant 6 : i32
      %210 = arith.addi %156, %c6_i32_92 : i32
      %211 = arith.index_cast %210 : i32 to index
      %c0_93 = arith.constant 0 : index
      %212 = vector.load %arg9[%211, %c0_93] : memref<128x256xf32, #tpu.memory_space<vmem>>, vector<1x256xf32>
      tpu.vector_store %arg9[%211, %c0_93], %209 {strides = array<i32>} : memref<128x256xf32, #tpu.memory_space<vmem>>, vector<1x256xf32>,
      %c7_i32 = arith.constant 7 : i32
      %213 = arith.addi %156, %c7_i32 : i32
      %214 = arith.index_cast %213 : i32 to index
      %215 = memref.load %arg0[%214] : memref<128xi32, #tpu.memory_space<smem>>
      %216 = arith.index_cast %215 : i32 to index
      %c0_94 = arith.constant 0 : index
      %217 = vector.load %arg8[%216, %c0_94] : memref<16x256xf32, #tpu.memory_space<vmem>>, vector<1x256xf32>
      %c7_i32_95 = arith.constant 7 : i32
      %218 = arith.addi %156, %c7_i32_95 : i32
      %219 = arith.index_cast %218 : i32 to index
      %c0_96 = arith.constant 0 : index
      %220 = vector.load %arg9[%219, %c0_96] : memref<128x256xf32, #tpu.memory_space<vmem>>, vector<1x256xf32>
      tpu.vector_store %arg9[%219, %c0_96], %217 {strides = array<i32>} : memref<128x256xf32, #tpu.memory_space<vmem>>, vector<1x256xf32>,
    }
    %c16_i32_55 = arith.constant 16 : i32
    %c0_56 = arith.constant 0 : index
    %c0_57 = arith.constant 0 : index
    %112 = vector.load %arg9[%c0_56, %c0_57] : memref<128x256xf32, #tpu.memory_space<vmem>>, vector<128x128xf32>
    %c0_58 = arith.constant 0 : index
    %c128_59 = arith.constant 128 : index
    %113 = vector.load %arg9[%c0_58, %c128_59] : memref<128x256xf32, #tpu.memory_space<vmem>>, vector<128x128xf32>
    %114 = vector.shape_cast %113 : vector<128x128xf32> to vector<16x8x128xf32>
    %115 = vector.shape_cast %112 : vector<128x128xf32> to vector<16x8x128xf32>
    %cst_60 = arith.constant dense<0.000000e+00> : vector<16x128xf32>
    %116 = vector.multi_reduction <add>, %115, %cst_60 [1] : vector<16x8x128xf32> to vector<16x128xf32>
    %117 = arith.truncf %116 : vector<16x128xf32> to vector<16x128xbf16>
    %cst_61 = arith.constant dense<0.000000e+00> : vector<16x384xf32>
    %118 = tpu.matmul %117, %12, %cst_61 {dimension_numbers = #tpu.dot_dimension_numbers<[1], [0], [0], [1], [0, 0, 1, 1], [], []>} : vector<16x128xbf16>, vector<128x384xbf16>, vector<16x384xf32> -> vector<16x384xf32>
    %119 = arith.addf %5, %118 : vector<16x384xf32>
    %120 = vector.extract_strided_slice %119 {offsets = [0, 0], sizes = [16, 128], strides = [1, 1]} : vector<16x384xf32> to vector<16x128xf32>
    %121 = arith.negf %120 : vector<16x128xf32>
    %122 = math.exp %121 : vector<16x128xf32>
    %cst_62 = arith.constant 1.000000e+00 : f32
    %123 = vector.broadcast %cst_62 : f32 to vector<16x128xf32>
    %124 = arith.addf %123, %122 : vector<16x128xf32>
    %125 = arith.divf %123, %124 : vector<16x128xf32>
    %126 = vector.extract_strided_slice %119 {offsets = [0, 128], sizes = [16, 128], strides = [1, 1]} : vector<16x384xf32> to vector<16x128xf32>
    %127 = arith.negf %126 : vector<16x128xf32>
    %128 = math.exp %127 : vector<16x128xf32>
    %cst_63 = arith.constant 1.000000e+00 : f32
    %129 = vector.broadcast %cst_63 : f32 to vector<16x128xf32>
    %130 = arith.addf %129, %128 : vector<16x128xf32>
    %131 = arith.divf %129, %130 : vector<16x128xf32>
    %132 = vector.extract_strided_slice %119 {offsets = [0, 256], sizes = [16, 128], strides = [1, 1]} : vector<16x384xf32> to vector<16x128xf32>
    %133 = math.tanh %132 : vector<16x128xf32>
    %134 = arith.truncf %112 : vector<128x128xf32> to vector<128x128xbf16>
    %cst_64 = arith.constant dense<0.000000e+00> : vector<128x128xf32>
    %135 = tpu.matmul %134, %13, %cst_64 {dimension_numbers = #tpu.dot_dimension_numbers<[1], [0], [0], [1], [0, 0, 1, 1], [], []>} : vector<128x128xbf16>, vector<128x128xbf16>, vector<128x128xf32> -> vector<128x128xf32>
    %136 = vector.shape_cast %135 : vector<128x128xf32> to vector<16x8x128xf32>
    %137 = vector.broadcast %11 : vector<16x1x128xf32> to vector<16x8x128xf32>
    %138 = arith.addf %136, %137 : vector<16x8x128xf32>
    %139 = arith.negf %138 : vector<16x8x128xf32>
    %140 = math.exp %139 : vector<16x8x128xf32>
    %cst_65 = arith.constant 1.000000e+00 : f32
    %141 = vector.broadcast %cst_65 : f32 to vector<16x8x128xf32>
    %142 = arith.addf %141, %140 : vector<16x8x128xf32>
    %143 = arith.divf %141, %142 : vector<16x8x128xf32>
    %144 = arith.mulf %143, %114 : vector<16x8x128xf32>
    %cst_66 = arith.constant dense<0.000000e+00> : vector<16x128xf32>
    %145 = vector.multi_reduction <add>, %144, %cst_66 [1] : vector<16x8x128xf32> to vector<16x128xf32>
    %146 = arith.mulf %125, %133 : vector<16x128xf32>
    %147 = arith.addf %146, %145 : vector<16x128xf32>
    %148 = math.tanh %147 : vector<16x128xf32>
    %149 = arith.mulf %131, %148 : vector<16x128xf32>
    %150 = vector.broadcast %20 : vector<16x1xf32> to vector<16x128xf32>
    %151 = arith.mulf %149, %150 : vector<16x128xf32>
    %c0_67 = arith.constant 0 : index
    %c0_68 = arith.constant 0 : index
    %152 = vector.load %arg8[%c0_67, %c0_68] : memref<16x256xf32, #tpu.memory_space<vmem>>, vector<16x128xf32>
    tpu.vector_store %arg8[%c0_67, %c0_68], %151 {strides = array<i32>} : memref<16x256xf32, #tpu.memory_space<vmem>>, vector<16x128xf32>,
    %153 = vector.broadcast %20 : vector<16x1xf32> to vector<16x128xf32>
    %154 = arith.mulf %147, %153 : vector<16x128xf32>
    %c0_69 = arith.constant 0 : index
    %c128_70 = arith.constant 128 : index
    %155 = vector.load %arg8[%c0_69, %c128_70] : memref<16x256xf32, #tpu.memory_space<vmem>>, vector<16x128xf32>
    tpu.vector_store %arg8[%c0_69, %c128_70], %154 {strides = array<i32>} : memref<16x256xf32, #tpu.memory_space<vmem>>, vector<16x128xf32>,
    return
  }
}

</mosaic_0001>

<bundles_post_ra>
// kernel: tpu_custom_call.1
= control target key start
LH: loop header
LB: loop body
LE: loop exit
PB: predicated region body
PF: predicated region fallthrough
CT: control target
= control target key end

     0   :  { %13 = vsyncpa [#allocation6], 0  ;;  %s6116_s0 = inlined_call_operand.hbm [shape: s32[128], index: 0, kind: input, shape index: {}]   ;;  %s6117_s1 = inlined_call_operand.hbm [shape: bf16[16,128], index: 1, kind: input, shape index: {}]   ;;  %s6118_s2 = inlined_call_operand.hbm [shape: bf16[128,384], index: 2, kind: input, shape index: {}]   ;;  %s6119_s3 = inlined_call_operand.hbm [shape: bf16[128,384], index: 3, kind: input, shape index: {}]   ;;  %s6120_s4 = inlined_call_operand.vmem [shape: f32[1,384], index: 4, kind: input, shape index: {}]   ;;  %s6121_s5 = inlined_call_operand.hbm [shape: bf16[128,128], index: 5, kind: input, shape index: {}]   ;;  %s6122_s6 = inlined_call_operand.hbm [shape: bf16[128,128], index: 6, kind: input, shape index: {}]   ;;  %s6123_s7 = inlined_call_operand.vmem [shape: f32[1,128], index: 7, kind: input, shape index: {}]   ;;  %s6124_s8 = inlined_call_operand.hbm [shape: f32[16,256], index: 8, kind: output, shape index: {}]  }
   0x1   :  { %14 = vsyncpa [#allocation4], 0 }
   0x2   :  { %15 = vsyncpa [#allocation9], 0 }
   0x3   :  { %16 = vsyncpa [#allocation12], 0 }
   0x4   :  { %17 = vsyncpa [#allocation5], 0  ;;  %s4756_s27 = smov [#allocation8]   ;;  %s4580_s9 = scalar_lea.hbm %s6118_s2, 3072 }
   0x5   :  { %s43_s28 = sshll.u32 %s4756_s27, 4  ;;  %p4581_p0 = scmp.ne.s32.totalorder %s6118_s2, %s4580_s9  ;;  %s44_s28 = int_to_ptr.vmem [resolvable:$true] %s43_s28 }
   0x6   :  { %p4584_p1 = scmp.lt.u32.totalorder %s4580_s9, %s6118_s2 }
   0x8   :  { %p4586_p2 = pnand %p4584_p1, %p4581_p0 }
   0xa   :  { %4589 = shalt.err (!%p4586_p2)
}
   0xb   :  { %s4590_s14 = scalar_lea.vmem %s44_s28, 3072  ;;  %p4595_p4 = scmp.lt.s32.totalorder %s44_s28, %s44_s28 }
   0xc   :  { %p4591_p3 = scmp.ne.s32.totalorder %s44_s28, %s4590_s14  ;;  %p4596_p5 = scmp.lt.s32.totalorder %s4590_s14, %s4590_s14 }
   0xe   :  { %p4597_p6 = por %p4596_p5, %p4595_p4 }
  0x10   :  { %p4598_p7 = pnand %p4597_p6, %p4591_p3 }
  0x12   :  { %4601 = shalt.err (!%p4598_p7)
}
  0x13   :  { %s4757_s15 = smov 192   ;;  %s4758_s16 = smov 12  }
  0x14   :  { %49 = dma.hbm_to_vmem [thread:$0]  %s6118_s2, 3072, %s44_s28, [#allocation9], %s4757_s15, %s4757_s15, %s4758_s16  }
  0x15   :  { %s4759_s19 = smov [#allocation11]   ;;  %s4602_s23 = scalar_lea.hbm %s6121_s5, 1024 }
  0x16   :  { %s69_s20 = sshll.u32 %s4759_s19, 4  ;;  %p4603_p8 = scmp.ne.s32.totalorder %s6121_s5, %s4602_s23  ;;  %s70_s20 = int_to_ptr.vmem [resolvable:$true] %s69_s20 }
  0x17   :  { %p4606_p9 = scmp.lt.u32.totalorder %s4602_s23, %s6121_s5 }
  0x19   :  { %p4608_p10 = pnand %p4606_p9, %p4603_p8 }
  0x1b   :  { %4611 = shalt.err (!%p4608_p10)
}
  0x1c   :  { %s4612_s29 = scalar_lea.vmem %s70_s20, 1024  ;;  %p4617_p12 = scmp.lt.s32.totalorder %s70_s20, %s70_s20 }
  0x1d   :  { %p4613_p11 = scmp.ne.s32.totalorder %s70_s20, %s4612_s29  ;;  %p4618_p13 = scmp.lt.s32.totalorder %s4612_s29, %s4612_s29 }
  0x1f   :  { %p4619_p0 = por %p4618_p13, %p4617_p12 }
  0x21   :  { %p4620_p1 = pnand %p4619_p0, %p4613_p11 }
  0x23   :  { %4623 = shalt.err (!%p4620_p1)
}
  0x24   :  { %s4760_s2 = smov 64   ;;  %s4761_s28 = smov 4  }
  0x25   :  { %75 = dma.hbm_to_vmem [thread:$0]  %s6121_s5, 1024, %s70_s20, [#allocation12], %s4760_s2, %s4760_s2, %s4761_s28  }
  0x26   :  { %s4624_s12 = scalar_lea.hbm %s6116_s0, 16 }
  0x27   :  { %p4625_p2 = scmp.ne.s32.totalorder %s6116_s0, %s4624_s12  ;;  %p4628_p3 = scmp.lt.u32.totalorder %s4624_s12, %s6116_s0 }
  0x29   :  { %p4630_p4 = pnand %p4628_p3, %p4625_p2 }
  0x2b   :  { %4633 = shalt.err (!%p4630_p4)
}
  0x2c   :  { %s4762_s19 = smov [#allocation3]   ;;  %s4763_s5 = smov [#allocation7]  }
  0x2d   :  { %25 = dma.hbm_to_smem %s6116_s0, 16, %s4762_s19, [#allocation6]  }
  0x2e   :  { %s31_s20 = sshll.u32 %s4763_s5, 4  ;;  %s4764_s23 = smov [#allocation10]   ;;  %s32_s20 = int_to_ptr.vmem [resolvable:$true] %s31_s20 }
  0x2f   :  { %s55_s24 = sshll.u32 %s4764_s23, 4  ;;  %s4634_s27 = scalar_lea.hbm %s6117_s1, 128  ;;  %s56_s24 = int_to_ptr.vmem [resolvable:$true] %s55_s24 }
  0x30   :  { %p4635_p5 = scmp.ne.s32.totalorder %s6117_s1, %s4634_s27  ;;  %p4638_p6 = scmp.lt.u32.totalorder %s4634_s27, %s6117_s1 }
  0x32   :  { %p4640_p7 = pnand %p4638_p6, %p4635_p5 }
  0x34   :  { %4643 = shalt.err (!%p4640_p7)
}
  0x35   :  { %s4644_s0 = scalar_lea.vmem %s32_s20, 128  ;;  %p4649_p9 = scmp.lt.s32.totalorder %s32_s20, %s32_s20 }
  0x36   :  { %p4645_p8 = scmp.ne.s32.totalorder %s32_s20, %s4644_s0  ;;  %p4650_p10 = scmp.lt.s32.totalorder %s4644_s0, %s4644_s0 }
  0x38   :  { %p4651_p11 = por %p4650_p10, %p4649_p9 }
  0x3a   :  { %p4652_p12 = pnand %p4651_p11, %p4645_p8 }
  0x3c   :  { %4655 = shalt.err (!%p4652_p12)
}
  0x3d   :  { %37 = dma.hbm_to_vmem [thread:$0]  %s6117_s1, 128, %s32_s20, [#allocation4], %s4760_s2, %s4760_s2, %s4761_s28  }
  0x3e   :  { %s4656_s17 = scalar_lea.hbm %s6119_s3, 3072 }
  0x3f   :  { %p4657_p13 = scmp.ne.s32.totalorder %s6119_s3, %s4656_s17  ;;  %p4660_p0 = scmp.lt.u32.totalorder %s4656_s17, %s6119_s3 }
  0x41   :  { %p4662_p1 = pnand %p4660_p0, %p4657_p13 }
  0x43   :  { %4665 = shalt.err (!%p4662_p1)
}
  0x44   :  { %s4666_s5 = scalar_lea.vmem %s56_s24, 3072  ;;  %p4671_p3 = scmp.lt.s32.totalorder %s56_s24, %s56_s24 }
  0x45   :  { %p4667_p2 = scmp.ne.s32.totalorder %s56_s24, %s4666_s5  ;;  %p4672_p4 = scmp.lt.s32.totalorder %s4666_s5, %s4666_s5 }
  0x47   :  { %p4673_p5 = por %p4672_p4, %p4671_p3 }
  0x49   :  { %p4674_p6 = pnand %p4673_p5, %p4667_p2 }
  0x4b   :  { %4677 = shalt.err (!%p4674_p6)
}
  0x4c   :  { %61 = dma.hbm_to_vmem [thread:$0]  %s6119_s3, 3072, %s56_s24, [#allocation9], %s4757_s15, %s4757_s15, %s4758_s16  }
  0x4d   :  { %s4765_s23 = smov [#allocation13]   ;;  %s4678_s29 = scalar_lea.hbm %s6122_s6, 1024 }
  0x4e   :  { %s81_s25 = sshll.u32 %s4765_s23, 4  ;;  %p4679_p7 = scmp.ne.s32.totalorder %s6122_s6, %s4678_s29  ;;  %s82_s25 = int_to_ptr.vmem [resolvable:$true] %s81_s25 }
  0x4f   :  { %p4682_p8 = scmp.lt.u32.totalorder %s4678_s29, %s6122_s6 }
  0x51   :  { %p4684_p9 = pnand %p4682_p8, %p4679_p7 }
  0x53   :  { %4687 = shalt.err (!%p4684_p9)
}
  0x54   :  { %s4688_s11 = scalar_lea.vmem %s82_s25, 1024  ;;  %p4693_p11 = scmp.lt.s32.totalorder %s82_s25, %s82_s25 }
  0x55   :  { %p4689_p10 = scmp.ne.s32.totalorder %s82_s25, %s4688_s11  ;;  %p4694_p12 = scmp.lt.s32.totalorder %s4688_s11, %s4688_s11 }
  0x57   :  { %p4695_p13 = por %p4694_p12, %p4693_p11 }
  0x59   :  { %p4696_p0 = pnand %p4695_p13, %p4689_p10 }
  0x5b   :  { %4699 = shalt.err (!%p4696_p0)
}
  0x5c   :  { %87 = dma.hbm_to_vmem [thread:$0]  %s6122_s6, 1024, %s82_s25, [#allocation12], %s4760_s2, %s4760_s2, %s4761_s28  }
  0x5d   :  { %4734 = dma.done.wait [#allocation6], 16  }
  0x5e   :  { %4735 = vsyncadd [#allocation6], 4294967280 }
  0x5f   :  { %4736 = dma.done.wait [#allocation4], 128  }
  0x60   :  { %4737 = vsyncadd [#allocation4], 4294967168 }
  0x61   :  { %4738 = dma.done.wait [#allocation9], 6144  }
  0x62   :  { %4739 = vsyncadd [#allocation9], 4294961152 }
  0x63   :  { %4740 = dma.done.wait [#allocation12], 2048  }
  0x64   :  { %4741 = vsyncadd [#allocation12], 4294965248 }
  0x65   :  { %108 = sfence }
  0x66   :  { %v4275_v0 = vld [vmem:[#allocation8 + $0x4] ss:$12 sps:$4 sm:$0xff]   ;;  %v4277_v1 = vld [vmem:[#allocation8] ss:$12 sps:$4 sm:$0xff]   ;;  %v6125_v2 = vmov 0   ;;  %v6126_v3 = vmov 0.0   ;;  %v6130_v35 = vlaneseq }
  0x67   :  { %327 = vmatprep.mubr.bf16.mxu0 %v6125_v2  ;;  %639 = vst [vmem:[#allocation14] sm:$0xff] %v6126_v3  ;;  %640 = vst [vmem:[#allocation14 + $0x8] sm:$0xff] %v6126_v3  ;;  %4038 = vmatprep.subr.bf16.mxu1 %v6126_v3  ;;  %v4278_v4 = vld [vmem:[#allocation8 + $0x1c] ss:$12 sps:$4 sm:$0xff]   ;;  %vm4768_vm0 = vmmov 0   ;;  %v4300_v24 = vld [vmem:[#allocation11] sm:$0xff]  }
  0x68   :  { %641 = vst [vmem:[#allocation14 + $0x10] sm:$0xff] %v6126_v3  ;;  %642 = vst [vmem:[#allocation14 + $0x18] sm:$0xff] %v6126_v3  ;;  %295 = vmatprep.subr.bf16.mxu0 %v4275_v0  ;;  %4054 = vmatprep.mubr.msk.bf16.mxu1 %vm4768_vm0, %v6126_v3  ;;  %v4280_v5 = vld [vmem:[#allocation8 + $0x18] ss:$12 sps:$4 sm:$0xff]   ;;  %v4281_v6 = vld [vmem:[#allocation8 + $0x34] ss:$12 sps:$4 sm:$0xff]  }
  0x69   :  { %296 = vmatpush1.bf16.msra.mxu0 %v4277_v1  ;;  %v4283_v7 = vld [vmem:[#allocation8 + $0x30] ss:$12 sps:$4 sm:$0xff]   ;;  %v4284_v8 = vld [vmem:[#allocation8 + $0x4c] ss:$12 sps:$4 sm:$0xff]   ;;  %v4286_v9 = vld [vmem:[#allocation8 + $0x48] ss:$12 sps:$4 sm:$0xff]  }
  0x6a   :  { %297 = vmatprep.subr.bf16.mxu0 %v4278_v4  ;;  %v4287_v10 = vld [vmem:[#allocation8 + $0x64] ss:$12 sps:$4 sm:$0xff]   ;;  %v4289_v11 = vld [vmem:[#allocation8 + $0x60] ss:$12 sps:$4 sm:$0xff]   ;;  %v4302_v12 = vld [vmem:[#allocation8 + $0x8] ss:$12 sps:$4 sm:$0xff]  }
  0x6b   :  { %v4290_v13 = vld [vmem:[#allocation8 + $0x7c] ss:$12 sps:$4 sm:$0xff]   ;;  %4039 = vmatpush3.bf16.msra.mxu1 %v4302_v12  ;;  %v4304_v14 = vld [vmem:[#allocation8 + $0x20] ss:$12 sps:$4 sm:$0xff]   ;;  %v4292_v15 = vld [vmem:[#allocation8 + $0x78] ss:$12 sps:$4 sm:$0xff]  }
  0x6c   :  { %4040 = vmatprep.subr.bf16.mxu1 %v6126_v3  ;;  %v4293_v16 = vld [vmem:[#allocation8 + $0x94] ss:$12 sps:$4 sm:$0xff]   ;;  %v4306_v17 = vld [vmem:[#allocation8 + $0x38] ss:$12 sps:$4 sm:$0xff]   ;;  %v4295_v18 = vld [vmem:[#allocation8 + $0x90] ss:$12 sps:$4 sm:$0xff]  }
  0x6d   :  { %298 = vmatpush1.bf16.msra.mxu0 %v4280_v5  ;;  %v4296_v19 = vld [vmem:[#allocation8 + $0xac] ss:$12 sps:$4 sm:$0xff]   ;;  %v4308_v20 = vld [vmem:[#allocation8 + $0x50] ss:$12 sps:$4 sm:$0xff]   ;;  %v4298_v21 = vld [vmem:[#allocation8 + $0xa8] ss:$12 sps:$4 sm:$0xff]  }
  0x6e   :  { %299 = vmatprep.subr.bf16.mxu0 %v4281_v6  ;;  %v4310_v22 = vld [vmem:[#allocation8 + $0x68] ss:$12 sps:$4 sm:$0xff]   ;;  %v4299_v23 = vld [vmem:[#allocation7] sm:$0xff]   ;;  %v4312_v25 = vld [vmem:[#allocation8 + $0x80] ss:$12 sps:$4 sm:$0xff]   ;;  %v4931_v36 = vshrl.u32 %v6130_v35, 7 }
  0x6f   :  { %4041 = vmatpush3.bf16.msra.mxu1 %v4304_v14  ;;  %v4301_v26 = vld [vmem:[#allocation11 + $0x8] sm:$0xff]   ;;  %v4314_v27 = vld [vmem:[#allocation8 + $0x98] ss:$12 sps:$4 sm:$0xff]   ;;  %v4303_v28 = vld [vmem:[#allocation11 + $0x10] sm:$0xff]  }
  0x70   :  { %4042 = vmatprep.subr.bf16.mxu1 %v6126_v3  ;;  %v4315_v29 = vld [vmem:[#allocation8 + $0xb0] ss:$12 sps:$4 sm:$0xff]   ;;  %v4307_v31 = vld [vmem:[#allocation11 + $0x20] sm:$0xff]   ;;  %v4309_v32 = vld [vmem:[#allocation11 + $0x28] sm:$0xff]   ;;  %vm646_vm1 = vcmp.ne.s32.totalorder %v4931_v36, 0  ;;  %v156_v35 = vsub.s32 2, %v4931_v36 }
  0x71   :  { %300 = vmatpush1.bf16.msra.mxu0 %v4283_v7  ;;  %v4305_v30 = vld [vmem:[#allocation11 + $0x18] sm:$0xff]   ;;  %v4311_v33 = vld [vmem:[#allocation11 + $0x30] sm:$0xff]   ;;  %v4935_v37 = vsel %vm646_vm1, 1.0, %v6126_v3  ;;  %v4937_v38 = vld [vmem:[#allocation10] sm:$0xff] }
  0x72   :  { %301 = vmatprep.subr.bf16.mxu0 %v4284_v8  ;;  %v4313_v34 = vld [vmem:[#allocation11 + $0x38] sm:$0xff]   ;;  %6211 = vst [vmem:[#allocation20_spill] sm:$0xff] %v4935_v37  ;;  %v4939_v39 = vld [vmem:[#allocation10 + $0x8] sm:$0xf]  ;;  %v4941_v40 = vld [vmem:[#allocation10 + $0xc] sm:$0xff] }
  0x73   :  { %4043 = vmatpush3.bf16.msra.mxu1 %v4306_v17  ;;  %v4943_v41 = vld [vmem:[#allocation10 + $0x14] sm:$0xf]  ;;  %v4945_v42 = vld [vmem:[#allocation10 + $0x18] sm:$0xff]  ;;  %v4947_v43 = vld [vmem:[#allocation10 + $0x20] sm:$0xf] }
  0x74   :  { %4044 = vmatprep.subr.bf16.mxu1 %v6126_v3  ;;  %v4949_v44 = vld [vmem:[#allocation10 + $0x24] sm:$0xff]  ;;  %v4951_v45 = vld [vmem:[#allocation10 + $0x2c] sm:$0xf]  ;;  %v4953_v46 = vld [vmem:[#allocation10 + $0x30] sm:$0xff] }
  0x75   :  { %302 = vmatpush1.bf16.msra.mxu0 %v4286_v9  ;;  %v4955_v47 = vld [vmem:[#allocation10 + $0x38] sm:$0xf]  ;;  %v4957_v48 = vld [vmem:[#allocation10 + $0x3c] sm:$0xff]  ;;  %v4959_v49 = vld [vmem:[#allocation10 + $0x44] sm:$0xf] }
  0x76   :  { %303 = vmatprep.subr.bf16.mxu0 %v4287_v10  ;;  %v4961_v50 = vld [vmem:[#allocation10 + $0x48] sm:$0xff]  ;;  %v4963_v51 = vld [vmem:[#allocation10 + $0x50] sm:$0xf]  ;;  %v4965_v52 = vld [vmem:[#allocation10 + $0x54] sm:$0xff] }
  0x77   :  { %4045 = vmatpush3.bf16.msra.mxu1 %v4308_v20  ;;  %v4967_v53 = vld [vmem:[#allocation10 + $0x5c] sm:$0xf]  ;;  %v4969_v54 = vld [vmem:[#allocation10 + $0x60] sm:$0xff]  ;;  %v4971_v55 = vld [vmem:[#allocation10 + $0x68] sm:$0xf] }
  0x78   :  { %4046 = vmatprep.subr.bf16.mxu1 %v6126_v3  ;;  %v4973_v56 = vld [vmem:[#allocation10 + $0x6c] sm:$0xff]  ;;  %v4975_v57 = vld [vmem:[#allocation10 + $0x74] sm:$0xf]  ;;  %v4977_v58 = vld [vmem:[#allocation10 + $0x78] sm:$0xff] }
  0x79   :  { %304 = vmatpush1.bf16.msra.mxu0 %v4289_v11  ;;  %v4979_v59 = vld [vmem:[#allocation10 + $0x80] sm:$0xf]  ;;  %v4981_v60 = vld [vmem:[#allocation10 + $0x84] sm:$0xff]  ;;  %v4983_v61 = vld [vmem:[#allocation10 + $0x8c] sm:$0xf] }
  0x7a   :  { %305 = vmatprep.subr.bf16.mxu0 %v4290_v13  ;;  %v4985_v62 = vld [vmem:[#allocation10 + $0x90] sm:$0xff]  ;;  %v4987_v63 = vld [vmem:[#allocation10 + $0x98] sm:$0xf]  ;;  %v4989_v0 = vld [vmem:[#allocation10 + $0x9c] sm:$0xff] }
  0x7b   :  { %4047 = vmatpush3.bf16.msra.mxu1 %v4310_v22  ;;  %v4991_v1 = vld [vmem:[#allocation10 + $0xa4] sm:$0xf]  ;;  %v4993_v4 = vld [vmem:[#allocation10 + $0xa8] sm:$0xff]  ;;  %v4995_v5 = vld [vmem:[#allocation10 + $0xb0] sm:$0xf] }
  0x7c   :  { %4048 = vmatprep.subr.bf16.mxu1 %v6126_v3  ;;  %6212 = vst [vmem:[#allocation21_spill] sm:$0xff] %v4995_v5  ;;  %v4997_v6 = vld [vmem:[#allocation10 + $0xb4] sm:$0xff]  ;;  %v4999_v7 = vld [vmem:[#allocation10 + $0xbc] sm:$0xf]  ;;  %v5001_v8 = vld [vmem:[#allocation13] sm:$0xf] }
  0x7d   :  { %306 = vmatpush1.bf16.msra.mxu0 %v4292_v15  ;;  %6213 = vst [vmem:[#allocation22_spill] sm:$0xff] %v4999_v7  ;;  %v5003_v9 = vld [vmem:[#allocation13 + $0x4] sm:$0xf]  ;;  %v5005_v10 = vld [vmem:[#allocation13 + $0x8] sm:$0xf] }
  0x7e   :  { %307 = vmatprep.subr.bf16.mxu0 %v4293_v16  ;;  %v5007_v11 = vld [vmem:[#allocation13 + $0xc] sm:$0xf]  ;;  %v5009_v12 = vld [vmem:[#allocation13 + $0x10] sm:$0xf]  ;;  %v5011_v13 = vld [vmem:[#allocation13 + $0x14] sm:$0xf] }
  0x7f   :  { %4049 = vmatpush3.bf16.msra.mxu1 %v4312_v25  ;;  %6214 = vst [vmem:[#allocation23_spill] sm:$0xff] %v5009_v12  ;;  %6215 = vst [vmem:[#allocation24_spill] sm:$0xff] %v5011_v13  ;;  %v5013_v14 = vld [vmem:[#allocation13 + $0x18] sm:$0xf]  ;;  %v5015_v15 = vld [vmem:[#allocation13 + $0x1c] sm:$0xf] }
  0x80   :  { %4050 = vmatprep.subr.bf16.mxu1 %v6126_v3  ;;  %6216 = vst [vmem:[#allocation25_spill] sm:$0xff] %v5013_v14  ;;  %6217 = vst [vmem:[#allocation26_spill] sm:$0xff] %v5015_v15  ;;  %v5017_v16 = vld [vmem:[#allocation13 + $0x20] sm:$0xf]  ;;  %v5019_v17 = vld [vmem:[#allocation13 + $0x24] sm:$0xf] }
  0x81   :  { %308 = vmatpush1.bf16.msra.mxu0 %v4295_v18  ;;  %6218 = vst [vmem:[#allocation27_spill] sm:$0xff] %v5017_v16  ;;  %6219 = vst [vmem:[#allocation28_spill] sm:$0xff] %v5019_v17  ;;  %v5021_v18 = vld [vmem:[#allocation13 + $0x28] sm:$0xf]  ;;  %v5025_v20 = vld [vmem:[#allocation13 + $0x30] sm:$0xf] }
  0x82   :  { %309 = vmatprep.subr.bf16.mxu0 %v4296_v19  ;;  %6220 = vst [vmem:[#allocation29_spill] sm:$0xff] %v5021_v18  ;;  %v5023_v19 = vld [vmem:[#allocation13 + $0x2c] sm:$0xf]  ;;  %6222 = vst [vmem:[#allocation31_spill] sm:$0xff] %v5025_v20  ;;  %v5029_v22 = vld [vmem:[#allocation13 + $0x38] sm:$0xf] }
  0x83   :  { %4051 = vmatpush3.bf16.msra.mxu1 %v4314_v27  ;;  %6221 = vst [vmem:[#allocation30_spill] sm:$0xff] %v5023_v19  ;;  %6224 = vst [vmem:[#allocation33_spill] sm:$0xff] %v5029_v22  ;;  %v144_v25 = vld [vmem:[%s6120_s4] sm:$0x7] }
  0x84   :  { %4052 = vmatprep.subr.bf16.mxu1 %v6126_v3  ;;  %v157_v37 = vrot.slane %v144_v25, %v156_v35 }
  0x85   :  { %310 = vmatpush1.bf16.msra.mxu0 %v4298_v21  ;;  %v5027_v21 = vld [vmem:[#allocation13 + $0x34] sm:$0xf] }
  0x86   :  { %4058 = vmatprep.subr.bf16.mxu0 %v6126_v3  ;;  %6223 = vst [vmem:[#allocation32_spill] sm:$0xff] %v5027_v21 }
  0x87   :  { %4053 = vmatpush3.bf16.msra.mxu1 %v4315_v29 }
  0x88   :  { %328 = vmatmul.mubr.bf16.vlgmr.msra.gmra.mrb[0].mxu0 %v4299_v23 }
  0x89   :  { %4059 = vmatpush3.bf16.msra.mxu0 %v4300_v24  ;;  %4074 = vmatprep.mubr.msk.bf16.mxu0 %vm4768_vm0, %v6126_v3  ;;  %v5034_v24 = vsub.s32 0, %v4931_v36 }
  0x8a   :  { %4060 = vmatprep.subr.bf16.mxu0 %v6126_v3  ;;  %4055 = vmatmul.mubr.bf16.vlgmr.msra.gmra.mrb[0].mxu1 %v4299_v23 }
  0x8b   :  { %6226 = vst [vmem:[#allocation35_spill] sm:$0xff] %v5034_v24  ;;  %v149_v27 = vrot.slane %v144_v25, %v5034_v24 }
  0x8d   :  { %4061 = vmatpush3.bf16.msra.mxu0 %v4301_v26  ;;  %v152_v26 = vsub.s32 1, %v4931_v36 }
  0x8e   :  { %4062 = vmatprep.subr.bf16.mxu0 %v6126_v3 }
  0x91   :  { %4063 = vmatpush3.bf16.msra.mxu0 %v4303_v28  ;;  %v153_v28 = vrot.slane %v144_v25, %v152_v26 }
  0x92   :  { %4064 = vmatprep.subr.bf16.mxu0 %v6126_v3 }
  0x95   :  { %4065 = vmatpush3.bf16.msra.mxu0 %v4305_v30 }
  0x96   :  { %4066 = vmatprep.subr.bf16.mxu0 %v6126_v3 }
  0x99   :  { %4067 = vmatpush3.bf16.msra.mxu0 %v4307_v31 }
  0x9a   :  { %4068 = vmatprep.subr.bf16.mxu0 %v6126_v3 }
  0x9d   :  { %4069 = vmatpush3.bf16.msra.mxu0 %v4309_v32 }
  0x9e   :  { %4070 = vmatprep.subr.bf16.mxu0 %v6126_v3 }
  0xa1   :  { %4071 = vmatpush3.bf16.msra.mxu0 %v4311_v33 }
  0xa2   :  { %4072 = vmatprep.subr.bf16.mxu0 %v6126_v3 }
  0xa5   :  { %4073 = vmatpush3.bf16.msra.mxu0 %v4313_v34 }
  0xa8   :  { %4075 = vmatmul.mubr.bf16.vlgmr.msra.gmra.mrb[4].mxu0 %v4299_v23  ;;  %v5031_v23 = vld [vmem:[#allocation13 + $0x3c] sm:$0xf] }
  0xa9   :  { %6225 = vst [vmem:[#allocation34_spill] sm:$0xff] %v5031_v23 }
 0x15b   :  { %v329_v29 = vpop.f32.mrb[0].mxu0 }
 0x15c   :  { %v5041_v30 = vadd.f32 %v329_v29, %v149_v27  ;;  %v331_v31 = vpop.f32.mrb[1].mxu0 }
 0x15d   :  { %v5043_v32 = vadd.f32 %v331_v31, %v153_v28  ;;  %v333_v33 = vpop.f32.mrb[2].mxu0  ;;  %v372_v22 = vpop.f32.mrb[0].mxu1 }
 0x15e   :  { %6227 = vst [vmem:[#allocation36_spill] sm:$0xff] %v5041_v30  ;;  %v5045_v34 = vadd.f32 %v333_v33, %v149_v27  ;;  %v335_v2 = vpop.f32.mrb[3].mxu0  ;;  %v5050_v23 = vadd.f32 %v372_v22, %v157_v37  ;;  %v4056_v24 = vpop.f32.mrb[1].mxu1  ;;  %v4769_v30 = vmov 1966171168  }
 0x15f   :  { %6228 = vst [vmem:[#allocation37_spill] sm:$0xff] %v5043_v32  ;;  %v5047_v3 = vadd.f32 %v335_v2, %v153_v28  ;;  %v375_v26 = vpop.f32.mrb[2].mxu1  ;;  %v495_v31 = vunpack.c.l.s4 %v4769_v30  ;;  %v3696_v27 = vld [vmem:[%s6123_s7] ss:$0 sm:$0xff]  ;;  %s5090_s7 = smov 0  }
 0x160   :  { %6229 = vst [vmem:[#allocation38_spill] sm:$0xff] %v5045_v34  ;;  %6231 = vst [vmem:[#allocation40_spill] sm:$0xff] %v5050_v23  ;;  %v5052_v20 = vadd.f32 %v375_v26, %v157_v37  ;;  %v4057_v29 = vpop.f32.mrb[3].mxu1 }
 0x161   :  { %6230 = vst [vmem:[#allocation39_spill] sm:$0xff] %v5047_v3  ;;  %v496_v32 = vunpack.c.0.s8 %v495_v31 }
 0x162   :  { %6232 = vst [vmem:[#allocation41_spill] sm:$0xff] %v5052_v20 }
 0x163   :  { %v499_v2 = vsub.s32 %v496_v32, %v4931_v36 }
 0x17b   :  { %v484_v28 = vpop.f32.mrb[4].mxu0 }
 0x17c   :  { %v485_v33 = vadd.f32 %v3696_v27, %v484_v28  ;;  %v4076_v35 = vpop.f32.mrb[5].mxu0 }
 0x17d   :  { %v487_v25 = vpop.f32.mrb[6].mxu0 }
 0x17e   :  { %v493_v22 = vcombine.high %v485_v33, %v485_v33  ;;  %v500_v3 = vrot.slane %v485_v33, %v499_v2  ;;  %v488_v24 = vadd.f32 %v3696_v27, %v487_v25  ;;  %v4077_v23 = vpop.f32.mrb[7].mxu0 }
 0x180   :  { %v507_v37 = vrot.slane %v493_v22, %v499_v2  ;;  %v508_v26 = vcombine.high %v500_v3, %v500_v3  ;;  %v5058_v29 = vrot.slane %v500_v3, %v499_v2  ;;  %v542_v30 = vcombine.high %v488_v24, %v488_v24 }
 0x181   :  { %v549_v31 = vrot.slane %v488_v24, %v499_v2 }
 0x182   :  { %6233 = vst [vmem:[#allocation42_spill] sm:$0xff] %v5058_v29  ;;  %v509_v20 = vcombine.high %v507_v37, %v507_v37  ;;  %v5060_v34 = vrot.slane %v507_v37, %v499_v2  ;;  %v5062_v21 = vrot.slane %v508_v26, %v499_v2  ;;  %v556_v32 = vrot.slane %v542_v30, %v499_v2 }
 0x183   :  { %v557_v28 = vcombine.high %v549_v31, %v549_v31  ;;  %v5066_v35 = vrot.slane %v549_v31, %v499_v2 }
 0x184   :  { %6234 = vst [vmem:[#allocation43_spill] sm:$0xff] %v5060_v34  ;;  %6235 = vst [vmem:[#allocation44_spill] sm:$0xff] %v5062_v21  ;;  %v5068_v27 = vrot.slane %v509_v20, %v499_v2  ;;  %v558_v33 = vcombine.high %v556_v32, %v556_v32  ;;  %v5074_v25 = vrot.slane %v556_v32, %v499_v2 }
 0x185   :  { %6236 = vst [vmem:[#allocation45_spill] sm:$0xff] %v5066_v35  ;;  %v5076_v22 = vrot.slane %v557_v28, %v499_v2 }
 0x186   :  { %6237 = vst [vmem:[#allocation46_spill] sm:$0xff] %v5068_v27  ;;  %6238 = vst [vmem:[#allocation47_spill] sm:$0xff] %v5074_v25  ;;  %v5082_v26 = vrot.slane %v558_v33, %v499_v2 }
 0x187   :  { %6239 = vst [vmem:[#allocation48_spill] sm:$0xff] %v5076_v22 }
 0x188   :  { %6240 = vst [vmem:[#allocation49_spill] sm:$0xff] %v5082_v26 }
 0x189 LB: > { %s5096_s28 = sshll.u32 %s4746_s7, 3  ;;  %v6241_v2 = vlaneseq  ;;  %v6242_v32 = vmov 0  ;;  %s657_s7 = sadd.s32 1, %s4746_s7   ;;  %s4746_s7 = sphi %s5090_s7, %s657_s7  }
 0x18a   : > { %s659_s24 = sld [smem:[#allocation3 + %s5096_s28]]  ;;  %s669_s12 = sshra.s32 %s5096_s28, 3 }
 0x18b   : > { %s3898_s13 = sshll.u32 %s669_s12, 4  ;;  %s680_s14 = sadd.s32 1, %s5096_s28  ;;  %vm5103_vm2 = vcmp.lt.s32.totalorder %v6241_v2, 256 }
 0x18c   : > { %s681_s17 = sld [smem:[#allocation3 + %s680_s14]]  ;;  %s691_s18 = sshra.s32 %s680_s14, 3  ;;  %v6243_v32 = vsel %vm5103_vm2, 4294967295, %v6242_v32 }
 0x18d   : > { %s694_s19 = sand.u32 7, %s680_s14  ;;  %s3900_s21 = sshll.u32 %s691_s18, 4  ;;  %6244 = vst [vmem:[#allocation50_spill] sm:$0xff] %v6243_v32 }
 0x18e   : > { %s701_s22 = sadd.s32 2, %s5096_s28  ;;  %s697_s5 = sadd.s32 %s3900_s21, %s694_s19 }
 0x18f   : > { %s702_s1 = sld [smem:[#allocation3 + %s701_s22]]  ;;  %s712_s10 = sshra.s32 %s701_s22, 3 }
 0x190   : > { %s660_s20 = sshra.s32 %s659_s24, 3  ;;  %s663_s23 = sand.u32 7, %s659_s24 }
 0x191   : > { %s3897_s25 = sshll.u32 %s660_s20, 4  ;;  %s673_s0 = scalar_lea.vmem [#allocation2], %s3898_s13 }
 0x192   : > { %s666_s26 = sadd.s32 %s3897_s25, %s663_s23  ;;  %s682_s27 = sshra.s32 %s681_s17, 3 }
 0x193   : > { %s685_s29 = sand.u32 7, %s681_s17  ;;  %s667_s30 = scalar_lea.vmem [#allocation14], %s666_s26 }
 0x194   : > { %v668_v28 = vld [vmem:[%s667_s30] ss:$8 sm:$0x3]  ;;  %s3899_s9 = sshll.u32 %s682_s27, 4  ;;  %s715_s4 = sand.u32 7, %s701_s22 }
 0x195   : > { %678 = vst.msk [vmem:[%s673_s0] ss:$8 sm:$0x3] %vm5103_vm2, %v668_v28  ;;  %s688_s11 = sadd.s32 %s3899_s9, %s685_s29  ;;  %s703_s3 = sshra.s32 %s702_s1, 3 }
 0x196   : > { %s706_s15 = sand.u32 7, %s702_s1  ;;  %s689_s6 = scalar_lea.vmem [#allocation14], %s688_s11 }
 0x197   : > { %v690_v33 = vld [vmem:[%s689_s6] ss:$8 sm:$0x3]  ;;  %s3901_s16 = sshll.u32 %s703_s3, 4  ;;  %s698_s2 = scalar_lea.vmem [#allocation2], %s697_s5 }
 0x198   : > { %699 = vst.msk [vmem:[%s698_s2] ss:$8 sm:$0x3] %vm5103_vm2, %v690_v33  ;;  %s709_s24 = sadd.s32 %s3901_s16, %s706_s15  ;;  %s3902_s12 = sshll.u32 %s712_s10, 4 }
 0x199   : > { %s718_s14 = sadd.s32 %s3902_s12, %s715_s4  ;;  %s710_s13 = scalar_lea.vmem [#allocation14], %s709_s24 }
 0x19a   : > { %v711_v2 = vld [vmem:[%s710_s13] ss:$8 sm:$0x3]  ;;  %s722_s17 = sadd.s32 3, %s5096_s28  ;;  %s719_s18 = scalar_lea.vmem [#allocation2], %s718_s14 }
 0x19b   : > { %720 = vst.msk [vmem:[%s719_s18] ss:$8 sm:$0x3] %vm5103_vm2, %v711_v2  ;;  %s723_s19 = sld [smem:[#allocation3 + %s722_s17]]  ;;  %s733_s21 = sshra.s32 %s722_s17, 3 }
 0x19c   : > { %s736_s1 = sand.u32 7, %s722_s17  ;;  %s3904_s22 = sshll.u32 %s733_s21, 4 }
 0x19d   : > { %s739_s20 = sadd.s32 %s3904_s22, %s736_s1  ;;  %s743_s5 = sadd.s32 4, %s5096_s28 }
 0x19e   : > { %s744_s23 = sld [smem:[#allocation3 + %s743_s5]]  ;;  %s754_s25 = sshra.s32 %s743_s5, 3 }
 0x19f   : > { %s757_s26 = sand.u32 7, %s743_s5  ;;  %s3906_s27 = sshll.u32 %s754_s25, 4 }
 0x1a0   : > { %s764_s29 = sadd.s32 5, %s5096_s28  ;;  %s760_s0 = sadd.s32 %s3906_s27, %s757_s26 }
 0x1a1   : > { %s724_s30 = sshra.s32 %s723_s19, 3  ;;  %s727_s9 = sand.u32 7, %s723_s19 }
 0x1a2   : > { %s3903_s10 = sshll.u32 %s724_s30, 4  ;;  %s740_s4 = scalar_lea.vmem [#allocation2], %s739_s20 }
 0x1a3   : > { %s730_s11 = sadd.s32 %s3903_s10, %s727_s9  ;;  %s765_s24 = sld [smem:[#allocation3 + %s764_s29]] }
 0x1a4   : > { %s745_s3 = sshra.s32 %s744_s23, 3  ;;  %s731_s15 = scalar_lea.vmem [#allocation14], %s730_s11 }
 0x1a5   : > { %v732_v28 = vld [vmem:[%s731_s15] ss:$8 sm:$0x3]  ;;  %s748_s6 = sand.u32 7, %s744_s23  ;;  %s3905_s16 = sshll.u32 %s745_s3, 4 }
 0x1a6   : > { %741 = vst.msk [vmem:[%s740_s4] ss:$8 sm:$0x3] %vm5103_vm2, %v732_v28  ;;  %s751_s2 = sadd.s32 %s3905_s16, %s748_s6  ;;  %s775_s12 = sshra.s32 %s764_s29, 3 }
 0x1a7   : > { %s752_s14 = scalar_lea.vmem [#allocation14], %s751_s2  ;;  %s778_s13 = sand.u32 7, %s764_s29 }
 0x1a8   : > { %v753_v33 = vld [vmem:[%s752_s14] ss:$8 sm:$0x3]  ;;  %s3908_s17 = sshll.u32 %s775_s12, 4  ;;  %s761_s18 = scalar_lea.vmem [#allocation2], %s760_s0 }
 0x1a9   : > { %762 = vst.msk [vmem:[%s761_s18] ss:$8 sm:$0x3] %vm5103_vm2, %v753_v33  ;;  %s781_s19 = sadd.s32 %s3908_s17, %s778_s13  ;;  %s785_s21 = sadd.s32 6, %s5096_s28 }
 0x1aa   : > { %s786_s1 = sld [smem:[#allocation3 + %s785_s21]]  ;;  %s796_s22 = sshra.s32 %s785_s21, 3 }
 0x1ab   : > { %s799_s20 = sand.u32 7, %s785_s21  ;;  %s766_s5 = sshra.s32 %s765_s24, 3 }
 0x1ac   : > { %s769_s23 = sand.u32 7, %s765_s24  ;;  %s3907_s25 = sshll.u32 %s766_s5, 4 }
 0x1ad   : > { %s3910_s26 = sshll.u32 %s796_s22, 4  ;;  %s772_s27 = sadd.s32 %s3907_s25, %s769_s23 }
 0x1ae   : > { %s802_s30 = sadd.s32 %s3910_s26, %s799_s20  ;;  %s773_s9 = scalar_lea.vmem [#allocation14], %s772_s27 }
 0x1af   : > { %v774_v2 = vld [vmem:[%s773_s9] ss:$8 sm:$0x3]  ;;  %s782_s0 = scalar_lea.vmem [#allocation2], %s781_s19  ;;  %s806_s3 = sadd.s32 7, %s5096_s28 }
 0x1b0   : > { %s787_s29 = sshra.s32 %s786_s1, 3  ;;  %s790_s10 = sand.u32 7, %s786_s1  ;;  %783 = vst.msk [vmem:[%s782_s0] ss:$8 sm:$0x3] %vm5103_vm2, %v774_v2 }
 0x1b1   : > { %s3909_s11 = sshll.u32 %s787_s29, 4  ;;  %s807_s6 = sld [smem:[#allocation3 + %s806_s3]] }
 0x1b2   : > { %s793_s15 = sadd.s32 %s3909_s11, %s790_s10  ;;  %s817_s16 = sshra.s32 %s806_s3, 3 }
 0x1b3   : > { %s794_s4 = scalar_lea.vmem [#allocation14], %s793_s15  ;;  %s820_s2 = sand.u32 7, %s806_s3 }
 0x1b4   : > { %v795_v28 = vld [vmem:[%s794_s4] ss:$8 sm:$0x3]  ;;  %s3912_s24 = sshll.u32 %s817_s16, 4  ;;  %s803_s12 = scalar_lea.vmem [#allocation2], %s802_s30 }
 0x1b5   : > { %804 = vst.msk [vmem:[%s803_s12] ss:$8 sm:$0x3] %vm5103_vm2, %v795_v28  ;;  %s823_s14 = sadd.s32 %s3912_s24, %s820_s2  ;;  %p654_p1 = scmp.ge.s32.totalorder %s657_s7, 16  }
 0x1b6   : > { %s824_s1 = scalar_lea.vmem [#allocation2], %s823_s14  ;;  %v5133_v2 = vcombine.high (%p654_p1), %v4937_v38, %v4941_v40  ;;  %v5137_v28 = vcombine.low (%p654_p1), %v4937_v38, %v4941_v40  ;;  %v5141_v31 = vcombine.high (%p654_p1), %v4945_v42, %v4949_v44  ;;  %v6248_v20 = vmov (%p654_p1), 0.0   ;;  %s5569_s7 = smov (%p654_p1), 0  }
 0x1b7   : > { %s808_s13 = sshra.s32 %s807_s6, 3  ;;  %s811_s17 = sand.u32 7, %s807_s6  ;;  %4078 = vmatprep.subr.bf16.mxu0 (%p654_p1), %v6248_v20  ;;  %v5150_v30 = vcombine.high (%p654_p1), %v4953_v46, %v4957_v48  ;;  %v6251_v24 = vmov (%p654_p1), 0   ;;  %v5158_v38 = vcombine.low (%p654_p1), %v4953_v46, %v4957_v48  ;;  %v5162_v40 = vcombine.high (%p654_p1), %v4961_v50, %v4965_v52  ;;  %4094 = vmatprep.mubr.msk.bf16.mxu0 (%p654_p1), %vm4768_vm0, %v6248_v20 }
 0x1b8   : > { %s3911_s18 = sshll.u32 %s808_s13, 4  ;;  %656 = sbr.rel (!%p654_p1) target bundleno = 393 (0x189), region = 145  ;;  %6245 = vst [vmem:[#allocation51_spill] sm:$0xff] (%p654_p1), %v5133_v2  ;;  %6246 = vst [vmem:[#allocation52_spill] sm:$0xff] (%p654_p1), %v5137_v28  ;;  %1186 = vmatprep.mubr.bf16.mxu1 (%p654_p1), %v6251_v24  ;;  %1154 = vmatprep.subr.bf16.mxu1 (%p654_p1), %v5133_v2  ;;  %v5181_v46 = vcombine.high (%p654_p1), %v4969_v54, %v4973_v56  ;;  %v5185_v48 = vcombine.low (%p654_p1), %v4969_v54, %v4973_v56  ;;  %vm1003_vm3 = vcmask (%p654_p1), 1041409   ;;  %vm1005_vm4 = vcmask (%p654_p1), 1042434  }
 0x1b9   : > { %s814_s19 = sadd.s32 %s3911_s18, %s811_s17  ;;  %6247 = vst [vmem:[#allocation53_spill] sm:$0xff] (%p654_p1), %v5141_v31  ;;  %6250 = vst [vmem:[#allocation55_spill] sm:$0xff] (%p654_p1), %v5150_v30  ;;  %1155 = vmatpush1.bf16.msra.mxu1 (%p654_p1), %v5137_v28  ;;  %v5205_v54 = vcombine.low (%p654_p1), %v4977_v58, %v4981_v60  ;;  %v5209_v56 = vcombine.high (%p654_p1), %v4985_v62, %v4989_v0  ;;  %vm1007_vm5 = vcmask (%p654_p1), 1043459   ;;  %vm1009_vm6 = vcmask (%p654_p1), 1044484  }
 0x1ba   : > { %s815_s21 = scalar_lea.vmem [#allocation14], %s814_s19  ;;  %6252 = vst [vmem:[#allocation56_spill] sm:$0xff] (%p654_p1), %v5158_v38  ;;  %6253 = vst [vmem:[#allocation57_spill] sm:$0xff] (%p654_p1), %v5162_v40  ;;  %1156 = vmatprep.subr.bf16.mxu1 (%p654_p1), %v5141_v31  ;;  %v5221_v31 = vcombine.low (%p654_p1), %v4963_v51, %v4967_v53  ;;  %vm1011_vm7 = vcmask (%p654_p1), 1045509   ;;  %vm1013_vm8 = vcmask (%p654_p1), 1046534   ;;  %vm1015_vm9 = vcmask (%p654_p1), 1047559  }
 0x1bb   : > { %v816_v33 = vld [vmem:[%s815_s21] ss:$8 sm:$0x3]  ;;  %6258 = vst [vmem:[#allocation62_spill] sm:$0xff] (%p654_p1), %v5181_v46  ;;  %6259 = vst [vmem:[#allocation63_spill] sm:$0xff] (%p654_p1), %v5185_v48 }
 0x1bc   : > { %825 = vst.msk [vmem:[%s824_s1] ss:$8 sm:$0x3] %vm5103_vm2, %v816_v33  ;;  %v5146_v33 = vcombine.low (%p654_p1), %v4945_v42, %v4949_v44  ;;  %v5166_v42 = vcombine.low (%p654_p1), %v4961_v50, %v4965_v52  ;;  %v5170_v44 = vcombine.low (%p654_p1), %v4939_v39, %v4943_v41  ;;  %v5189_v39 = vcombine.high (%p654_p1), %v4977_v58, %v4981_v60 }
 0x1bd   :  { %v5193_v41 = vcombine.low (%p654_p1), %v4947_v43, %v4951_v45  ;;  %v5213_v43 = vcombine.low (%p654_p1), %v4955_v47, %v4959_v49  ;;  %6267 = vst [vmem:[#allocation71_spill] sm:$0xff] (%p654_p1), %v5221_v31 }
 0x1be   :  { %6249 = vst [vmem:[#allocation54_spill] sm:$0xff] (%p654_p1), %v5146_v33  ;;  %6254 = vst [vmem:[#allocation58_spill] sm:$0xff] (%p654_p1), %v5166_v42  ;;  %4079 = vmatpush3.bf16.msra.mxu0 (%p654_p1), %v5170_v44  ;;  %1157 = vmatpush1.bf16.msra.mxu1 (%p654_p1), %v5146_v33 }
 0x1bf   :  { %6255 = vst [vmem:[#allocation59_spill] sm:$0xff] %v5170_v44  ;;  %6260 = vst [vmem:[#allocation64_spill] sm:$0xff] %v5189_v39  ;;  %4080 = vmatprep.subr.bf16.mxu0 %v6248_v20  ;;  %1158 = vmatprep.subr.bf16.mxu1 %v5150_v30 }
 0x1c0   :  { %6261 = vst [vmem:[#allocation65_spill] sm:$0xff] %v5193_v41  ;;  %6265 = vst [vmem:[#allocation69_spill] sm:$0xff] %v5213_v43 }
 0x1c2   :  { %4081 = vmatpush3.bf16.msra.mxu0 %v5193_v41  ;;  %1159 = vmatpush1.bf16.msra.mxu1 %v5158_v38 }
 0x1c3   :  { %v5153_v37 = vld [vmem:[#allocation2] sm:$0xff]  ;;  %v5172_v24 = vld [vmem:[#allocation2 + $0x10] sm:$0xff]  ;;  %4082 = vmatprep.subr.bf16.mxu0 %v6248_v20  ;;  %1160 = vmatprep.subr.bf16.mxu1 %v5162_v40 }
 0x1c4   :  { %v5174_v3 = vld [vmem:[#allocation2 + $0x20] sm:$0xff]  ;;  %v5176_v23 = vld [vmem:[#allocation2 + $0x30] sm:$0xff]  ;;  %v859_v28 = vrot.slane %v5153_v37, 4  ;;  %v865_v58 = vrot.slane %v5172_v24, 4 }
 0x1c5   :  { %6256 = vst [vmem:[#allocation60_spill] sm:$0xff] %v5174_v3  ;;  %6257 = vst [vmem:[#allocation61_spill] sm:$0xff] %v5176_v23  ;;  %v5195_v50 = vld [vmem:[#allocation2 + $0x40] sm:$0xff]  ;;  %v5197_v52 = vld [vmem:[#allocation2 + $0x50] sm:$0xff]  ;;  %v871_v60 = vrot.slane %v5174_v3, 4  ;;  %v877_v44 = vrot.slane %v5176_v23, 4 }
 0x1c6   :  { %6262 = vst [vmem:[#allocation66_spill] sm:$0xff] %v5195_v50  ;;  %6263 = vst [vmem:[#allocation67_spill] sm:$0xff] %v5197_v52  ;;  %v5199_v36 = vld [vmem:[#allocation2 + $0x60] sm:$0xff]  ;;  %v5215_v45 = vld [vmem:[#allocation2 + $0x70] sm:$0xff]  ;;  %v860_v47 = vadd.f32 %v859_v28, %v5153_v37  ;;  %v883_v49 = vrot.slane %v5195_v50, 4  ;;  %v889_v2 = vrot.slane %v5197_v52, 4  ;;  %v866_v51 = vadd.f32 %v865_v58, %v5172_v24  ;;  %4083 = vmatpush3.bf16.msra.mxu0 %v5213_v43 }
 0x1c7   :  { %6264 = vst [vmem:[#allocation68_spill] sm:$0xff] %v5199_v36  ;;  %6266 = vst [vmem:[#allocation70_spill] sm:$0xff] %v5215_v45  ;;  %v895_v32 = vrot.slane %v5199_v36, 4  ;;  %v872_v53 = vadd.f32 %v871_v60, %v5174_v3  ;;  %v878_v26 = vadd.f32 %v877_v44, %v5176_v23  ;;  %v901_v25 = vrot.slane %v5215_v45, 4  ;;  %4084 = vmatprep.subr.bf16.mxu0 %v6248_v20 }
 0x1c8   :  { %v861_v28 = vrot.slane %v860_v47, 2  ;;  %v884_v22 = vadd.f32 %v883_v49, %v5195_v50  ;;  %v890_v35 = vadd.f32 %v889_v2, %v5197_v52  ;;  %v867_v58 = vrot.slane %v866_v51, 2  ;;  %1161 = vmatpush1.bf16.msra.mxu1 %v5166_v42 }
 0x1c9   :  { %v896_v27 = vadd.f32 %v895_v32, %v5199_v36  ;;  %v873_v33 = vrot.slane %v872_v53, 2  ;;  %v879_v60 = vrot.slane %v878_v26, 2  ;;  %v902_v44 = vadd.f32 %v901_v25, %v5215_v45  ;;  %v5252_v25 = vld [vmem:[#allocation2 + $0x80] sm:$0xff]  ;;  %1162 = vmatprep.subr.bf16.mxu1 %v5181_v46 }
 0x1ca   :  { %v862_v34 = vadd.f32 %v861_v28, %v860_v47  ;;  %v885_v21 = vrot.slane %v884_v22, 2  ;;  %v891_v29 = vrot.slane %v890_v35, 2  ;;  %v868_v41 = vadd.f32 %v867_v58, %v866_v51  ;;  %4085 = vmatpush3.bf16.msra.mxu0 %v5221_v31 }
 0x1cb   :  { %v897_v30 = vrot.slane %v896_v27, 2  ;;  %v874_v23 = vadd.f32 %v873_v33, %v872_v53  ;;  %v880_v49 = vadd.f32 %v879_v60, %v878_v26  ;;  %v903_v50 = vrot.slane %v902_v44, 2  ;;  %v5289_v60 = vld [vmem:[#allocation2 + $0xf0] sm:$0xff]  ;;  %4086 = vmatprep.subr.bf16.mxu0 %v6248_v20 }
 0x1cc   :  { %v863_v32 = vrot.slane %v862_v34, 1  ;;  %v886_v2 = vadd.f32 %v885_v21, %v884_v22  ;;  %v5247_v36 = vadd.f32 %v891_v29, %v890_v35  ;;  %v869_v47 = vrot.slane %v868_v41, 1  ;;  %v5268_v35 = vld [vmem:[#allocation2 + $0x90] sm:$0xff]  ;;  %6270 = vst [vmem:[#allocation74_spill] sm:$0xff] %v5289_v60  ;;  %1163 = vmatpush1.bf16.msra.mxu1 %v5185_v48 }
 0x1cd   :  { %v5249_v52 = vadd.f32 %v897_v30, %v896_v27  ;;  %v875_v28 = vrot.slane %v874_v23, 1  ;;  %v881_v51 = vrot.slane %v880_v49, 1  ;;  %v5254_v33 = vadd.f32 %v903_v50, %v902_v44  ;;  %v5270_v27 = vld [vmem:[#allocation2 + $0xa0] sm:$0xff]  ;;  %v5272_v22 = vld [vmem:[#allocation2 + $0xb0] sm:$0xff]  ;;  %1164 = vmatprep.subr.bf16.mxu1 %v5189_v39 }
 0x1ce   :  { %v5258_v26 = vcombine.low %v4985_v62, %v4989_v0  ;;  %v5262_v21 = vcombine.high %v4993_v4, %v4997_v6  ;;  %v5266_v29 = vcombine.low %v4993_v4, %v4997_v6  ;;  %v887_v30 = vrot.slane %v886_v2, 1  ;;  %v5275_v50 = vld [vmem:[#allocation2 + $0xc0] sm:$0xff]  ;;  %v5277_v62 = vld [vmem:[#allocation2 + $0xd0] sm:$0xff] }
 0x1cf   :  { %6268 = vst [vmem:[#allocation72_spill] sm:$0xff] %v5277_v62  ;;  %v5279_v0 = vld [vmem:[#allocation2 + $0xe0] sm:$0xff]  ;;  %v5281_v53 = vadd.f32 %v863_v32, %v862_v34  ;;  %v5283_v58 = vadd.f32 %v869_v47, %v868_v41  ;;  %v893_v4 = vrot.slane %v5247_v36, 1  ;;  %v899_v6 = vrot.slane %v5249_v52, 1 }
 0x1d0   :  { %6269 = vst [vmem:[#allocation73_spill] sm:$0xff] %v5279_v0  ;;  %v5291_v44 = vadd.f32 %v875_v28, %v874_v23  ;;  %v5293_v42 = vadd.f32 %v881_v51, %v880_v49  ;;  %v905_v40 = vrot.slane %v5254_v33, 1  ;;  %v907_v34 = vrot.slane %v5252_v25, 4  ;;  %1165 = vmatpush1.bf16.msra.mxu1 %v5205_v54 }
 0x1d1   :  { %v5298_v41 = vadd.f32 %v887_v30, %v886_v2  ;;  %v913_v32 = vrot.slane %v5268_v35, 4  ;;  %v919_v47 = vrot.slane %v5270_v27, 4  ;;  %v925_v46 = vrot.slane %v5272_v22, 4  ;;  %1166 = vmatprep.subr.bf16.mxu1 %v5209_v56 }
 0x1d2   :  { %v908_v31 = vadd.f32 %v907_v34, %v5252_v25  ;;  %v931_v23 = vrot.slane %v5275_v50, 4  ;;  %v937_v49 = vrot.slane %v5277_v62, 4  ;;  %v943_v28 = vrot.slane %v5279_v0, 4 }
 0x1d3   :  { %v914_v51 = vadd.f32 %v913_v32, %v5268_v35  ;;  %v920_v2 = vadd.f32 %v919_v47, %v5270_v27  ;;  %v926_v30 = vadd.f32 %v925_v46, %v5272_v22  ;;  %v949_v43 = vrot.slane %v5289_v60, 4 }
 0x1d4   :  { %v909_v38 = vrot.slane %v908_v31, 2  ;;  %v932_v34 = vadd.f32 %v931_v23, %v5275_v50  ;;  %v938_v45 = vadd.f32 %v937_v49, %v5277_v62  ;;  %v944_v3 = vadd.f32 %v943_v28, %v5279_v0  ;;  %1167 = vmatpush1.bf16.msra.mxu1 %v5258_v26 }
 0x1d5   :  { %v915_v18 = vrot.slane %v914_v51, 2  ;;  %v921_v19 = vrot.slane %v920_v2, 2  ;;  %v927_v48 = vrot.slane %v926_v30, 2  ;;  %v950_v32 = vadd.f32 %v949_v43, %v5289_v60  ;;  %1168 = vmatprep.subr.bf16.mxu1 %v5262_v21 }
 0x1d6   :  { %v910_v16 = vadd.f32 %v909_v38, %v908_v31  ;;  %v933_v47 = vrot.slane %v932_v34, 2  ;;  %v939_v17 = vrot.slane %v938_v45, 2  ;;  %v945_v46 = vrot.slane %v944_v3, 2 }
 0x1d7   :  { %v916_v14 = vadd.f32 %v915_v18, %v914_v51  ;;  %v922_v39 = vadd.f32 %v921_v19, %v920_v2  ;;  %v928_v15 = vadd.f32 %v927_v48, %v926_v30  ;;  %v951_v12 = vrot.slane %v950_v32, 2 }
 0x1d8   :  { %v911_v23 = vrot.slane %v910_v16, 1  ;;  %v934_v49 = vadd.f32 %v933_v47, %v932_v34  ;;  %v940_v28 = vadd.f32 %v939_v17, %v938_v45  ;;  %v946_v13 = vadd.f32 %v945_v46, %v944_v3  ;;  %1169 = vmatpush1.bf16.msra.mxu1 %v5266_v29 }
 0x1d9   :  { %v917_v5 = vrot.slane %v916_v14, 1  ;;  %v923_v7 = vrot.slane %v922_v39, 1  ;;  %v929_v0 = vrot.slane %v928_v15, 1  ;;  %v952_v43 = vadd.f32 %v951_v12, %v950_v32 }
 0x1da   :  { %v894_v31 = vadd.f32 %v893_v4, %v5247_v36  ;;  %v935_v38 = vrot.slane %v934_v49, 1  ;;  %v941_v60 = vrot.slane %v940_v28, 1  ;;  %v947_v62 = vrot.slane %v946_v13, 1 }
 0x1db   :  { %v900_v18 = vadd.f32 %v899_v6, %v5249_v52  ;;  %v912_v19 = vadd.f32 %v911_v23, %v910_v16  ;;  %v918_v48 = vadd.f32 %v917_v5, %v916_v14  ;;  %v953_v51 = vrot.slane %v952_v43, 1 }
 0x1dc   :  { %v906_v17 = vadd.f32 %v905_v40, %v5254_v33  ;;  %v924_v3 = vadd.f32 %v923_v7, %v922_v39  ;;  %v930_v45 = vadd.f32 %v929_v0, %v928_v15  ;;  %v936_v2 = vadd.f32 %v935_v38, %v934_v49 }
 0x1dd   :  { %v942_v12 = vadd.f32 %v941_v60, %v940_v28  ;;  %v948_v30 = vadd.f32 %v947_v62, %v946_v13  ;;  %v954_v36 = vadd.f32 %v953_v51, %v952_v43  ;;  %v955_v4 = vpack.c.bf16 %v5281_v53, %v5281_v53 }
 0x1de   :  { %v956_v34 = vpack.c.bf16 %v5283_v58, %v5283_v58  ;;  %v957_v5 = vpack.c.bf16 %v5291_v44, %v5291_v44  ;;  %v958_v14 = vpack.c.bf16 %v5293_v42, %v5293_v42  ;;  %v959_v7 = vpack.c.bf16 %v5298_v41, %v5298_v41 }
 0x1df   :  { %v960_v15 = vpack.c.bf16 %v894_v31, %v894_v31  ;;  %v961_v13 = vpack.c.bf16 %v900_v18, %v900_v18  ;;  %v963_v16 = vpack.c.bf16 %v912_v19, %v912_v19  ;;  %v964_v40 = vpack.c.bf16 %v918_v48, %v918_v48 }
 0x1e0   :  { %v962_v39 = vpack.c.bf16 %v906_v17, %v906_v17  ;;  %v965_v52 = vpack.c.bf16 %v924_v3, %v924_v3  ;;  %v966_v33 = vpack.c.bf16 %v930_v45, %v930_v45  ;;  %v967_v62 = vpack.c.bf16 %v936_v2, %v936_v2 }
 0x1e1   :  { %v968_v0 = vpack.c.bf16 %v942_v12, %v942_v12  ;;  %v969_v53 = vpack.c.bf16 %v948_v30, %v948_v30  ;;  %v970_v58 = vpack.c.bf16 %v954_v36, %v954_v36  ;;  %v987_v6 = vunpack.c.l.b16 %v955_v4 }
 0x1e2   :  { %v988_v60 = vunpack.c.l.b16 %v956_v34  ;;  %v989_v44 = vunpack.c.l.b16 %v957_v5  ;;  %v990_v42 = vunpack.c.l.b16 %v958_v14  ;;  %v991_v32 = vunpack.c.l.b16 %v959_v7 }
 0x1e3   :  { %v992_v47 = vunpack.c.l.b16 %v960_v15  ;;  %v993_v41 = vunpack.c.l.b16 %v961_v13  ;;  %v995_v46 = vunpack.c.l.b16 %v963_v16  ;;  %v996_v23 = vunpack.c.l.b16 %v964_v40  ;;  %v6272_v40 = vld [vmem:[#allocation72_spill] sm:$0xff] }
 0x1e4   :  { %v994_v49 = vunpack.c.l.b16 %v962_v39  ;;  %v997_v28 = vunpack.c.l.b16 %v965_v52  ;;  %v998_v43 = vunpack.c.l.b16 %v966_v33  ;;  %v999_v31 = vunpack.c.l.b16 %v967_v62  ;;  %v6274_v39 = vld [vmem:[#allocation74_spill] sm:$0xff]  ;;  %v6281_v33 = vld [vmem:[#allocation28_spill] sm:$0xff]  ;;  %v6282_v62 = vld [vmem:[#allocation27_spill] sm:$0xff] }
 0x1e5   :  { %v1000_v38 = vunpack.c.l.b16 %v968_v0  ;;  %v1001_v18 = vunpack.c.l.b16 %v969_v53  ;;  %v1004_v19 = vsel %vm1003_vm3, %v988_v60, %v987_v6  ;;  %v1017_v51 = vsel %vm1003_vm3, %v996_v23, %v995_v46  ;;  %v6284_v53 = vld [vmem:[#allocation29_spill] sm:$0xff]  ;;  %v6285_v6 = vld [vmem:[#allocation32_spill] sm:$0xff]  ;;  %v6286_v60 = vld [vmem:[#allocation31_spill] sm:$0xff] }
 0x1e6   :  { %v1006_v48 = vsel %vm1005_vm4, %v989_v44, %v1004_v19  ;;  %v5340_v17 = vcombine.low %v4971_v55, %v4975_v57  ;;  %v5344_v3 = vcombine.low %v5001_v8, %v5003_v9  ;;  %v1002_v45 = vunpack.c.l.b16 %v970_v58  ;;  %v6291_v46 = vld [vmem:[#allocation61_spill] sm:$0xff] }
 0x1e7   :  { %v1008_v2 = vsel %vm1007_vm5, %v990_v42, %v1006_v48  ;;  %v1018_v12 = vsel %vm1005_vm4, %v997_v28, %v1017_v51  ;;  %v5354_v55 = vcombine.low %v4979_v59, %v4983_v61  ;;  %v5367_v59 = vcombine.low %v4987_v63, %v4991_v1  ;;  %v6273_v1 = vld [vmem:[#allocation73_spill] sm:$0xff]  ;;  %v6287_v42 = vld [vmem:[#allocation34_spill] sm:$0xff]  ;;  %v6293_v28 = vld [vmem:[#allocation67_spill] sm:$0xff] }
 0x1e8   :  { %6271 = vst [vmem:[#allocation75_spill] sm:$0xff] %v5340_v17  ;;  %v1010_v30 = vsel %vm1009_vm6, %v991_v32, %v1008_v2  ;;  %v1019_v36 = vsel %vm1007_vm5, %v998_v43, %v1018_v12  ;;  %4087 = vmatpush3.bf16.msra.mxu0 %v5340_v17  ;;  %4098 = vmatprep.subr.bf16.mxu1 %v5344_v3  ;;  %v6288_v32 = vld [vmem:[#allocation33_spill] sm:$0xff]  ;;  %v6296_v48 = vld [vmem:[#allocation36_spill] sm:$0xff] }
 0x1e9   :  { %v1012_v57 = vsel %vm1011_vm7, %v992_v47, %v1010_v30  ;;  %v1020_v8 = vsel %vm1009_vm6, %v999_v31, %v1019_v36  ;;  %4088 = vmatprep.subr.bf16.mxu0 %v6248_v20  ;;  %v5371_v7 = vcombine.low %v5005_v10, %v5007_v11  ;;  %v1274_v15 = vpack.c.bf16 %v5268_v35, %v5252_v25  ;;  %v6275_v10 = vld [vmem:[#allocation22_spill] sm:$0xff]  ;;  %v6276_v11 = vld [vmem:[#allocation21_spill] sm:$0xff]  ;;  %v6294_v31 = vld [vmem:[#allocation68_spill] sm:$0xff] }
 0x1ea   :  { %v1014_v9 = vsel %vm1013_vm8, %v993_v41, %v1012_v57  ;;  %v1021_v4 = vsel %vm1011_vm7, %v1000_v38, %v1020_v8  ;;  %v1270_v13 = vpack.c.bf16 %v5172_v24, %v5153_v37  ;;  %v1275_v16 = vpack.c.bf16 %v5272_v22, %v5270_v27  ;;  %v6277_v37 = vld [vmem:[#allocation24_spill] sm:$0xff]  ;;  %v6278_v24 = vld [vmem:[#allocation23_spill] sm:$0xff]  ;;  %v6279_v27 = vld [vmem:[#allocation26_spill] sm:$0xff] }
 0x1eb   :  { %v1016_v34 = vsel %vm1015_vm9, %v994_v49, %v1014_v9  ;;  %v1022_v5 = vsel %vm1013_vm8, %v1001_v18, %v1021_v4  ;;  %v1276_v63 = vpack.c.bf16 %v6272_v40, %v5275_v50  ;;  %v1277_v52 = vpack.c.bf16 %v6274_v39, %v6273_v1  ;;  %v6280_v22 = vld [vmem:[#allocation25_spill] sm:$0xff]  ;;  %v6290_v41 = vld [vmem:[#allocation60_spill] sm:$0xff]  ;;  %v6292_v49 = vld [vmem:[#allocation66_spill] sm:$0xff] }
 0x1ec   :  { %v1023_v14 = vsel %vm1015_vm9, %v1002_v45, %v1022_v5  ;;  %4089 = vmatpush3.bf16.msra.mxu0 %v5354_v55  ;;  %v5388_v25 = vcombine.low %v6276_v11, %v6275_v10  ;;  %v5393_v35 = vcombine.low %v6278_v24, %v6277_v37  ;;  %v5401_v50 = vcombine.low %v6280_v22, %v6279_v27  ;;  %v6295_v38 = vld [vmem:[#allocation70_spill] sm:$0xff]  ;;  %v6300_v37 = vld [vmem:[#allocation35_spill] sm:$0xff] }
 0x1ed   :  { %v1024_v61 = vpack.c.b16 %v1023_v14, %v1016_v34  ;;  %4090 = vmatprep.subr.bf16.mxu0 %v6248_v20  ;;  %v5407_v0 = vcombine.low %v6282_v62, %v6281_v33  ;;  %v5419_v44 = vcombine.low %v6286_v60, %v6285_v6  ;;  %v5425_v47 = vcombine.low %v6288_v32, %v6287_v42  ;;  %v6297_v30 = vld [vmem:[#allocation38_spill] sm:$0xff]  ;;  %v6298_v14 = vld [vmem:[#allocation40_spill] sm:$0xff] }
 0x1ee   :  { %v1271_v23 = vpack.c.bf16 %v6291_v46, %v6290_v41  ;;  %v1272_v43 = vpack.c.bf16 %v6293_v28, %v6292_v49  ;;  %v1273_v18 = vpack.c.bf16 %v6295_v38, %v6294_v31  ;;  %v6301_v24 = vld [vmem:[#allocation42_spill] sm:$0xff] }
 0x1ef   :  { %1187 = vmatmul.mubr.bf16.vlgmr.msra.gmra.mrb[4].mxu1 %v1024_v61  ;;  %6289 = vst [vmem:[#allocation72_spill] sm:$0xff] %v5425_v47  ;;  %v6302_v27 = vcombine.high %v6301_v24, %v6301_v24  ;;  %v5452_v62 = vrot.slane %v6301_v24, %v6300_v37 }
 0x1f0   :  { %4099 = vmatpush3.bf16.msra.mxu1 %v5344_v3  ;;  %4091 = vmatpush3.bf16.msra.mxu0 %v5367_v59 }
 0x1f1   :  { %4100 = vmatprep.subr.bf16.mxu1 %v5371_v7  ;;  %4092 = vmatprep.subr.bf16.mxu0 %v6248_v20  ;;  %v6283_v20 = vld [vmem:[#allocation30_spill] sm:$0xff]  ;;  %v5448_v22 = vrot.slane %v6302_v27, %v6300_v37  ;;  %6304 = vst [vmem:[#allocation74_spill] sm:$0xff] %v5452_v62  ;;  %v6318_v27 = vld [vmem:[#allocation45_spill] sm:$0xff] }
 0x1f2   :  { %4114 = vmatprep.mubr.bf16.mxu1 %v1270_v13  ;;  %v5413_v58 = vcombine.low %v6284_v53, %v6283_v20  ;;  %v6305_v53 = vld [vmem:[#allocation44_spill] sm:$0xff] }
 0x1f3   :  { %6303 = vst [vmem:[#allocation73_spill] sm:$0xff] %v5448_v22  ;;  %v6306_v6 = vcombine.high %v6305_v53, %v6305_v53  ;;  %v5464_v32 = vrot.slane %v6305_v53, %v6300_v37 }
 0x1f4   :  { %4101 = vmatpush3.bf16.msra.mxu1 %v5371_v7  ;;  %4093 = vmatpush3.bf16.msra.mxu0 %v5388_v25 }
 0x1f5   :  { %4102 = vmatprep.subr.bf16.mxu1 %v5393_v35  ;;  %v5460_v60 = vrot.slane %v6306_v6, %v6300_v37  ;;  %6308 = vst [vmem:[#allocation21_spill] sm:$0xff] %v5464_v32  ;;  %v5503_v6 = vrot.slane %v6318_v27, %v6300_v37 }
 0x1f7   :  { %4095 = vmatmul.mubr.bf16.vlgmr.msra.gmra.mrb[8].mxu0 %v1024_v61  ;;  %6307 = vst [vmem:[#allocation22_spill] sm:$0xff] %v5460_v60  ;;  %6321 = vst [vmem:[#allocation27_spill] sm:$0xff] %v5503_v6 }
 0x1f8   :  { %4103 = vmatpush3.bf16.msra.mxu1 %v5393_v35 }
 0x1f9   :  { %4104 = vmatprep.subr.bf16.mxu1 %v5401_v50 }
 0x1fc   :  { %4105 = vmatpush3.bf16.msra.mxu1 %v5401_v50 }
 0x1fd   :  { %4106 = vmatprep.subr.bf16.mxu1 %v5407_v0 }
 0x200   :  { %4107 = vmatpush3.bf16.msra.mxu1 %v5407_v0 }
 0x201   :  { %4108 = vmatprep.subr.bf16.mxu1 %v5413_v58 }
 0x204   :  { %4109 = vmatpush3.bf16.msra.mxu1 %v5413_v58 }
 0x205   :  { %4110 = vmatprep.subr.bf16.mxu1 %v5419_v44 }
 0x208   :  { %4111 = vmatpush3.bf16.msra.mxu1 %v5419_v44 }
 0x209   :  { %4112 = vmatprep.subr.bf16.mxu1 %v5425_v47 }
 0x20c   :  { %4113 = vmatpush3.bf16.msra.mxu1 %v5425_v47 }
 0x20f   :  { %4115 = vmatmul.mubr.bf16.vlgmr.msra.gmra.mrb[8].mxu1 %v1271_v23 }
 0x210   :  { %4118 = vmatprep.mubr.bf16.mxu1 %v1272_v43 }
 0x217   :  { %4119 = vmatmul.mubr.bf16.gmra.mrb[12].mxu1 %v1273_v18 }
 0x218   :  { %4122 = vmatprep.mubr.bf16.mxu1 %v1274_v15  ;;  %v6299_v15 = vld [vmem:[#allocation41_spill] sm:$0xff] }
 0x21f   :  { %4123 = vmatmul.mubr.bf16.gmra.mrb[16].mxu1 %v1275_v16 }
 0x220   :  { %4126 = vmatprep.mubr.bf16.mxu1 %v1276_v63 }
 0x227   :  { %4127 = vmatmul.mubr.bf16.gmra.mrb[20].mxu1 %v1277_v52 }
 0x2c2   :  { %v1188_v19 = vpop.f32.mrb[4].mxu1 }
 0x2c3   :  { %v1238_v51 = vadd.f32 %v1188_v19, %v6296_v48  ;;  %v1190_v45 = vpop.f32.mrb[5].mxu1  ;;  %v6309_v48 = vld [vmem:[#allocation43_spill] sm:$0xff] }
 0x2c4   :  { %v1192_v2 = vpop.f32.mrb[6].mxu1 }
 0x2c5   :  { %v3763_v12 = vmul.f32 -1.442695, %v1238_v51  ;;  %v1241_v36 = vadd.f32 %v1192_v2, %v6297_v30  ;;  %v5438_v57 = vpop.f32.mrb[7].mxu1  ;;  %v6310_v51 = vcombine.high %v6309_v48, %v6309_v48  ;;  %v5478_v30 = vrot.slane %v6309_v48, %v6300_v37 }
 0x2c7   :  { %4316 = vpow2.f32 %v3763_v12  ;;  %v3764_v8 = vmul.f32 -1.442695, %v1241_v36  ;;  %v5474_v2 = vrot.slane %v6310_v51, %v6300_v37  ;;  %6312 = vst [vmem:[#allocation23_spill] sm:$0xff] %v5478_v30  ;;  %v6313_v36 = vld [vmem:[#allocation46_spill] sm:$0xff] }
 0x2c9   :  { %4318 = vpow2.f32 %v3764_v8  ;;  %6311 = vst [vmem:[#allocation24_spill] sm:$0xff] %v5474_v2  ;;  %v6314_v8 = vcombine.high %v6313_v36, %v6313_v36 }
 0x2ca   :  { %v1231_v9 = vpop.f32.mrb[8].mxu0 }
 0x2cb   :  { %v4096_v4 = vpop.f32.mrb[9].mxu0  ;;  %v1240_v61 = vadd.f32 %v1231_v9, %v6298_v14  ;;  %v5484_v9 = vrot.slane %v6314_v8, %v6300_v37 }
 0x2cc   :  { %v1234_v34 = vpop.f32.mrb[10].mxu0 }
 0x2cd   :  { %v4097_v5 = vpop.f32.mrb[11].mxu0  ;;  %v1243_v13 = vadd.f32 %v1234_v34, %v6299_v15  ;;  %4320 = vtanh.f32 %v1240_v61  ;;  %6315 = vst [vmem:[#allocation26_spill] sm:$0xff] %v5484_v9  ;;  %v5488_v34 = vrot.slane %v6313_v36, %v6300_v37 }
 0x2ce   :  { %v6317_v5 = vld [vmem:[#allocation37_spill] sm:$0xff] }
 0x2cf   :  { %4322 = vtanh.f32 %v1243_v13  ;;  %6316 = vst [vmem:[#allocation25_spill] sm:$0xff] %v5488_v34  ;;  %v1239_v14 = vadd.f32 %v1190_v45, %v6317_v5  ;;  %v6319_v45 = vcombine.high %v6318_v27, %v6318_v27 }
 0x2d1   :  { %v4317_v16 = vpop.eup %4316 }
 0x2d2   :  { %v1250_v40 = vadd.f32 1.0, %v4317_v16 }
 0x2d3   :  { %v4319_v63 = vpop.eup %4318 }
 0x2d4   :  { %4324 = vrcp.f32 %v1250_v40  ;;  %v1251_v1 = vadd.f32 1.0, %v4319_v63 }
 0x2d6   :  { %4326 = vrcp.f32 %v1251_v1 }
 0x2d7   :  { %v4321_v39 = vpop.eup %4320 }
 0x2d9   :  { %v4323_v52 = vpop.eup %4322 }
 0x2de   :  { %v4325_v10 = vpop.eup %4324 }
 0x2df   :  { %v5442_v11 = vmul.f32 %v4325_v10, %v4321_v39  ;;  %v3765_v10 = vmul.f32 -1.442695, %v1239_v14 }
 0x2e0   :  { %v4327_v33 = vpop.eup %4326 }
 0x2e1   :  { %v5454_v20 = vmul.f32 %v4327_v33, %v4323_v52  ;;  %v5499_v33 = vrot.slane %v6319_v45, %v6300_v37 }
 0x2e2   :  { %v4116_v42 = vpop.f32.mrb[8].mxu1 }
 0x2e3   :  { %v1505_v41 = vadd.f32 %v4116_v42, %v5448_v22  ;;  %v1360_v46 = vpop.f32.mrb[9].mxu1  ;;  %6320 = vst [vmem:[#allocation28_spill] sm:$0xff] %v5499_v33 }
 0x2e4   :  { %v1503_v23 = vadd.f32 %v5452_v62, %v1360_v46  ;;  %v4117_v49 = vpop.f32.mrb[10].mxu1 }
 0x2e5   :  { %v3777_v28 = vmul.f32 -1.442695, %v1505_v41  ;;  %v1506_v43 = vadd.f32 %v4117_v49, %v5460_v60  ;;  %v1363_v31 = vpop.f32.mrb[11].mxu1  ;;  %v6322_v41 = vld [vmem:[#allocation48_spill] sm:$0xff] }
 0x2e6   :  { %v3775_v38 = vmul.f32 -1.442695, %v1503_v23  ;;  %v1504_v18 = vadd.f32 %v5464_v32, %v1363_v31  ;;  %v6323_v46 = vcombine.high %v6322_v41, %v6322_v41  ;;  %v5513_v31 = vrot.slane %v6322_v41, %v6300_v37 }
 0x2e7   :  { %4328 = vpow2.f32 %v3777_v28  ;;  %v3778_v19 = vmul.f32 -1.442695, %v1506_v43 }
 0x2e8   :  { %4330 = vpow2.f32 %v3775_v38  ;;  %v3776_v12 = vmul.f32 -1.442695, %v1504_v18  ;;  %v5509_v23 = vrot.slane %v6323_v46, %v6300_v37  ;;  %6325 = vst [vmem:[#allocation29_spill] sm:$0xff] %v5513_v31 }
 0x2e9   :  { %4332 = vpow2.f32 %v3778_v19 }
 0x2ea   :  { %4334 = vpow2.f32 %v3776_v12  ;;  %v4120_v4 = vpop.f32.mrb[12].mxu1  ;;  %6324 = vst [vmem:[#allocation30_spill] sm:$0xff] %v5509_v23 }
 0x2eb   :  { %v1509_v61 = vadd.f32 %v4120_v4, %v5474_v2  ;;  %v1376_v15 = vpop.f32.mrb[13].mxu1 }
 0x2ec   :  { %v1507_v13 = vadd.f32 %v5478_v30, %v1376_v15  ;;  %v4121_v16 = vpop.f32.mrb[14].mxu1 }
 0x2ed   :  { %v3781_v40 = vmul.f32 -1.442695, %v1509_v61  ;;  %v1510_v63 = vadd.f32 %v4121_v16, %v5484_v9  ;;  %v1379_v1 = vpop.f32.mrb[15].mxu1 }
 0x2ee   :  { %v3779_v39 = vmul.f32 -1.442695, %v1507_v13  ;;  %v1508_v52 = vadd.f32 %v5488_v34, %v1379_v1 }
 0x2ef   :  { %4336 = vpow2.f32 %v3781_v40  ;;  %v3782_v24 = vmul.f32 -1.442695, %v1510_v63  ;;  %v6326_v40 = vld [vmem:[#allocation47_spill] sm:$0xff] }
 0x2f0   :  { %4338 = vpow2.f32 %v3779_v39  ;;  %v3780_v53 = vmul.f32 -1.442695, %v1508_v52  ;;  %v6327_v63 = vcombine.high %v6326_v40, %v6326_v40  ;;  %v5527_v52 = vrot.slane %v6326_v40, %v6300_v37 }
 0x2f1   :  { %v4329_v42 = vpop.eup %4328  ;;  %4340 = vpow2.f32 %v3782_v24  ;;  %v6330_v24 = vld [vmem:[#allocation49_spill] sm:$0xff] }
 0x2f2   :  { %v4331_v49 = vpop.eup %4330  ;;  %v1569_v28 = vadd.f32 1.0, %v4329_v42  ;;  %4342 = vpow2.f32 %v3780_v53  ;;  %v4124_v43 = vpop.f32.mrb[16].mxu1  ;;  %v5523_v1 = vrot.slane %v6327_v63, %v6300_v37  ;;  %6329 = vst [vmem:[#allocation31_spill] sm:$0xff] %v5527_v52  ;;  %v6331_v27 = vcombine.high %v6330_v24, %v6330_v24 }
 0x2f3   :  { %v4333_v38 = vpop.eup %4332  ;;  %4344 = vpow2.f32 %v3765_v10  ;;  %v1567_v18 = vadd.f32 1.0, %v4331_v49  ;;  %v1513_v19 = vadd.f32 %v4124_v43, %v5499_v33  ;;  %v1392_v48 = vpop.f32.mrb[17].mxu1  ;;  %v5537_v46 = vrot.slane %v6330_v24, %v6300_v37 }
 0x2f4   :  { %v4335_v51 = vpop.eup %4334  ;;  %4346 = vrcp.f32 %v1569_v28  ;;  %v1570_v12 = vadd.f32 1.0, %v4333_v38  ;;  %v1511_v36 = vadd.f32 %v5503_v6, %v1392_v48  ;;  %v4125_v8 = vpop.f32.mrb[18].mxu1  ;;  %6328 = vst [vmem:[#allocation32_spill] sm:$0xff] %v5523_v1  ;;  %v5533_v45 = vrot.slane %v6331_v27, %v6300_v37 }
 0x2f5   :  { %4348 = vrcp.f32 %v1567_v18  ;;  %v1568_v4 = vadd.f32 1.0, %v4335_v51  ;;  %v3785_v5 = vmul.f32 -1.442695, %v1513_v19  ;;  %v1514_v14 = vadd.f32 %v4125_v8, %v5509_v23  ;;  %v1395_v61 = vpop.f32.mrb[19].mxu1  ;;  %6333 = vst [vmem:[#allocation33_spill] sm:$0xff] %v5537_v46  ;;  %v845_v19 = vld [vmem:[#allocation2 + $0x28] sm:$0xff] }
 0x2f6   :  { %4350 = vrcp.f32 %v1570_v12  ;;  %v3783_v15 = vmul.f32 -1.442695, %v1511_v36  ;;  %v1512_v13 = vadd.f32 %v5513_v31, %v1395_v61  ;;  %6332 = vst [vmem:[#allocation34_spill] sm:$0xff] %v5533_v45  ;;  %v843_v8 = vld [vmem:[#allocation2 + $0x8] sm:$0xff] }
 0x2f7   :  { %4352 = vrcp.f32 %v1568_v4  ;;  %v3786_v16 = vmul.f32 -1.442695, %v1514_v14  ;;  %v851_v23 = vld [vmem:[#allocation2 + $0x88] sm:$0xff] }
 0x2f8   :  { %4354 = vpow2.f32 %v3785_v5  ;;  %v3784_v39 = vmul.f32 -1.442695, %v1512_v13 }
 0x2f9   :  { %v4337_v10 = vpop.eup %4336  ;;  %4356 = vpow2.f32 %v3783_v15  ;;  %v846_v15 = vld [vmem:[#allocation2 + $0x38] sm:$0xff] }
 0x2fa   :  { %v4339_v53 = vpop.eup %4338  ;;  %v1573_v42 = vadd.f32 1.0, %v4337_v10  ;;  %4358 = vpow2.f32 %v3786_v16  ;;  %v4128_v41 = vpop.f32.mrb[20].mxu1 }
 0x2fb   :  { %v4341_v49 = vpop.eup %4340  ;;  %v1571_v28 = vadd.f32 1.0, %v4339_v53  ;;  %4360 = vpow2.f32 %v3784_v39  ;;  %v1517_v43 = vadd.f32 %v4128_v41, %v5523_v1  ;;  %v1408_v38 = vpop.f32.mrb[21].mxu1  ;;  %v844_v39 = vld [vmem:[#allocation2 + $0x18] sm:$0xff] }
 0x2fc   :  { %v4343_v18 = vpop.eup %4342  ;;  %4362 = vrcp.f32 %v1573_v42  ;;  %v1574_v48 = vadd.f32 1.0, %v4341_v49  ;;  %v1515_v51 = vadd.f32 %v5527_v52, %v1408_v38  ;;  %v4129_v12 = vpop.f32.mrb[22].mxu1 }
 0x2fd   :  { %v5541_v36 = vpop.eup %4344  ;;  %4364 = vrcp.f32 %v1571_v28  ;;  %v1572_v4 = vadd.f32 1.0, %v4343_v18  ;;  %v3789_v37 = vmul.f32 -1.442695, %v1517_v43  ;;  %v1518_v5 = vadd.f32 %v4129_v12, %v5533_v45  ;;  %v1411_v14 = vpop.f32.mrb[23].mxu1 }
 0x2fe   :  { %v4347_v61 = vpop.eup %4346  ;;  %4366 = vrcp.f32 %v1574_v48  ;;  %v3787_v13 = vmul.f32 -1.442695, %v1515_v51  ;;  %v1516_v16 = vadd.f32 %v5537_v46, %v1411_v14 }
 0x2ff   :  { %v4349_v40 = vpop.eup %4348  ;;  %v1617_v63 = vmul.f32 %v4347_v61, %v845_v19  ;;  %4368 = vrcp.f32 %v1572_v4  ;;  %v3790_v10 = vmul.f32 -1.442695, %v1518_v5  ;;  %v849_v5 = vld [vmem:[#allocation2 + $0x68] sm:$0xff] }
 0x300   :  { %v4351_v24 = vpop.eup %4350  ;;  %v1615_v27 = vmul.f32 %v4349_v40, %v843_v8  ;;  %4370 = vpow2.f32 %v3789_v37  ;;  %v3788_v53 = vmul.f32 -1.442695, %v1516_v16  ;;  %v847_v40 = vld [vmem:[#allocation2 + $0x48] sm:$0xff] }
 0x301   :  { %v4353_v42 = vpop.eup %4352  ;;  %v1643_v41 = vrot.slane %v1617_v63, 4  ;;  %v1618_v49 = vmul.f32 %v4351_v24, %v846_v15  ;;  %4372 = vpow2.f32 %v3787_v13 }
 0x302   :  { %v4355_v28 = vpop.eup %4354  ;;  %v1631_v43 = vrot.slane %v1615_v27, 4  ;;  %v1616_v38 = vmul.f32 %v4353_v42, %v844_v39  ;;  %4374 = vpow2.f32 %v3790_v10  ;;  %v850_v42 = vld [vmem:[#allocation2 + $0x78] sm:$0xff] }
 0x303   :  { %v4357_v18 = vpop.eup %4356  ;;  %v1644_v48 = vadd.f32 %v1643_v41, %v1617_v63  ;;  %v1649_v51 = vrot.slane %v1618_v49, 4  ;;  %v1577_v12 = vadd.f32 1.0, %v4355_v28  ;;  %4376 = vpow2.f32 %v3788_v53 }
 0x304   :  { %v4359_v19 = vpop.eup %4358  ;;  %v1632_v14 = vadd.f32 %v1631_v43, %v1615_v27  ;;  %v1637_v4 = vrot.slane %v1616_v38, 4  ;;  %v1575_v61 = vadd.f32 1.0, %v4357_v18  ;;  %v848_v43 = vld [vmem:[#allocation2 + $0x58] sm:$0xff] }
 0x305   :  { %v4361_v8 = vpop.eup %4360  ;;  %v1645_v37 = vrot.slane %v1644_v48, 2  ;;  %v1650_v16 = vadd.f32 %v1649_v51, %v1618_v49  ;;  %4378 = vrcp.f32 %v1577_v12  ;;  %v1578_v15 = vadd.f32 1.0, %v4359_v19 }
 0x306   :  { %v4363_v24 = vpop.eup %4362  ;;  %v1633_v39 = vrot.slane %v1632_v14, 2  ;;  %v1638_v13 = vadd.f32 %v1637_v4, %v1616_v38  ;;  %4380 = vrcp.f32 %v1575_v61  ;;  %v1576_v63 = vadd.f32 1.0, %v4361_v8 }
 0x307   :  { %v4365_v41 = vpop.eup %4364  ;;  %v1646_v10 = vadd.f32 %v1645_v37, %v1644_v48  ;;  %v1651_v28 = vrot.slane %v1650_v16, 2  ;;  %v1621_v27 = vmul.f32 %v4363_v24, %v849_v5  ;;  %4382 = vrcp.f32 %v1578_v15 }
 0x308   :  { %v4367_v18 = vpop.eup %4366  ;;  %v1634_v53 = vadd.f32 %v1633_v39, %v1632_v14  ;;  %v1639_v46 = vrot.slane %v1638_v13, 2  ;;  %v1619_v45 = vmul.f32 %v4365_v41, %v847_v40  ;;  %4384 = vrcp.f32 %v1576_v63 }
 0x309   :  { %v4369_v49 = vpop.eup %4368  ;;  %v1647_v51 = vrot.slane %v1646_v10, 1  ;;  %v1652_v12 = vadd.f32 %v1651_v28, %v1650_v16  ;;  %v1667_v19 = vrot.slane %v1621_v27, 4  ;;  %v1622_v52 = vmul.f32 %v4367_v18, %v850_v42  ;;  %v853_v18 = vld [vmem:[#allocation2 + $0xa8] sm:$0xff] }
 0x30a   :  { %v4371_v38 = vpop.eup %4370  ;;  %v1635_v4 = vrot.slane %v1634_v53, 1  ;;  %v1640_v61 = vadd.f32 %v1639_v46, %v1638_v13  ;;  %v1655_v8 = vrot.slane %v1619_v45, 4  ;;  %v1620_v1 = vmul.f32 %v4369_v49, %v848_v43 }
 0x30b   :  { %v5546_v48 = vadd.f32 1.0, %v5541_v36  ;;  %v1653_v5 = vrot.slane %v1652_v12, 1  ;;  %v1668_v37 = vadd.f32 %v1667_v19, %v1621_v27  ;;  %v1673_v15 = vrot.slane %v1622_v52, 4  ;;  %v4373_v14 = vpop.eup %4372 }
 0x30c   :  { %v1648_v24 = vadd.f32 %v1647_v51, %v1646_v10  ;;  %v1641_v40 = vrot.slane %v1640_v61, 1  ;;  %v1656_v39 = vadd.f32 %v1655_v8, %v1619_v45  ;;  %v1661_v63 = vrot.slane %v1620_v1, 4  ;;  %v4375_v41 = vpop.eup %4374 }
 0x30d   :  { %v1636_v16 = vadd.f32 %v1635_v4, %v1634_v53  ;;  %v1669_v28 = vrot.slane %v1668_v37, 2  ;;  %v1674_v42 = vadd.f32 %v1673_v15, %v1622_v52  ;;  %v1581_v31 = vadd.f32 1.0, %v4371_v38  ;;  %v4377_v46 = vpop.eup %4376  ;;  %v854_v52 = vld [vmem:[#allocation2 + $0xb8] sm:$0xff] }
 0x30e   :  { %v1654_v13 = vadd.f32 %v1653_v5, %v1652_v12  ;;  %v1642_v43 = vadd.f32 %v1641_v40, %v1640_v61  ;;  %v1657_v49 = vrot.slane %v1656_v39, 2  ;;  %v1662_v36 = vadd.f32 %v1661_v63, %v1620_v1  ;;  %v852_v1 = vld [vmem:[#allocation2 + $0x98] sm:$0xff] }
 0x30f   :  { %v4379_v6 = vpop.eup %4378  ;;  %v1670_v27 = vadd.f32 %v1669_v28, %v1668_v37  ;;  %v1675_v19 = vrot.slane %v1674_v42, 2  ;;  %4386 = vrcp.f32 %v1581_v31  ;;  %v1579_v10 = vadd.f32 1.0, %v4373_v14 }
 0x310   :  { %v4381_v51 = vpop.eup %4380  ;;  %v1745_v45 = vsel %vm1003_vm3, %v1642_v43, %v1636_v16  ;;  %v1658_v8 = vadd.f32 %v1657_v49, %v1656_v39  ;;  %v1663_v53 = vrot.slane %v1662_v36, 2  ;;  %v1625_v4 = vmul.f32 %v4379_v6, %v853_v18 }
 0x311   :  { %v4383_v15 = vpop.eup %4382  ;;  %v1746_v38 = vsel %vm1005_vm4, %v1648_v24, %v1745_v45  ;;  %v1671_v12 = vrot.slane %v1670_v27, 1  ;;  %v1676_v61 = vadd.f32 %v1675_v19, %v1674_v42  ;;  %v1623_v5 = vmul.f32 %v4381_v51, %v851_v23 }
 0x312   :  { %v4385_v40 = vpop.eup %4384  ;;  %v1659_v63 = vrot.slane %v1658_v8, 1  ;;  %v1747_v37 = vsel %vm1007_vm5, %v1654_v13, %v1746_v38  ;;  %v1664_v31 = vadd.f32 %v1663_v53, %v1662_v36  ;;  %v1691_v14 = vrot.slane %v1625_v4, 4  ;;  %v857_v53 = vld [vmem:[#allocation2 + $0xe8] sm:$0xff] }
 0x313   :  { %v1677_v28 = vrot.slane %v1676_v61, 1  ;;  %v1679_v33 = vrot.slane %v1623_v5, 4  ;;  %v1626_v16 = vmul.f32 %v4383_v15, %v854_v52  ;;  %v1582_v39 = vadd.f32 1.0, %v4375_v41 }
 0x314   :  { %v1660_v43 = vadd.f32 %v1659_v63, %v1658_v8  ;;  %v1665_v6 = vrot.slane %v1664_v31, 1  ;;  %v1692_v18 = vadd.f32 %v1691_v14, %v1625_v4  ;;  %v1624_v49 = vmul.f32 %v4385_v40, %v852_v1  ;;  %v6335_v14 = vld [vmem:[#allocation20_spill] sm:$0xff] }
 0x315   :  { %v1672_v34 = vadd.f32 %v1671_v12, %v1670_v27  ;;  %v1680_v24 = vadd.f32 %v1679_v33, %v1623_v5  ;;  %v1697_v45 = vrot.slane %v1626_v16, 4  ;;  %4388 = vrcp.f32 %v1579_v10 }
 0x316   :  { %v1748_v23 = vsel %vm1009_vm6, %v1660_v43, %v1747_v37  ;;  %v1666_v42 = vadd.f32 %v1665_v6, %v1664_v31  ;;  %v1693_v19 = vrot.slane %v1692_v18, 2  ;;  %v1685_v51 = vrot.slane %v1624_v49, 4 }
 0x317   :  { %v1681_v13 = vrot.slane %v1680_v24, 2  ;;  %v1698_v36 = vadd.f32 %v1697_v45, %v1626_v16  ;;  %4390 = vrcp.f32 %v1582_v39  ;;  %v1580_v38 = vadd.f32 1.0, %v4377_v46  ;;  %v6334_v46 = vld [vmem:[#allocation39_spill] sm:$0xff]  ;;  %v855_v39 = vld [vmem:[#allocation2 + $0xc8] sm:$0xff] }
 0x318   :  { %v1678_v52 = vadd.f32 %v1677_v28, %v1676_v61  ;;  %v1749_v41 = vsel %vm1011_vm7, %v1666_v42, %v1748_v23  ;;  %v1694_v8 = vadd.f32 %v1693_v19, %v1692_v18  ;;  %v1686_v4 = vadd.f32 %v1685_v51, %v1624_v49  ;;  %v858_v49 = vld [vmem:[#allocation2 + $0xf8] sm:$0xff] }
 0x319   :  { %v4387_v15 = vpop.eup %4386  ;;  %v1750_v33 = vsel %vm1013_vm8, %v1672_v34, %v1749_v41  ;;  %v1682_v27 = vadd.f32 %v1681_v13, %v1680_v24  ;;  %v1699_v10 = vrot.slane %v1698_v36, 2  ;;  %4392 = vrcp.f32 %v1580_v38 }
 0x31a   :  { %v1751_v12 = vsel %vm1015_vm9, %v1678_v52, %v1750_v33  ;;  %v1687_v5 = vrot.slane %v1686_v4, 2  ;;  %v1629_v1 = vmul.f32 %v4387_v15, %v857_v53  ;;  %4394 = vrcp.f32 %v5546_v48  ;;  %v856_v53 = vld [vmem:[#allocation2 + $0xd8] sm:$0xff] }
 0x31b   :  { %v1761_v40 = vadd.f32 %v1751_v12, %v5442_v11  ;;  %v1700_v63 = vadd.f32 %v1699_v10, %v1698_v36  ;;  %v1242_v61 = vadd.f32 %v5438_v57, %v6334_v46  ;;  %v1683_v37 = vrot.slane %v1682_v27, 1 }
 0x31c   :  { %v1688_v31 = vadd.f32 %v1687_v5, %v1686_v4  ;;  %v1695_v28 = vrot.slane %v1694_v8, 1  ;;  %v1715_v16 = vrot.slane %v1629_v1, 4 }
 0x31d   :  { %4396 = vtanh.f32 %v1761_v40  ;;  %v1771_v34 = vmul.f32 %v6335_v14, %v1761_v40  ;;  %v1701_v43 = vrot.slane %v1700_v63, 1  ;;  %v1684_v11 = vadd.f32 %v1683_v37, %v1682_v27 }
 0x31e   :  { %v1689_v6 = vrot.slane %v1688_v31, 1  ;;  %v3766_v23 = vmul.f32 -1.442695, %v1242_v61  ;;  %v1696_v42 = vadd.f32 %v1695_v28, %v1694_v8  ;;  %v1716_v57 = vadd.f32 %v1715_v16, %v1629_v1 }
 0x31f   :  { %v4389_v18 = vpop.eup %4388  ;;  %1773 = vst [vmem:[#allocation14 + $0x8] sm:$0xff] %v1771_v34  ;;  %v1702_v19 = vadd.f32 %v1701_v43, %v1700_v63 }
 0x320   :  { %v1690_v24 = vadd.f32 %v1689_v6, %v1688_v31  ;;  %v1627_v45 = vmul.f32 %v4389_v18, %v855_v39  ;;  %4398 = vpow2.f32 %v3766_v23  ;;  %v1717_v10 = vrot.slane %v1716_v57, 2 }
 0x321   :  { %v4391_v48 = vpop.eup %4390 }
 0x322   :  { %v1752_v51 = vsel %vm1003_vm3, %v1690_v24, %v1684_v11  ;;  %v1703_v13 = vrot.slane %v1627_v45, 4  ;;  %v1630_v36 = vmul.f32 %v4391_v48, %v858_v49  ;;  %v1718_v31 = vadd.f32 %v1717_v10, %v1716_v57 }
 0x323   :  { %v4393_v38 = vpop.eup %4392  ;;  %v1753_v52 = vsel %vm1005_vm4, %v1696_v42, %v1752_v51 }
 0x324   :  { %v1704_v41 = vadd.f32 %v1703_v13, %v1627_v45  ;;  %v1754_v4 = vsel %vm1007_vm5, %v1702_v19, %v1753_v52  ;;  %v1721_v15 = vrot.slane %v1630_v36, 4  ;;  %v1628_v33 = vmul.f32 %v4393_v38, %v856_v53  ;;  %v4395_v27 = vpop.eup %4394 }
 0x325   :  { %v1719_v6 = vrot.slane %v1718_v31, 1 }
 0x326   :  { %v1705_v12 = vrot.slane %v1704_v41, 2  ;;  %v1722_v8 = vadd.f32 %v1721_v15, %v1630_v36  ;;  %v1709_v1 = vrot.slane %v1628_v33, 4 }
 0x327   :  { %v4397_v5 = vpop.eup %4396  ;;  %v1720_v48 = vadd.f32 %v1719_v6, %v1718_v31 }
 0x328   :  { %v1765_v40 = vmul.f32 %v4397_v5, %v4395_v27  ;;  %v1706_v63 = vadd.f32 %v1705_v12, %v1704_v41  ;;  %v1723_v46 = vrot.slane %v1722_v8, 2  ;;  %v1710_v61 = vadd.f32 %v1709_v1, %v1628_v33 }
 0x32a   :  { %v1767_v37 = vmul.f32 %v6335_v14, %v1765_v40  ;;  %v1707_v34 = vrot.slane %v1706_v63, 1  ;;  %v1724_v28 = vadd.f32 %v1723_v46, %v1722_v8  ;;  %v1711_v16 = vrot.slane %v1710_v61, 2  ;;  %v4399_v24 = vpop.eup %4398 }
 0x32b   :  { %v1263_v23 = vadd.f32 1.0, %v4399_v24 }
 0x32c   :  { %1769 = vst [vmem:[#allocation14] sm:$0xff] %v1767_v37  ;;  %v1708_v39 = vadd.f32 %v1707_v34, %v1706_v63  ;;  %v1712_v43 = vadd.f32 %v1711_v16, %v1710_v61  ;;  %v1725_v49 = vrot.slane %v1724_v28, 1 }
 0x32d   :  { %4400 = vrcp.f32 %v1263_v23 }
 0x32e   :  { %v1755_v18 = vsel %vm1009_vm6, %v1708_v39, %v1754_v4  ;;  %v1713_v11 = vrot.slane %v1712_v43, 1  ;;  %v1726_v42 = vadd.f32 %v1725_v49, %v1724_v28 }
 0x330   :  { %v1714_v45 = vadd.f32 %v1713_v11, %v1712_v43 }
 0x332   :  { %v1756_v19 = vsel %vm1011_vm7, %v1714_v45, %v1755_v18 }
 0x333   :  { %v1757_v14 = vsel %vm1013_vm8, %v1720_v48, %v1756_v19 }
 0x334   :  { %v1758_v57 = vsel %vm1015_vm9, %v1726_v42, %v1757_v14 }
 0x335   :  { %v1762_v51 = vadd.f32 %v1758_v57, %v5454_v20 }
 0x337   :  { %4402 = vtanh.f32 %v1762_v51  ;;  %1774 = vst [vmem:[#allocation14 + $0x18] sm:$0xff] %v1762_v51  ;;  %v4401_v13 = vpop.eup %4400 }
 0x341   :  { %v4403_v36 = vpop.eup %4402 }
 0x342   :  { %v1766_v53 = vmul.f32 %v4403_v36, %v4401_v13 }
 0x344   :  { %1770 = vst [vmem:[#allocation14 + $0x10] sm:$0xff] %v1766_v53 }
 0x345 LB: > { %s5575_s28 = sshll.u32 %s4750_s7, 3  ;;  %s1780_s7 = sadd.s32 1, %s4750_s7   ;;  %s4750_s7 = sphi %s5569_s7, %s1780_s7  }
 0x346   : > { %s1782_s22 = sld [smem:[#allocation3 + %s5575_s28]]  ;;  %s1792_s20 = sshra.s32 %s5575_s28, 3 }
 0x347   : > { %s3914_s5 = sshll.u32 %s1792_s20, 4  ;;  %s1803_s23 = sadd.s32 1, %s5575_s28 }
 0x348   : > { %s1804_s25 = sld [smem:[#allocation3 + %s1803_s23]]  ;;  %s1814_s26 = sshra.s32 %s1803_s23, 3 }
 0x349   : > { %s1817_s27 = sand.u32 7, %s1803_s23  ;;  %s3916_s30 = sshll.u32 %s1814_s26, 4 }
 0x34a   : > { %s1824_s9 = sadd.s32 2, %s5575_s28  ;;  %s1820_s29 = sadd.s32 %s3916_s30, %s1817_s27 }
 0x34b   : > { %s1825_s10 = sld [smem:[#allocation3 + %s1824_s9]]  ;;  %s1835_s24 = sshra.s32 %s1824_s9, 3 }
 0x34c   : > { %s1783_s0 = sshra.s32 %s1782_s22, 3  ;;  %s1786_s11 = sand.u32 7, %s1782_s22 }
 0x34d   : > { %s3913_s3 = sshll.u32 %s1783_s0, 4  ;;  %s1796_s12 = scalar_lea.vmem [#allocation2], %s3914_s5 }
 0x34e   : > { %s1789_s15 = sadd.s32 %s3913_s3, %s1786_s11  ;;  %s1805_s6 = sshra.s32 %s1804_s25, 3 }
 0x34f   : > { %s1808_s16 = sand.u32 7, %s1804_s25  ;;  %s1790_s4 = scalar_lea.vmem [#allocation14], %s1789_s15 }
 0x350   : > { %v1791_v20 = vld [vmem:[%s1790_s4] ss:$8 sm:$0x3]  ;;  %s3915_s2 = sshll.u32 %s1805_s6, 4  ;;  %s1838_s21 = sand.u32 7, %s1824_s9 }
 0x351   : > { %1801 = vst.msk [vmem:[%s1796_s12] ss:$8 sm:$0x3] %vm5103_vm2, %v1791_v20  ;;  %s1811_s14 = sadd.s32 %s3915_s2, %s1808_s16  ;;  %s1826_s13 = sshra.s32 %s1825_s10, 3 }
 0x352   : > { %s1829_s17 = sand.u32 7, %s1825_s10  ;;  %s1812_s18 = scalar_lea.vmem [#allocation14], %s1811_s14 }
 0x353   : > { %v1813_v52 = vld [vmem:[%s1812_s18] ss:$8 sm:$0x3]  ;;  %s3917_s19 = sshll.u32 %s1826_s13, 4  ;;  %s1821_s1 = scalar_lea.vmem [#allocation2], %s1820_s29 }
 0x354   : > { %1822 = vst.msk [vmem:[%s1821_s1] ss:$8 sm:$0x3] %vm5103_vm2, %v1813_v52  ;;  %s1832_s22 = sadd.s32 %s3917_s19, %s1829_s17  ;;  %s3918_s20 = sshll.u32 %s1835_s24, 4 }
 0x355   : > { %s1841_s23 = sadd.s32 %s3918_s20, %s1838_s21  ;;  %s1833_s5 = scalar_lea.vmem [#allocation14], %s1832_s22 }
 0x356   : > { %v1834_v41 = vld [vmem:[%s1833_s5] ss:$8 sm:$0x3]  ;;  %s1845_s25 = sadd.s32 3, %s5575_s28  ;;  %s1842_s26 = scalar_lea.vmem [#allocation2], %s1841_s23 }
 0x357   : > { %1843 = vst.msk [vmem:[%s1842_s26] ss:$8 sm:$0x3] %vm5103_vm2, %v1834_v41  ;;  %s1846_s27 = sld [smem:[#allocation3 + %s1845_s25]]  ;;  %s1856_s30 = sshra.s32 %s1845_s25, 3 }
 0x358   : > { %s1859_s10 = sand.u32 7, %s1845_s25  ;;  %s3920_s9 = sshll.u32 %s1856_s30, 4 }
 0x359   : > { %s1862_s0 = sadd.s32 %s3920_s9, %s1859_s10  ;;  %s1866_s29 = sadd.s32 4, %s5575_s28 }
 0x35a   : > { %s1867_s11 = sld [smem:[#allocation3 + %s1866_s29]]  ;;  %s1877_s3 = sshra.s32 %s1866_s29, 3 }
 0x35b   : > { %s1880_s15 = sand.u32 7, %s1866_s29  ;;  %s3922_s6 = sshll.u32 %s1877_s3, 4 }
 0x35c   : > { %s1887_s16 = sadd.s32 5, %s5575_s28  ;;  %s1883_s12 = sadd.s32 %s3922_s6, %s1880_s15 }
 0x35d   : > { %s1847_s4 = sshra.s32 %s1846_s27, 3  ;;  %s1850_s2 = sand.u32 7, %s1846_s27 }
 0x35e   : > { %s3919_s24 = sshll.u32 %s1847_s4, 4  ;;  %s1863_s21 = scalar_lea.vmem [#allocation2], %s1862_s0 }
 0x35f   : > { %s1853_s14 = sadd.s32 %s3919_s24, %s1850_s2  ;;  %s1888_s22 = sld [smem:[#allocation3 + %s1887_s16]] }
 0x360   : > { %s1868_s13 = sshra.s32 %s1867_s11, 3  ;;  %s1854_s17 = scalar_lea.vmem [#allocation14], %s1853_s14 }
 0x361   : > { %v1855_v4 = vld [vmem:[%s1854_s17] ss:$8 sm:$0x3]  ;;  %s1871_s18 = sand.u32 7, %s1867_s11  ;;  %s3921_s19 = sshll.u32 %s1868_s13, 4 }
 0x362   : > { %1864 = vst.msk [vmem:[%s1863_s21] ss:$8 sm:$0x3] %vm5103_vm2, %v1855_v4  ;;  %s1874_s1 = sadd.s32 %s3921_s19, %s1871_s18  ;;  %s1898_s20 = sshra.s32 %s1887_s16, 3 }
 0x363   : > { %s1875_s23 = scalar_lea.vmem [#allocation14], %s1874_s1  ;;  %s1901_s5 = sand.u32 7, %s1887_s16 }
 0x364   : > { %v1876_v15 = vld [vmem:[%s1875_s23] ss:$8 sm:$0x3]  ;;  %s3924_s25 = sshll.u32 %s1898_s20, 4  ;;  %s1884_s26 = scalar_lea.vmem [#allocation2], %s1883_s12 }
 0x365   : > { %1885 = vst.msk [vmem:[%s1884_s26] ss:$8 sm:$0x3] %vm5103_vm2, %v1876_v15  ;;  %s1904_s27 = sadd.s32 %s3924_s25, %s1901_s5  ;;  %s1908_s30 = sadd.s32 6, %s5575_s28 }
 0x366   : > { %s1909_s10 = sld [smem:[#allocation3 + %s1908_s30]]  ;;  %s1919_s9 = sshra.s32 %s1908_s30, 3 }
 0x367   : > { %s1922_s0 = sand.u32 7, %s1908_s30  ;;  %s1889_s29 = sshra.s32 %s1888_s22, 3 }
 0x368   : > { %s1892_s11 = sand.u32 7, %s1888_s22  ;;  %s3923_s3 = sshll.u32 %s1889_s29, 4 }
 0x369   : > { %s3926_s15 = sshll.u32 %s1919_s9, 4  ;;  %s1895_s6 = sadd.s32 %s3923_s3, %s1892_s11 }
 0x36a   : > { %s1925_s4 = sadd.s32 %s3926_s15, %s1922_s0  ;;  %s1896_s2 = scalar_lea.vmem [#allocation14], %s1895_s6 }
 0x36b   : > { %v1897_v33 = vld [vmem:[%s1896_s2] ss:$8 sm:$0x3]  ;;  %s1905_s12 = scalar_lea.vmem [#allocation2], %s1904_s27  ;;  %s1929_s13 = sadd.s32 7, %s5575_s28 }
 0x36c   : > { %s1910_s16 = sshra.s32 %s1909_s10, 3  ;;  %s1913_s24 = sand.u32 7, %s1909_s10  ;;  %1906 = vst.msk [vmem:[%s1905_s12] ss:$8 sm:$0x3] %vm5103_vm2, %v1897_v33 }
 0x36d   : > { %s3925_s14 = sshll.u32 %s1910_s16, 4  ;;  %s1930_s18 = sld [smem:[#allocation3 + %s1929_s13]] }
 0x36e   : > { %s1916_s17 = sadd.s32 %s3925_s14, %s1913_s24  ;;  %s1940_s19 = sshra.s32 %s1929_s13, 3 }
 0x36f   : > { %s1917_s21 = scalar_lea.vmem [#allocation14], %s1916_s17  ;;  %s1943_s1 = sand.u32 7, %s1929_s13 }
 0x370   : > { %v1918_v27 = vld [vmem:[%s1917_s21] ss:$8 sm:$0x3]  ;;  %s3928_s22 = sshll.u32 %s1940_s19, 4  ;;  %s1926_s20 = scalar_lea.vmem [#allocation2], %s1925_s4 }
 0x371   : > { %1927 = vst.msk [vmem:[%s1926_s20] ss:$8 sm:$0x3] %vm5103_vm2, %v1918_v27  ;;  %s1946_s23 = sadd.s32 %s3928_s22, %s1943_s1  ;;  %p1777_p2 = scmp.ge.s32.totalorder %s1780_s7, 16  }
 0x372   : > { %s1947_s10 = scalar_lea.vmem [#allocation2], %s1946_s23  ;;  %v6337_v12 = vld [vmem:[#allocation51_spill] sm:$0xff] (%p1777_p2)  ;;  %v6338_v8 = vmov (%p1777_p2), 0.0   ;;  %v6340_v63 = vld [vmem:[#allocation52_spill] sm:$0xff] (%p1777_p2)  ;;  %v6345_v39 = vld [vmem:[#allocation53_spill] sm:$0xff] (%p1777_p2)  ;;  %v6348_v24 = vmov (%p1777_p2), 0  }
 0x373   : > { %s1931_s5 = sshra.s32 %s1930_s18, 3  ;;  %s1934_s25 = sand.u32 7, %s1930_s18  ;;  %2142 = vmatprep.subr.bf16.mxu0 (%p1777_p2), %v6337_v12  ;;  %4130 = vmatprep.subr.bf16.mxu1 (%p1777_p2), %v6338_v8  ;;  %v6341_v46 = vld [vmem:[#allocation59_spill] sm:$0xff] (%p1777_p2)  ;;  %v6349_v13 = vld [vmem:[#allocation54_spill] sm:$0xff] (%p1777_p2)  ;;  %v6350_v36 = vld [vmem:[#allocation65_spill] sm:$0xff] (%p1777_p2) }
 0x374   : > { %s3927_s26 = sshll.u32 %s1931_s5, 4  ;;  %1779 = sbr.rel (!%p1777_p2) target bundleno = 837 (0x345), region = 156  ;;  %2143 = vmatpush1.bf16.msra.mxu0 (%p1777_p2), %v6340_v63  ;;  %4131 = vmatpush3.bf16.msra.mxu1 (%p1777_p2), %v6341_v46  ;;  %v6351_v41 = vld [vmem:[#allocation55_spill] sm:$0xff] (%p1777_p2) }
 0x375   : > { %s1937_s27 = sadd.s32 %s3927_s26, %s1934_s25  ;;  %2144 = vmatprep.subr.bf16.mxu0 (%p1777_p2), %v6345_v39  ;;  %4132 = vmatprep.subr.bf16.mxu1 (%p1777_p2), %v6338_v8  ;;  %v6358_v30 = vld [vmem:[#allocation63_spill] sm:$0xff] (%p1777_p2)  ;;  %s5835_s7 = smov (%p1777_p2), 0  }
 0x376   : > { %s1938_s30 = scalar_lea.vmem [#allocation14], %s1937_s27  ;;  %2174 = vmatprep.mubr.bf16.mxu0 (%p1777_p2), %v6348_v24  ;;  %4146 = vmatprep.mubr.msk.bf16.mxu1 (%p1777_p2), %vm4768_vm0, %v6338_v8 }
 0x377   : > { %v1939_v10 = vld [vmem:[%s1938_s30] ss:$8 sm:$0x3] }
 0x378   : > { %1948 = vst.msk [vmem:[%s1947_s10] ss:$8 sm:$0x3] %vm5103_vm2, %v1939_v10  ;;  %2145 = vmatpush1.bf16.msra.mxu0 (%p1777_p2), %v6349_v13  ;;  %4133 = vmatpush3.bf16.msra.mxu1 (%p1777_p2), %v6350_v36  ;;  %v6354_v36 = vld [vmem:[#allocation57_spill] sm:$0xff] (%p1777_p2) }
 0x379   :  { %2146 = vmatprep.subr.bf16.mxu0 (%p1777_p2), %v6351_v41  ;;  %4134 = vmatprep.subr.bf16.mxu1 (%p1777_p2), %v6338_v8 }
 0x37f   :  { %v5607_v5 = vld [vmem:[#allocation2] sm:$0xff]  ;;  %v5609_v1 = vld [vmem:[#allocation2 + $0x10] sm:$0xff] }
 0x380   :  { %v5611_v40 = vld [vmem:[#allocation2 + $0x20] sm:$0xff]  ;;  %v5615_v61 = vld [vmem:[#allocation2 + $0x30] sm:$0xff]  ;;  %v1982_v34 = vrot.slane %v5607_v5, 4  ;;  %v1988_v28 = vrot.slane %v5609_v1, 4 }
 0x381   :  { %6339 = vst [vmem:[#allocation60_spill] sm:$0xff] %v5611_v40  ;;  %6342 = vst [vmem:[#allocation61_spill] sm:$0xff] %v5615_v61  ;;  %v5617_v37 = vld [vmem:[#allocation2 + $0x40] sm:$0xff]  ;;  %v5619_v31 = vld [vmem:[#allocation2 + $0x50] sm:$0xff]  ;;  %v1994_v16 = vrot.slane %v5611_v40, 4  ;;  %v2000_v18 = vrot.slane %v5615_v61, 4 }
 0x382   :  { %6343 = vst [vmem:[#allocation66_spill] sm:$0xff] %v5617_v37  ;;  %6344 = vst [vmem:[#allocation67_spill] sm:$0xff] %v5619_v31  ;;  %v5626_v43 = vld [vmem:[#allocation2 + $0x60] sm:$0xff]  ;;  %v5628_v6 = vld [vmem:[#allocation2 + $0x70] sm:$0xff]  ;;  %v2006_v49 = vrot.slane %v5617_v37, 4  ;;  %v2012_v11 = vrot.slane %v5619_v31, 4  ;;  %v1983_v45 = vadd.f32 %v1982_v34, %v5607_v5  ;;  %v1989_v48 = vadd.f32 %v1988_v28, %v5609_v1 }
 0x383   :  { %6346 = vst [vmem:[#allocation68_spill] sm:$0xff] %v5626_v43  ;;  %6347 = vst [vmem:[#allocation70_spill] sm:$0xff] %v5628_v6  ;;  %v1995_v23 = vadd.f32 %v1994_v16, %v5611_v40  ;;  %v2018_v42 = vrot.slane %v5626_v43, 4  ;;  %v2001_v19 = vadd.f32 %v2000_v18, %v5615_v61  ;;  %v2024_v51 = vrot.slane %v5628_v6, 4  ;;  %v6352_v18 = vld [vmem:[#allocation56_spill] sm:$0xff] }
 0x384   :  { %v2007_v14 = vadd.f32 %v2006_v49, %v5617_v37  ;;  %v2013_v57 = vadd.f32 %v2012_v11, %v5619_v31  ;;  %v1984_v53 = vrot.slane %v1983_v45, 2  ;;  %v1990_v20 = vrot.slane %v1989_v48, 2  ;;  %2147 = vmatpush1.bf16.msra.mxu0 %v6352_v18  ;;  %v6353_v49 = vld [vmem:[#allocation69_spill] sm:$0xff]  ;;  %v6356_v18 = vld [vmem:[#allocation71_spill] sm:$0xff] }
 0x385   :  { %v1996_v38 = vrot.slane %v1995_v23, 2  ;;  %v2019_v52 = vadd.f32 %v2018_v42, %v5626_v43  ;;  %v2002_v4 = vrot.slane %v2001_v19, 2  ;;  %v2025_v27 = vadd.f32 %v2024_v51, %v5628_v6  ;;  %4135 = vmatpush3.bf16.msra.mxu1 %v6353_v49  ;;  %2148 = vmatprep.subr.bf16.mxu0 %v6354_v36  ;;  %v5685_v49 = vld [vmem:[#allocation2 + $0xf0] sm:$0xff] }
 0x386   :  { %v2008_v15 = vrot.slane %v2007_v14, 2  ;;  %v2014_v33 = vrot.slane %v2013_v57, 2  ;;  %v1985_v10 = vadd.f32 %v1984_v53, %v1983_v45  ;;  %v1991_v12 = vadd.f32 %v1990_v20, %v1989_v48  ;;  %4136 = vmatprep.subr.bf16.mxu1 %v6338_v8  ;;  %v5656_v45 = vld [vmem:[#allocation2 + $0x80] sm:$0xff]  ;;  %v5658_v48 = vld [vmem:[#allocation2 + $0x90] sm:$0xff] }
 0x387   :  { %v1997_v63 = vadd.f32 %v1996_v38, %v1995_v23  ;;  %v2020_v46 = vrot.slane %v2019_v52, 2  ;;  %v2003_v34 = vadd.f32 %v2002_v4, %v2001_v19  ;;  %v2026_v39 = vrot.slane %v2025_v27, 2  ;;  %v5660_v23 = vld [vmem:[#allocation2 + $0xa0] sm:$0xff]  ;;  %v5664_v53 = vld [vmem:[#allocation2 + $0xb0] sm:$0xff] }
 0x388   :  { %v2009_v28 = vadd.f32 %v2008_v15, %v2007_v14  ;;  %v2015_v16 = vadd.f32 %v2014_v33, %v2013_v57  ;;  %v1986_v11 = vrot.slane %v1985_v10, 1  ;;  %v1992_v24 = vrot.slane %v1991_v12, 1  ;;  %v5666_v20 = vld [vmem:[#allocation2 + $0xc0] sm:$0xff]  ;;  %v5668_v38 = vld [vmem:[#allocation2 + $0xd0] sm:$0xff] }
 0x389   :  { %v1998_v42 = vrot.slane %v1997_v63, 1  ;;  %v5652_v13 = vadd.f32 %v2020_v46, %v2019_v52  ;;  %v2004_v19 = vrot.slane %v2003_v34, 1  ;;  %v5662_v51 = vadd.f32 %v2026_v39, %v2025_v27  ;;  %v5674_v4 = vld [vmem:[#allocation2 + $0xe0] sm:$0xff]  ;;  %v6355_v39 = vld [vmem:[#allocation58_spill] sm:$0xff]  ;;  %4137 = vmatpush3.bf16.msra.mxu1 %v6356_v18 }
 0x38a   :  { %v2010_v14 = vrot.slane %v2009_v28, 1  ;;  %v2016_v57 = vrot.slane %v2015_v16, 1  ;;  %v5670_v52 = vadd.f32 %v1986_v11, %v1985_v10  ;;  %v5672_v41 = vadd.f32 %v1992_v24, %v1991_v12  ;;  %2149 = vmatpush1.bf16.msra.mxu0 %v6355_v39  ;;  %4138 = vmatprep.subr.bf16.mxu1 %v6338_v8 }
 0x38b   :  { %v5676_v15 = vadd.f32 %v1998_v42, %v1997_v63  ;;  %v5678_v33 = vadd.f32 %v2004_v19, %v2003_v34  ;;  %v2022_v27 = vrot.slane %v5652_v13, 1  ;;  %v2030_v12 = vrot.slane %v5656_v45, 4  ;;  %v6357_v34 = vld [vmem:[#allocation62_spill] sm:$0xff] }
 0x38c   :  { %v5680_v46 = vadd.f32 %v2010_v14, %v2009_v28  ;;  %v5687_v10 = vadd.f32 %v2016_v57, %v2015_v16  ;;  %v2036_v11 = vrot.slane %v5658_v48, 4  ;;  %v2042_v63 = vrot.slane %v5660_v23, 4  ;;  %2150 = vmatprep.subr.bf16.mxu0 %v6357_v34 }
 0x38d   :  { %v2028_v28 = vrot.slane %v5662_v51, 1  ;;  %v2048_v24 = vrot.slane %v5664_v53, 4  ;;  %v2054_v42 = vrot.slane %v5666_v20, 4  ;;  %v2060_v36 = vrot.slane %v5668_v38, 4  ;;  %4139 = vmatpush3.bf16.msra.mxu1 %v5340_v17 }
 0x38e   :  { %v2031_v16 = vadd.f32 %v2030_v12, %v5656_v45  ;;  %v2037_v19 = vadd.f32 %v2036_v11, %v5658_v48  ;;  %v2043_v14 = vadd.f32 %v2042_v63, %v5660_v23  ;;  %v2066_v57 = vrot.slane %v5674_v4, 4  ;;  %2151 = vmatpush1.bf16.msra.mxu0 %v6358_v30  ;;  %v6359_v11 = vld [vmem:[#allocation64_spill] sm:$0xff]  ;;  %4140 = vmatprep.subr.bf16.mxu1 %v6338_v8 }
 0x38f   :  { %v2049_v39 = vadd.f32 %v2048_v24, %v5664_v53  ;;  %v2055_v18 = vadd.f32 %v2054_v42, %v5666_v20  ;;  %v2061_v34 = vadd.f32 %v2060_v36, %v5668_v38  ;;  %v2072_v9 = vrot.slane %v5685_v49, 4  ;;  %2152 = vmatprep.subr.bf16.mxu0 %v6359_v11 }
 0x390   :  { %v2032_v2 = vrot.slane %v2031_v16, 2  ;;  %v2038_v32 = vrot.slane %v2037_v19, 2  ;;  %v2044_v60 = vrot.slane %v2043_v14, 2  ;;  %v2067_v12 = vadd.f32 %v2066_v57, %v5674_v4 }
 0x391   :  { %v2050_v63 = vrot.slane %v2049_v39, 2  ;;  %v2056_v62 = vrot.slane %v2055_v18, 2  ;;  %v2062_v24 = vrot.slane %v2061_v34, 2  ;;  %v2073_v42 = vadd.f32 %v2072_v9, %v5685_v49  ;;  %4141 = vmatpush3.bf16.msra.mxu1 %v5354_v55 }
 0x392   :  { %v2033_v36 = vadd.f32 %v2032_v2, %v2031_v16  ;;  %v2039_v22 = vadd.f32 %v2038_v32, %v2037_v19  ;;  %v2045_v6 = vadd.f32 %v2044_v60, %v2043_v14  ;;  %v2068_v30 = vrot.slane %v2067_v12, 2  ;;  %2153 = vmatpush1.bf16.msra.mxu0 %v5205_v54  ;;  %4142 = vmatprep.subr.bf16.mxu1 %v6338_v8 }
 0x393   :  { %v2051_v43 = vadd.f32 %v2050_v63, %v2049_v39  ;;  %v2057_v31 = vadd.f32 %v2056_v62, %v2055_v18  ;;  %v2063_v37 = vadd.f32 %v2062_v24, %v2061_v34  ;;  %v2074_v61 = vrot.slane %v2073_v42, 2  ;;  %2154 = vmatprep.subr.bf16.mxu0 %v5209_v56 }
 0x394   :  { %v2034_v57 = vrot.slane %v2033_v36, 1  ;;  %v2040_v17 = vrot.slane %v2039_v22, 1  ;;  %v2046_v11 = vrot.slane %v2045_v6, 1  ;;  %v2069_v40 = vadd.f32 %v2068_v30, %v2067_v12 }
 0x395   :  { %v2052_v9 = vrot.slane %v2051_v43, 1  ;;  %v2058_v47 = vrot.slane %v2057_v31, 1  ;;  %v2064_v2 = vrot.slane %v2063_v37, 1  ;;  %v2075_v32 = vadd.f32 %v2074_v61, %v2073_v42  ;;  %4143 = vmatpush3.bf16.msra.mxu1 %v5367_v59 }
 0x396   :  { %v2023_v62 = vadd.f32 %v2022_v27, %v5652_v13  ;;  %v2035_v60 = vadd.f32 %v2034_v57, %v2033_v36  ;;  %v2041_v16 = vadd.f32 %v2040_v17, %v2039_v22  ;;  %v2070_v19 = vrot.slane %v2069_v40, 1  ;;  %2155 = vmatpush1.bf16.msra.mxu0 %v5258_v26  ;;  %4144 = vmatprep.subr.bf16.mxu1 %v6338_v8 }
 0x397   :  { %v2047_v14 = vadd.f32 %v2046_v11, %v2045_v6  ;;  %v2053_v39 = vadd.f32 %v2052_v9, %v2051_v43  ;;  %v2059_v18 = vadd.f32 %v2058_v47, %v2057_v31  ;;  %v2076_v34 = vrot.slane %v2075_v32, 1  ;;  %2156 = vmatprep.subr.bf16.mxu0 %v5262_v21 }
 0x398   :  { %v2029_v12 = vadd.f32 %v2028_v28, %v5662_v51  ;;  %v2065_v63 = vadd.f32 %v2064_v2, %v2063_v37  ;;  %v2078_v24 = vpack.c.bf16 %v5670_v52, %v5670_v52  ;;  %v2079_v61 = vpack.c.bf16 %v5672_v41, %v5672_v41 }
 0x399   :  { %v2071_v13 = vadd.f32 %v2070_v19, %v2069_v40  ;;  %v2077_v17 = vadd.f32 %v2076_v34, %v2075_v32  ;;  %v2080_v22 = vpack.c.bf16 %v5676_v15, %v5676_v15  ;;  %v2081_v47 = vpack.c.bf16 %v5678_v33, %v5678_v33  ;;  %4145 = vmatpush3.bf16.msra.mxu1 %v5388_v25 }
 0x39a   :  { %v2082_v31 = vpack.c.bf16 %v5680_v46, %v5680_v46  ;;  %v2083_v37 = vpack.c.bf16 %v5687_v10, %v5687_v10  ;;  %v2086_v43 = vpack.c.bf16 %v2035_v60, %v2035_v60  ;;  %v2087_v6 = vpack.c.bf16 %v2041_v16, %v2041_v16  ;;  %2157 = vmatpush1.bf16.msra.mxu0 %v5266_v29 }
 0x39b   :  { %v2084_v51 = vpack.c.bf16 %v2023_v62, %v2023_v62  ;;  %v2088_v52 = vpack.c.bf16 %v2047_v14, %v2047_v14  ;;  %v2089_v40 = vpack.c.bf16 %v2053_v39, %v2053_v39  ;;  %v2090_v41 = vpack.c.bf16 %v2059_v18, %v2059_v18  ;;  %4150 = vmatprep.subr.bf16.mxu0 %v5344_v3 }
 0x39c   :  { %v2085_v15 = vpack.c.bf16 %v2029_v12, %v2029_v12  ;;  %v2091_v33 = vpack.c.bf16 %v2065_v63, %v2065_v63  ;;  %v2110_v27 = vunpack.c.l.b16 %v2078_v24  ;;  %v2111_v28 = vunpack.c.l.b16 %v2079_v61 }
 0x39d   :  { %v2092_v46 = vpack.c.bf16 %v2071_v13, %v2071_v13  ;;  %v2093_v42 = vpack.c.bf16 %v2077_v17, %v2077_v17  ;;  %v2112_v36 = vunpack.c.l.b16 %v2080_v22  ;;  %v2113_v10 = vunpack.c.l.b16 %v2081_v47 }
 0x39e   :  { %v2114_v30 = vunpack.c.l.b16 %v2082_v31  ;;  %v2115_v57 = vunpack.c.l.b16 %v2083_v37  ;;  %v2118_v11 = vunpack.c.l.b16 %v2086_v43  ;;  %v2119_v9 = vunpack.c.l.b16 %v2087_v6 }
 0x39f   :  { %v2116_v2 = vunpack.c.l.b16 %v2084_v51  ;;  %v2120_v8 = vunpack.c.l.b16 %v2088_v52  ;;  %v2121_v32 = vunpack.c.l.b16 %v2089_v40  ;;  %v2122_v62 = vunpack.c.l.b16 %v2090_v41  ;;  %v6365_v40 = vld [vmem:[#allocation68_spill] sm:$0xff]  ;;  %v6366_v41 = vld [vmem:[#allocation70_spill] sm:$0xff] }
 0x3a0   :  { %v2117_v60 = vunpack.c.l.b16 %v2085_v15  ;;  %v2123_v16 = vunpack.c.l.b16 %v2091_v33  ;;  %v2126_v19 = vsel %vm1003_vm3, %v2111_v28, %v2110_v27  ;;  %v2133_v14 = vsel %vm1003_vm3, %v2119_v9, %v2118_v11  ;;  %v6367_v28 = vld [vmem:[#allocation36_spill] sm:$0xff]  ;;  %v6368_v11 = vld [vmem:[#allocation38_spill] sm:$0xff] }
 0x3a1   :  { %v2124_v39 = vunpack.c.l.b16 %v2092_v46  ;;  %v2125_v18 = vunpack.c.l.b16 %v2093_v42  ;;  %v2127_v34 = vsel %vm1005_vm4, %v2112_v36, %v2126_v19  ;;  %v2134_v12 = vsel %vm1005_vm4, %v2120_v8, %v2133_v14 }
 0x3a2   :  { %v2128_v63 = vsel %vm1007_vm5, %v2113_v10, %v2127_v34  ;;  %v2135_v24 = vsel %vm1007_vm5, %v2121_v32, %v2134_v12  ;;  %v2262_v61 = vpack.c.bf16 %v5658_v48, %v5656_v45  ;;  %v2263_v13 = vpack.c.bf16 %v5664_v53, %v5660_v23 }
 0x3a3   :  { %v2129_v17 = vsel %vm1009_vm6, %v2114_v30, %v2128_v63  ;;  %v2136_v22 = vsel %vm1009_vm6, %v2122_v62, %v2135_v24  ;;  %v2264_v47 = vpack.c.bf16 %v5668_v38, %v5666_v20  ;;  %v2265_v31 = vpack.c.bf16 %v5685_v49, %v5674_v4  ;;  %v6362_v20 = vld [vmem:[#allocation61_spill] sm:$0xff]  ;;  %v6363_v4 = vld [vmem:[#allocation66_spill] sm:$0xff]  ;;  %v6364_v49 = vld [vmem:[#allocation67_spill] sm:$0xff] }
 0x3a4   :  { %v2130_v37 = vsel %vm1011_vm7, %v2115_v57, %v2129_v17  ;;  %v2137_v43 = vsel %vm1011_vm7, %v2123_v16, %v2136_v22  ;;  %v2258_v53 = vpack.c.bf16 %v5609_v1, %v5607_v5  ;;  %v6360_v5 = vld [vmem:[#allocation72_spill] sm:$0xff]  ;;  %v2260_v52 = vpack.c.bf16 %v6364_v49, %v6363_v4  ;;  %v6370_v16 = vld [vmem:[#allocation41_spill] sm:$0xff] }
 0x3a5   :  { %v2131_v6 = vsel %vm1013_vm8, %v2116_v2, %v2130_v37  ;;  %v2138_v45 = vsel %vm1013_vm8, %v2124_v39, %v2137_v43  ;;  %v6361_v1 = vld [vmem:[#allocation60_spill] sm:$0xff]  ;;  %v2261_v15 = vpack.c.bf16 %v6366_v41, %v6365_v40  ;;  %v6372_v43 = vld [vmem:[#allocation74_spill] sm:$0xff] }
 0x3a6   :  { %v2132_v48 = vsel %vm1015_vm9, %v2117_v60, %v2131_v6  ;;  %v2139_v23 = vsel %vm1015_vm9, %v2125_v18, %v2138_v45  ;;  %v2259_v38 = vpack.c.bf16 %v6362_v20, %v6361_v1  ;;  %v6369_v62 = vld [vmem:[#allocation40_spill] sm:$0xff]  ;;  %v6374_v1 = vld [vmem:[#allocation21_spill] sm:$0xff] }
 0x3a7   :  { %v2140_v51 = vpack.c.b16 %v2139_v23, %v2132_v48  ;;  %v6373_v23 = vld [vmem:[#allocation22_spill] sm:$0xff]  ;;  %v6376_v41 = vld [vmem:[#allocation24_spill] sm:$0xff] }
 0x3a9   :  { %2175 = vmatmul.mubr.bf16.vlgmr.msra.gmra.mrb[12].mxu0 %v2140_v51  ;;  %4147 = vmatmul.mubr.bf16.vlgmr.msra.gmra.mrb[24].mxu1 %v2140_v51 }
 0x3aa   :  { %4151 = vmatpush3.bf16.msra.mxu0 %v5344_v3  ;;  %4166 = vmatprep.mubr.bf16.mxu0 %v2258_v53 }
 0x3ab   :  { %4152 = vmatprep.subr.bf16.mxu0 %v5371_v7 }
 0x3ae   :  { %4153 = vmatpush3.bf16.msra.mxu0 %v5371_v7 }
 0x3af   :  { %4154 = vmatprep.subr.bf16.mxu0 %v5393_v35 }
 0x3b2   :  { %4155 = vmatpush3.bf16.msra.mxu0 %v5393_v35 }
 0x3b3   :  { %4156 = vmatprep.subr.bf16.mxu0 %v5401_v50 }
 0x3b6   :  { %4157 = vmatpush3.bf16.msra.mxu0 %v5401_v50 }
 0x3b7   :  { %4158 = vmatprep.subr.bf16.mxu0 %v5407_v0 }
 0x3ba   :  { %4159 = vmatpush3.bf16.msra.mxu0 %v5407_v0 }
 0x3bb   :  { %4160 = vmatprep.subr.bf16.mxu0 %v5413_v58 }
 0x3be   :  { %4161 = vmatpush3.bf16.msra.mxu0 %v5413_v58 }
 0x3bf   :  { %4162 = vmatprep.subr.bf16.mxu0 %v5419_v44 }
 0x3c2   :  { %4163 = vmatpush3.bf16.msra.mxu0 %v5419_v44 }
 0x3c3   :  { %4164 = vmatprep.subr.bf16.mxu0 %v6360_v5 }
 0x3c6   :  { %4165 = vmatpush3.bf16.msra.mxu0 %v6360_v5 }
 0x3c9   :  { %4167 = vmatmul.mubr.bf16.vlgmr.msra.gmra.mrb[16].mxu0 %v2259_v38 }
 0x3ca   :  { %4170 = vmatprep.mubr.bf16.mxu0 %v2260_v52  ;;  %v6375_v52 = vld [vmem:[#allocation37_spill] sm:$0xff] }
 0x3d1   :  { %4171 = vmatmul.mubr.bf16.gmra.mrb[20].mxu0 %v2261_v15 }
 0x3d2   :  { %4174 = vmatprep.mubr.bf16.mxu0 %v2262_v61 }
 0x3d9   :  { %4175 = vmatmul.mubr.bf16.gmra.mrb[24].mxu0 %v2263_v13 }
 0x3da   :  { %4178 = vmatprep.mubr.bf16.mxu0 %v2264_v47  ;;  %v6371_v47 = vld [vmem:[#allocation73_spill] sm:$0xff] }
 0x3e1   :  { %4179 = vmatmul.mubr.bf16.gmra.mrb[28].mxu0 %v2265_v31 }
 0x47c   :  { %v2176_v33 = vpop.f32.mrb[12].mxu0  ;;  %v2219_v27 = vpop.f32.mrb[24].mxu1 }
 0x47d   :  { %v2226_v46 = vadd.f32 %v2176_v33, %v6367_v28  ;;  %v2178_v42 = vpop.f32.mrb[13].mxu0  ;;  %v4148_v36 = vpop.f32.mrb[25].mxu1  ;;  %v2228_v60 = vadd.f32 %v2219_v27, %v6369_v62  ;;  %v6377_v27 = vld [vmem:[#allocation23_spill] sm:$0xff] }
 0x47e   :  { %v2180_v10 = vpop.f32.mrb[14].mxu0  ;;  %v2222_v30 = vpop.f32.mrb[26].mxu1  ;;  %v2227_v40 = vadd.f32 %v2178_v42, %v6375_v52 }
 0x47f   :  { %v3824_v57 = vmul.f32 -1.442695, %v2226_v46  ;;  %v2229_v9 = vadd.f32 %v2180_v10, %v6368_v11  ;;  %v5784_v2 = vpop.f32.mrb[15].mxu0  ;;  %v4149_v8 = vpop.f32.mrb[27].mxu1  ;;  %v2231_v19 = vadd.f32 %v2222_v30, %v6370_v16  ;;  %v6378_v10 = vld [vmem:[#allocation26_spill] sm:$0xff] }
 0x481   :  { %4404 = vpow2.f32 %v3824_v57  ;;  %v3825_v32 = vmul.f32 -1.442695, %v2229_v9  ;;  %v6379_v9 = vld [vmem:[#allocation25_spill] sm:$0xff] }
 0x483   :  { %4406 = vpow2.f32 %v3825_v32  ;;  %v3826_v32 = vmul.f32 -1.442695, %v2227_v40 }
 0x484   :  { %4408 = vtanh.f32 %v2228_v60 }
 0x485   :  { %4410 = vtanh.f32 %v2231_v19 }
 0x48b   :  { %v4405_v14 = vpop.eup %4404 }
 0x48c   :  { %v2238_v39 = vadd.f32 1.0, %v4405_v14 }
 0x48d   :  { %v4407_v18 = vpop.eup %4406 }
 0x48e   :  { %4412 = vrcp.f32 %v2238_v39  ;;  %v2239_v34 = vadd.f32 1.0, %v4407_v18  ;;  %v4409_v12 = vpop.eup %4408 }
 0x48f   :  { %v4411_v63 = vpop.eup %4410 }
 0x490   :  { %4414 = vrcp.f32 %v2239_v34  ;;  %v6380_v34 = vld [vmem:[#allocation28_spill] sm:$0xff] }
 0x498   :  { %v4413_v24 = vpop.eup %4412 }
 0x499   :  { %v5788_v61 = vmul.f32 %v4413_v24, %v4409_v12 }
 0x49a   :  { %v4415_v13 = vpop.eup %4414 }
 0x49b   :  { %v5790_v17 = vmul.f32 %v4415_v13, %v4411_v63 }
 0x49c   :  { %v4168_v22 = vpop.f32.mrb[16].mxu0 }
 0x49d   :  { %v2365_v31 = vadd.f32 %v4168_v22, %v6371_v47  ;;  %v2300_v37 = vpop.f32.mrb[17].mxu0  ;;  %v6381_v22 = vld [vmem:[#allocation27_spill] sm:$0xff] }
 0x49e   :  { %v2363_v6 = vadd.f32 %v2300_v37, %v6372_v43  ;;  %v4169_v45 = vpop.f32.mrb[18].mxu0 }
 0x49f   :  { %v3830_v48 = vmul.f32 -1.442695, %v2365_v31  ;;  %v2366_v53 = vadd.f32 %v4169_v45, %v6373_v23  ;;  %v2303_v51 = vpop.f32.mrb[19].mxu0 }
 0x4a0   :  { %v3828_v5 = vmul.f32 -1.442695, %v2363_v6  ;;  %v2364_v20 = vadd.f32 %v2303_v51, %v6374_v1  ;;  %v6382_v6 = vld [vmem:[#allocation30_spill] sm:$0xff] }
 0x4a1   :  { %4416 = vpow2.f32 %v3830_v48  ;;  %v3831_v38 = vmul.f32 -1.442695, %v2366_v53  ;;  %v6383_v53 = vld [vmem:[#allocation29_spill] sm:$0xff] }
 0x4a2   :  { %4418 = vpow2.f32 %v3828_v5  ;;  %v3829_v4 = vmul.f32 -1.442695, %v2364_v20 }
 0x4a3   :  { %4420 = vpow2.f32 %v3831_v38 }
 0x4a4   :  { %4422 = vpow2.f32 %v3829_v4  ;;  %v4172_v49 = vpop.f32.mrb[20].mxu0 }
 0x4a5   :  { %v2369_v15 = vadd.f32 %v4172_v49, %v6376_v41  ;;  %v2316_v33 = vpop.f32.mrb[21].mxu0  ;;  %v6384_v41 = vld [vmem:[#allocation32_spill] sm:$0xff] }
 0x4a6   :  { %v2367_v28 = vadd.f32 %v2316_v33, %v6377_v27  ;;  %v4173_v46 = vpop.f32.mrb[22].mxu0 }
 0x4a7   :  { %v3834_v36 = vmul.f32 -1.442695, %v2369_v15  ;;  %v2370_v30 = vadd.f32 %v4173_v46, %v6378_v10  ;;  %v2319_v57 = vpop.f32.mrb[23].mxu0 }
 0x4a8   :  { %v3832_v11 = vmul.f32 -1.442695, %v2367_v28  ;;  %v2368_v8 = vadd.f32 %v2319_v57, %v6379_v9  ;;  %v1968_v28 = vld [vmem:[#allocation2 + $0x28] sm:$0xff] }
 0x4a9   :  { %4424 = vpow2.f32 %v3834_v36  ;;  %v3835_v62 = vmul.f32 -1.442695, %v2370_v30  ;;  %v6385_v36 = vld [vmem:[#allocation31_spill] sm:$0xff] }
 0x4aa   :  { %4426 = vpow2.f32 %v3832_v11  ;;  %v3833_v60 = vmul.f32 -1.442695, %v2368_v8  ;;  %v1966_v11 = vld [vmem:[#allocation2 + $0x8] sm:$0xff] }
 0x4ab   :  { %v4417_v16 = vpop.eup %4416  ;;  %4428 = vpow2.f32 %v3835_v62 }
 0x4ac   :  { %v4419_v42 = vpop.eup %4418  ;;  %v2429_v19 = vadd.f32 1.0, %v4417_v16  ;;  %4430 = vpow2.f32 %v3833_v60  ;;  %v4176_v14 = vpop.f32.mrb[24].mxu0 }
 0x4ad   :  { %v4421_v39 = vpop.eup %4420  ;;  %4432 = vpow2.f32 %v3826_v32  ;;  %v2427_v18 = vadd.f32 1.0, %v4419_v42  ;;  %v2373_v12 = vadd.f32 %v4176_v14, %v6380_v34  ;;  %v2332_v63 = vpop.f32.mrb[25].mxu0  ;;  %v6386_v32 = vld [vmem:[#allocation34_spill] sm:$0xff]  ;;  %v6387_v14 = vld [vmem:[#allocation33_spill] sm:$0xff] }
 0x4ae   :  { %v4423_v24 = vpop.eup %4422  ;;  %4434 = vrcp.f32 %v2429_v19  ;;  %v2430_v13 = vadd.f32 1.0, %v4421_v39  ;;  %v2371_v47 = vadd.f32 %v2332_v63, %v6381_v22  ;;  %v4177_v31 = vpop.f32.mrb[26].mxu0  ;;  %v1969_v42 = vld [vmem:[#allocation2 + $0x38] sm:$0xff] }
 0x4af   :  { %4436 = vrcp.f32 %v2427_v18  ;;  %v2428_v37 = vadd.f32 1.0, %v4423_v24  ;;  %v3838_v43 = vmul.f32 -1.442695, %v2373_v12  ;;  %v2374_v45 = vadd.f32 %v4177_v31, %v6382_v6  ;;  %v2335_v48 = vpop.f32.mrb[27].mxu0  ;;  %v1967_v12 = vld [vmem:[#allocation2 + $0x18] sm:$0xff] }
 0x4b0   :  { %4438 = vrcp.f32 %v2430_v13  ;;  %v3836_v23 = vmul.f32 -1.442695, %v2371_v47  ;;  %v2372_v51 = vadd.f32 %v2335_v48, %v6383_v53 }
 0x4b1   :  { %4440 = vrcp.f32 %v2428_v37  ;;  %v3839_v5 = vmul.f32 -1.442695, %v2374_v45 }
 0x4b2   :  { %4442 = vpow2.f32 %v3838_v43  ;;  %v3837_v1 = vmul.f32 -1.442695, %v2372_v51 }
 0x4b3   :  { %v4425_v20 = vpop.eup %4424  ;;  %4444 = vpow2.f32 %v3836_v23 }
 0x4b4   :  { %v4427_v38 = vpop.eup %4426  ;;  %v2433_v4 = vadd.f32 1.0, %v4425_v20  ;;  %4446 = vpow2.f32 %v3839_v5  ;;  %v4180_v49 = vpop.f32.mrb[28].mxu0 }
 0x4b5   :  { %v4429_v52 = vpop.eup %4428  ;;  %v2431_v40 = vadd.f32 1.0, %v4427_v38  ;;  %4448 = vpow2.f32 %v3837_v1  ;;  %v2377_v15 = vadd.f32 %v4180_v49, %v6384_v41  ;;  %v2348_v33 = vpop.f32.mrb[29].mxu0  ;;  %v1972_v38 = vld [vmem:[#allocation2 + $0x68] sm:$0xff] }
 0x4b6   :  { %v4431_v27 = vpop.eup %4430  ;;  %4450 = vrcp.f32 %v2433_v4  ;;  %v2434_v46 = vadd.f32 1.0, %v4429_v52  ;;  %v2375_v10 = vadd.f32 %v2348_v33, %v6385_v36  ;;  %v4181_v30 = vpop.f32.mrb[30].mxu0  ;;  %v1970_v41 = vld [vmem:[#allocation2 + $0x48] sm:$0xff] }
 0x4b7   :  { %v5807_v57 = vpop.eup %4432  ;;  %4452 = vrcp.f32 %v2431_v40  ;;  %v2432_v9 = vadd.f32 1.0, %v4431_v27  ;;  %v3842_v8 = vmul.f32 -1.442695, %v2377_v15  ;;  %v2378_v62 = vadd.f32 %v4181_v30, %v6386_v32  ;;  %v2351_v60 = vpop.f32.mrb[31].mxu0 }
 0x4b8   :  { %v4435_v16 = vpop.eup %4434  ;;  %4454 = vrcp.f32 %v2434_v46  ;;  %v3840_v19 = vmul.f32 -1.442695, %v2375_v10  ;;  %v2376_v39 = vadd.f32 %v2351_v60, %v6387_v14  ;;  %v1973_v46 = vld [vmem:[#allocation2 + $0x78] sm:$0xff] }
 0x4b9   :  { %v4437_v18 = vpop.eup %4436  ;;  %v2477_v34 = vmul.f32 %v4435_v16, %v1968_v28  ;;  %4456 = vrcp.f32 %v2432_v9  ;;  %v3843_v63 = vmul.f32 -1.442695, %v2378_v62 }
 0x4ba   :  { %v4439_v24 = vpop.eup %4438  ;;  %v2475_v13 = vmul.f32 %v4437_v18, %v1966_v11  ;;  %4458 = vpow2.f32 %v3842_v8  ;;  %v3841_v22 = vmul.f32 -1.442695, %v2376_v39  ;;  %v1971_v8 = vld [vmem:[#allocation2 + $0x58] sm:$0xff] }
 0x4bb   :  { %v4441_v47 = vpop.eup %4440  ;;  %v2503_v31 = vrot.slane %v2477_v34, 4  ;;  %v2478_v37 = vmul.f32 %v4439_v24, %v1969_v42  ;;  %4460 = vpow2.f32 %v3840_v19 }
 0x4bc   :  { %v4443_v43 = vpop.eup %4442  ;;  %v2491_v6 = vrot.slane %v2475_v13, 4  ;;  %v2476_v45 = vmul.f32 %v4441_v47, %v1967_v12  ;;  %4462 = vpow2.f32 %v3843_v63 }
 0x4bd   :  { %v4445_v48 = vpop.eup %4444  ;;  %v2504_v23 = vadd.f32 %v2503_v31, %v2477_v34  ;;  %v2509_v53 = vrot.slane %v2478_v37, 4  ;;  %v2437_v51 = vadd.f32 1.0, %v4443_v43  ;;  %4464 = vpow2.f32 %v3841_v22 }
 0x4be   :  { %v4447_v5 = vpop.eup %4446  ;;  %v2492_v1 = vadd.f32 %v2491_v6, %v2475_v13  ;;  %v2497_v20 = vrot.slane %v2476_v45, 4  ;;  %v2435_v4 = vadd.f32 1.0, %v4445_v48  ;;  %v5812_v22 = vadd.f32 1.0, %v5807_v57 }
 0x4bf   :  { %v4449_v49 = vpop.eup %4448  ;;  %v2505_v52 = vrot.slane %v2504_v23, 2  ;;  %v2510_v40 = vadd.f32 %v2509_v53, %v2478_v37  ;;  %4466 = vrcp.f32 %v2437_v51  ;;  %v2438_v15 = vadd.f32 1.0, %v4447_v5 }
 0x4c0   :  { %v4451_v33 = vpop.eup %4450  ;;  %v2493_v27 = vrot.slane %v2492_v1, 2  ;;  %v2498_v28 = vadd.f32 %v2497_v20, %v2476_v45  ;;  %4468 = vrcp.f32 %v2435_v4  ;;  %v2436_v36 = vadd.f32 1.0, %v4449_v49  ;;  %v1976_v20 = vld [vmem:[#allocation2 + $0xa8] sm:$0xff] }
 0x4c1   :  { %v4453_v10 = vpop.eup %4452  ;;  %v2506_v30 = vadd.f32 %v2505_v52, %v2504_v23  ;;  %v2511_v11 = vrot.slane %v2510_v40, 2  ;;  %v2481_v9 = vmul.f32 %v4451_v33, %v1972_v38  ;;  %4470 = vrcp.f32 %v2438_v15 }
 0x4c2   :  { %v4455_v32 = vpop.eup %4454  ;;  %v2494_v62 = vadd.f32 %v2493_v27, %v2492_v1  ;;  %v2499_v60 = vrot.slane %v2498_v28, 2  ;;  %v2479_v16 = vmul.f32 %v4453_v10, %v1970_v41  ;;  %4472 = vrcp.f32 %v2436_v36  ;;  %v1974_v41 = vld [vmem:[#allocation2 + $0x88] sm:$0xff] }
 0x4c3   :  { %v4457_v42 = vpop.eup %4456  ;;  %v2507_v19 = vrot.slane %v2506_v30, 1  ;;  %v2512_v14 = vadd.f32 %v2511_v11, %v2510_v40  ;;  %v2527_v39 = vrot.slane %v2481_v9, 4  ;;  %v2482_v18 = vmul.f32 %v4455_v32, %v1973_v46 }
 0x4c4   :  { %v4459_v34 = vpop.eup %4458  ;;  %v2495_v12 = vrot.slane %v2494_v62, 1  ;;  %v2500_v63 = vadd.f32 %v2499_v60, %v2498_v28  ;;  %v2515_v24 = vrot.slane %v2479_v16, 4  ;;  %v2480_v13 = vmul.f32 %v4457_v42, %v1971_v8  ;;  %v1975_v42 = vld [vmem:[#allocation2 + $0x98] sm:$0xff] }
 0x4c5   :  { %v2513_v47 = vrot.slane %v2512_v14, 1  ;;  %v2528_v31 = vadd.f32 %v2527_v39, %v2481_v9  ;;  %v2533_v37 = vrot.slane %v2482_v18, 4  ;;  %v4461_v43 = vpop.eup %4460  ;;  %v2508_v6 = vadd.f32 %v2507_v19, %v2506_v30  ;;  %v1977_v9 = vld [vmem:[#allocation2 + $0xb8] sm:$0xff] }
 0x4c6   :  { %v2501_v45 = vrot.slane %v2500_v63, 1  ;;  %v2516_v48 = vadd.f32 %v2515_v24, %v2479_v16  ;;  %v2521_v23 = vrot.slane %v2480_v13, 4  ;;  %v4463_v53 = vpop.eup %4462  ;;  %v2496_v51 = vadd.f32 %v2495_v12, %v2494_v62 }
 0x4c7   :  { %v2529_v5 = vrot.slane %v2528_v31, 2  ;;  %v2534_v1 = vadd.f32 %v2533_v37, %v2482_v18  ;;  %v2441_v38 = vadd.f32 1.0, %v4459_v34  ;;  %v4465_v4 = vpop.eup %4464  ;;  %v2514_v49 = vadd.f32 %v2513_v47, %v2512_v14 }
 0x4c8   :  { %v2502_v52 = vadd.f32 %v2501_v45, %v2500_v63  ;;  %v2517_v40 = vrot.slane %v2516_v48, 2  ;;  %v2522_v57 = vadd.f32 %v2521_v23, %v2480_v13  ;;  %v2439_v28 = vadd.f32 1.0, %v4461_v43 }
 0x4c9   :  { %v4467_v15 = vpop.eup %4466  ;;  %v2530_v33 = vadd.f32 %v2529_v5, %v2528_v31  ;;  %v2535_v27 = vrot.slane %v2534_v1, 2  ;;  %4474 = vrcp.f32 %v2441_v38  ;;  %v2442_v13 = vadd.f32 1.0, %v4463_v53 }
 0x4ca   :  { %v4469_v46 = vpop.eup %4468  ;;  %v2605_v36 = vsel %vm1003_vm3, %v2502_v52, %v2496_v51  ;;  %v2518_v10 = vadd.f32 %v2517_v40, %v2516_v48  ;;  %v2523_v30 = vrot.slane %v2522_v57, 2  ;;  %v2485_v11 = vmul.f32 %v4467_v15, %v1976_v20 }
 0x4cb   :  { %v4471_v8 = vpop.eup %4470  ;;  %v2606_v32 = vsel %vm1005_vm4, %v2508_v6, %v2605_v36  ;;  %v2531_v62 = vrot.slane %v2530_v33, 1  ;;  %v2536_v60 = vadd.f32 %v2535_v27, %v2534_v1  ;;  %v2483_v16 = vmul.f32 %v4469_v46, %v1974_v41 }
 0x4cc   :  { %v4473_v19 = vpop.eup %4472  ;;  %v2519_v14 = vrot.slane %v2518_v10, 1  ;;  %v2607_v39 = vsel %vm1007_vm5, %v2514_v49, %v2606_v32  ;;  %v2524_v18 = vadd.f32 %v2523_v30, %v2522_v57  ;;  %v2551_v34 = vrot.slane %v2485_v11, 4  ;;  %v1980_v49 = vld [vmem:[#allocation2 + $0xe8] sm:$0xff] }
 0x4cd   :  { %v2537_v12 = vrot.slane %v2536_v60, 1  ;;  %v2539_v63 = vrot.slane %v2483_v16, 4  ;;  %v2486_v24 = vmul.f32 %v4471_v8, %v1977_v9  ;;  %v2484_v43 = vmul.f32 %v4473_v19, %v1975_v42  ;;  %v1978_v19 = vld [vmem:[#allocation2 + $0xc8] sm:$0xff] }
 0x4ce   :  { %v2520_v47 = vadd.f32 %v2519_v14, %v2518_v10  ;;  %v2525_v31 = vrot.slane %v2524_v18, 1  ;;  %v2552_v37 = vadd.f32 %v2551_v34, %v2485_v11  ;;  %v2532_v45 = vadd.f32 %v2531_v62, %v2530_v33  ;;  %v6389_v62 = vld [vmem:[#allocation20_spill] sm:$0xff]  ;;  %v1981_v34 = vld [vmem:[#allocation2 + $0xf8] sm:$0xff] }
 0x4cf   :  { %v2540_v6 = vadd.f32 %v2539_v63, %v2483_v16  ;;  %v2557_v48 = vrot.slane %v2486_v24, 4  ;;  %4476 = vrcp.f32 %v2439_v28  ;;  %v2545_v1 = vrot.slane %v2484_v43, 4 }
 0x4d0   :  { %v2608_v23 = vsel %vm1009_vm6, %v2520_v47, %v2607_v39  ;;  %v2526_v51 = vadd.f32 %v2525_v31, %v2524_v18  ;;  %v2553_v5 = vrot.slane %v2552_v37, 2  ;;  %4478 = vrcp.f32 %v2442_v13 }
 0x4d1   :  { %v2541_v20 = vrot.slane %v2540_v6, 2  ;;  %v2558_v38 = vadd.f32 %v2557_v48, %v2486_v24  ;;  %v2440_v52 = vadd.f32 1.0, %v4465_v4  ;;  %v2538_v40 = vadd.f32 %v2537_v12, %v2536_v60  ;;  %v6388_v4 = vld [vmem:[#allocation39_spill] sm:$0xff] }
 0x4d2   :  { %v2609_v53 = vsel %vm1011_vm7, %v2526_v51, %v2608_v23  ;;  %v2554_v57 = vadd.f32 %v2553_v5, %v2552_v37  ;;  %v2546_v41 = vadd.f32 %v2545_v1, %v2484_v43  ;;  %v2230_v9 = vadd.f32 %v5784_v2, %v6388_v4 }
 0x4d3   :  { %v4475_v15 = vpop.eup %4474  ;;  %v2610_v33 = vsel %vm1013_vm8, %v2532_v45, %v2609_v53  ;;  %v2542_v27 = vadd.f32 %v2541_v20, %v2540_v6  ;;  %v2559_v28 = vrot.slane %v2558_v38, 2  ;;  %4480 = vrcp.f32 %v2440_v52  ;;  %v1979_v45 = vld [vmem:[#allocation2 + $0xd8] sm:$0xff] }
 0x4d4   :  { %v2611_v46 = vsel %vm1015_vm9, %v2538_v40, %v2610_v33  ;;  %v2547_v36 = vrot.slane %v2546_v41, 2  ;;  %v2489_v10 = vmul.f32 %v4475_v15, %v1980_v49  ;;  %4482 = vrcp.f32 %v5812_v22 }
 0x4d5   :  { %v2621_v30 = vadd.f32 %v2611_v46, %v5788_v61  ;;  %v2560_v11 = vadd.f32 %v2559_v28, %v2558_v38  ;;  %v2543_v8 = vrot.slane %v2542_v27, 1  ;;  %v2555_v16 = vrot.slane %v2554_v57, 1 }
 0x4d6   :  { %v2548_v32 = vadd.f32 %v2547_v36, %v2546_v41  ;;  %v2575_v42 = vrot.slane %v2489_v10, 4  ;;  %v3827_v24 = vmul.f32 -1.442695, %v2230_v9 }
 0x4d7   :  { %4484 = vtanh.f32 %v2621_v30  ;;  %v2631_v60 = vmul.f32 %v6389_v62, %v2621_v30  ;;  %v2561_v14 = vrot.slane %v2560_v11, 1  ;;  %v2544_v61 = vadd.f32 %v2543_v8, %v2542_v27 }
 0x4d8   :  { %v2549_v39 = vrot.slane %v2548_v32, 1  ;;  %v2556_v13 = vadd.f32 %v2555_v16, %v2554_v57  ;;  %v2576_v2 = vadd.f32 %v2575_v42, %v2489_v10  ;;  %4486 = vpow2.f32 %v3827_v24 }
 0x4d9   :  { %v4477_v18 = vpop.eup %4476  ;;  %2633 = vst [vmem:[#allocation14 + $0x8] sm:$0xff] %v2631_v60  ;;  %v2562_v47 = vadd.f32 %v2561_v14, %v2560_v11 }
 0x4da   :  { %v2550_v12 = vadd.f32 %v2549_v39, %v2548_v32  ;;  %v2487_v63 = vmul.f32 %v4477_v18, %v1978_v19  ;;  %v4479_v22 = vpop.eup %4478  ;;  %v2577_v38 = vrot.slane %v2576_v2, 2 }
 0x4db   :  { %v2490_v43 = vmul.f32 %v4479_v22, %v1981_v34 }
 0x4dc   :  { %v2612_v31 = vsel %vm1003_vm3, %v2550_v12, %v2544_v61  ;;  %v2563_v37 = vrot.slane %v2487_v63, 4  ;;  %v2578_v28 = vadd.f32 %v2577_v38, %v2576_v2 }
 0x4dd   :  { %v4481_v6 = vpop.eup %4480  ;;  %v2613_v48 = vsel %vm1005_vm4, %v2556_v13, %v2612_v31  ;;  %v2581_v5 = vrot.slane %v2490_v43, 4 }
 0x4de   :  { %v2564_v23 = vadd.f32 %v2563_v37, %v2487_v63  ;;  %v2614_v51 = vsel %vm1007_vm5, %v2562_v47, %v2613_v48  ;;  %v2488_v1 = vmul.f32 %v4481_v6, %v1979_v45  ;;  %v4483_v20 = vpop.eup %4482  ;;  %v2579_v4 = vrot.slane %v2578_v28, 1 }
 0x4df   :  { %v2582_v52 = vadd.f32 %v2581_v5, %v2490_v43 }
 0x4e0   :  { %v2565_v49 = vrot.slane %v2564_v23, 2  ;;  %v2569_v53 = vrot.slane %v2488_v1, 4  ;;  %v2580_v42 = vadd.f32 %v2579_v4, %v2578_v28 }
 0x4e1   :  { %v4485_v40 = vpop.eup %4484  ;;  %v2583_v15 = vrot.slane %v2582_v52, 2 }
 0x4e2   :  { %v2625_v57 = vmul.f32 %v4485_v40, %v4483_v20  ;;  %v2566_v41 = vadd.f32 %v2565_v49, %v2564_v23  ;;  %v2570_v33 = vadd.f32 %v2569_v53, %v2488_v1  ;;  %v4487_v60 = vpop.eup %4486 }
 0x4e3   :  { %v2584_v36 = vadd.f32 %v2583_v15, %v2582_v52  ;;  %v2251_v19 = vadd.f32 1.0, %v4487_v60 }
 0x4e4   :  { %v2627_v27 = vmul.f32 %v6389_v62, %v2625_v57  ;;  %v2567_v46 = vrot.slane %v2566_v41, 1  ;;  %v2571_v10 = vrot.slane %v2570_v33, 2 }
 0x4e5   :  { %v2585_v8 = vrot.slane %v2584_v36, 1  ;;  %4488 = vrcp.f32 %v2251_v19 }
 0x4e6   :  { %2629 = vst [vmem:[#allocation14] sm:$0xff] %v2627_v27  ;;  %v2568_v30 = vadd.f32 %v2567_v46, %v2566_v41  ;;  %v2572_v11 = vadd.f32 %v2571_v10, %v2570_v33 }
 0x4e7   :  { %v2586_v14 = vadd.f32 %v2585_v8, %v2584_v36 }
 0x4e8   :  { %v2615_v9 = vsel %vm1009_vm6, %v2568_v30, %v2614_v51  ;;  %v2573_v32 = vrot.slane %v2572_v11, 1 }
 0x4ea   :  { %v2574_v16 = vadd.f32 %v2573_v32, %v2572_v11 }
 0x4ec   :  { %v2616_v39 = vsel %vm1011_vm7, %v2574_v16, %v2615_v9 }
 0x4ed   :  { %v2617_v62 = vsel %vm1013_vm8, %v2580_v42, %v2616_v39 }
 0x4ee   :  { %v2618_v18 = vsel %vm1015_vm9, %v2586_v14, %v2617_v62 }
 0x4ef   :  { %v2622_v34 = vadd.f32 %v2618_v18, %v5790_v17  ;;  %v4489_v61 = vpop.eup %4488 }
 0x4f1   :  { %4490 = vtanh.f32 %v2622_v34  ;;  %2634 = vst [vmem:[#allocation14 + $0x18] sm:$0xff] %v2622_v34 }
 0x4fb   :  { %v4491_v12 = vpop.eup %4490 }
 0x4fc   :  { %v2626_v63 = vmul.f32 %v4491_v12, %v4489_v61 }
 0x4fe   :  { %2630 = vst [vmem:[#allocation14 + $0x10] sm:$0xff] %v2626_v63 }
 0x4ff LB: > { %s5841_s28 = sshll.u32 %s4754_s7, 3  ;;  %s2640_s7 = sadd.s32 1, %s4754_s7   ;;  %s4754_s7 = sphi %s5835_s7, %s2640_s7  }
 0x500   : > { %s2642_s9 = sld [smem:[#allocation3 + %s5841_s28]]  ;;  %s2652_s0 = sshra.s32 %s5841_s28, 3 }
 0x501   : > { %s3930_s29 = sshll.u32 %s2652_s0, 4  ;;  %s2663_s11 = sadd.s32 1, %s5841_s28 }
 0x502   : > { %s2664_s3 = sld [smem:[#allocation3 + %s2663_s11]]  ;;  %s2674_s15 = sshra.s32 %s2663_s11, 3 }
 0x503   : > { %s2677_s6 = sand.u32 7, %s2663_s11  ;;  %s3932_s4 = sshll.u32 %s2674_s15, 4 }
 0x504   : > { %s2684_s2 = sadd.s32 2, %s5841_s28  ;;  %s2680_s16 = sadd.s32 %s3932_s4, %s2677_s6 }
 0x505   : > { %s2685_s24 = sld [smem:[#allocation3 + %s2684_s2]]  ;;  %s2695_s22 = sshra.s32 %s2684_s2, 3 }
 0x506   : > { %s2643_s12 = sshra.s32 %s2642_s9, 3  ;;  %s2646_s14 = sand.u32 7, %s2642_s9 }
 0x507   : > { %s3929_s13 = sshll.u32 %s2643_s12, 4  ;;  %s2656_s20 = scalar_lea.vmem [#allocation2], %s3930_s29 }
 0x508   : > { %s2649_s17 = sadd.s32 %s3929_s13, %s2646_s14  ;;  %s2665_s18 = sshra.s32 %s2664_s3, 3 }
 0x509   : > { %s2668_s19 = sand.u32 7, %s2664_s3  ;;  %s2650_s21 = scalar_lea.vmem [#allocation14], %s2649_s17 }
 0x50a   : > { %v2651_v17 = vld [vmem:[%s2650_s21] ss:$8 sm:$0x3]  ;;  %s3931_s1 = sshll.u32 %s2665_s18, 4  ;;  %s2698_s30 = sand.u32 7, %s2684_s2 }
 0x50b   : > { %2661 = vst.msk [vmem:[%s2656_s20] ss:$8 sm:$0x3] %vm5103_vm2, %v2651_v17  ;;  %s2671_s23 = sadd.s32 %s3931_s1, %s2668_s19  ;;  %s2686_s5 = sshra.s32 %s2685_s24, 3 }
 0x50c   : > { %s2689_s25 = sand.u32 7, %s2685_s24  ;;  %s2672_s26 = scalar_lea.vmem [#allocation14], %s2671_s23 }
 0x50d   : > { %v2673_v24 = vld [vmem:[%s2672_s26] ss:$8 sm:$0x3]  ;;  %s3933_s27 = sshll.u32 %s2686_s5, 4  ;;  %s2681_s10 = scalar_lea.vmem [#allocation2], %s2680_s16 }
 0x50e   : > { %2682 = vst.msk [vmem:[%s2681_s10] ss:$8 sm:$0x3] %vm5103_vm2, %v2673_v24  ;;  %s2692_s9 = sadd.s32 %s3933_s27, %s2689_s25  ;;  %s3934_s0 = sshll.u32 %s2695_s22, 4 }
 0x50f   : > { %s2701_s11 = sadd.s32 %s3934_s0, %s2698_s30  ;;  %s2693_s29 = scalar_lea.vmem [#allocation14], %s2692_s9 }
 0x510   : > { %v2694_v13 = vld [vmem:[%s2693_s29] ss:$8 sm:$0x3]  ;;  %s2705_s3 = sadd.s32 3, %s5841_s28  ;;  %s2702_s15 = scalar_lea.vmem [#allocation2], %s2701_s11 }
 0x511   : > { %2703 = vst.msk [vmem:[%s2702_s15] ss:$8 sm:$0x3] %vm5103_vm2, %v2694_v13  ;;  %s2706_s6 = sld [smem:[#allocation3 + %s2705_s3]]  ;;  %s2716_s4 = sshra.s32 %s2705_s3, 3 }
 0x512   : > { %s2719_s24 = sand.u32 7, %s2705_s3  ;;  %s3936_s2 = sshll.u32 %s2716_s4, 4 }
 0x513   : > { %s2722_s12 = sadd.s32 %s3936_s2, %s2719_s24  ;;  %s2726_s16 = sadd.s32 4, %s5841_s28 }
 0x514   : > { %s2727_s14 = sld [smem:[#allocation3 + %s2726_s16]]  ;;  %s2737_s13 = sshra.s32 %s2726_s16, 3 }
 0x515   : > { %s2740_s17 = sand.u32 7, %s2726_s16  ;;  %s3938_s18 = sshll.u32 %s2737_s13, 4 }
 0x516   : > { %s2747_s19 = sadd.s32 5, %s5841_s28  ;;  %s2743_s20 = sadd.s32 %s3938_s18, %s2740_s17 }
 0x517   : > { %s2707_s21 = sshra.s32 %s2706_s6, 3  ;;  %s2710_s1 = sand.u32 7, %s2706_s6 }
 0x518   : > { %s3935_s22 = sshll.u32 %s2707_s21, 4  ;;  %s2723_s30 = scalar_lea.vmem [#allocation2], %s2722_s12 }
 0x519   : > { %s2713_s23 = sadd.s32 %s3935_s22, %s2710_s1  ;;  %s2748_s9 = sld [smem:[#allocation3 + %s2747_s19]] }
 0x51a   : > { %s2728_s5 = sshra.s32 %s2727_s14, 3  ;;  %s2714_s25 = scalar_lea.vmem [#allocation14], %s2713_s23 }
 0x51b   : > { %v2715_v2 = vld [vmem:[%s2714_s25] ss:$8 sm:$0x3]  ;;  %s2731_s26 = sand.u32 7, %s2727_s14  ;;  %s3937_s27 = sshll.u32 %s2728_s5, 4 }
 0x51c   : > { %2724 = vst.msk [vmem:[%s2723_s30] ss:$8 sm:$0x3] %vm5103_vm2, %v2715_v2  ;;  %s2734_s10 = sadd.s32 %s3937_s27, %s2731_s26  ;;  %s2758_s0 = sshra.s32 %s2747_s19, 3 }
 0x51d   : > { %s2735_s11 = scalar_lea.vmem [#allocation14], %s2734_s10  ;;  %s2761_s29 = sand.u32 7, %s2747_s19 }
 0x51e   : > { %v2736_v47 = vld [vmem:[%s2735_s11] ss:$8 sm:$0x3]  ;;  %s3940_s3 = sshll.u32 %s2758_s0, 4  ;;  %s2744_s15 = scalar_lea.vmem [#allocation2], %s2743_s20 }
 0x51f   : > { %2745 = vst.msk [vmem:[%s2744_s15] ss:$8 sm:$0x3] %vm5103_vm2, %v2736_v47  ;;  %s2764_s6 = sadd.s32 %s3940_s3, %s2761_s29  ;;  %s2768_s4 = sadd.s32 6, %s5841_s28 }
 0x520   : > { %s2769_s24 = sld [smem:[#allocation3 + %s2768_s4]]  ;;  %s2779_s2 = sshra.s32 %s2768_s4, 3 }
 0x521   : > { %s2782_s12 = sand.u32 7, %s2768_s4  ;;  %s2749_s16 = sshra.s32 %s2748_s9, 3 }
 0x522   : > { %s2752_s14 = sand.u32 7, %s2748_s9  ;;  %s3939_s13 = sshll.u32 %s2749_s16, 4 }
 0x523   : > { %s3942_s17 = sshll.u32 %s2779_s2, 4  ;;  %s2755_s18 = sadd.s32 %s3939_s13, %s2752_s14 }
 0x524   : > { %s2785_s21 = sadd.s32 %s3942_s17, %s2782_s12  ;;  %s2756_s1 = scalar_lea.vmem [#allocation14], %s2755_s18 }
 0x525   : > { %v2757_v31 = vld [vmem:[%s2756_s1] ss:$8 sm:$0x3]  ;;  %s2765_s20 = scalar_lea.vmem [#allocation2], %s2764_s6  ;;  %s2789_s5 = sadd.s32 7, %s5841_s28 }
 0x526   : > { %s2770_s19 = sshra.s32 %s2769_s24, 3  ;;  %s2773_s22 = sand.u32 7, %s2769_s24  ;;  %2766 = vst.msk [vmem:[%s2765_s20] ss:$8 sm:$0x3] %vm5103_vm2, %v2757_v31 }
 0x527   : > { %s3941_s23 = sshll.u32 %s2770_s19, 4  ;;  %s2790_s26 = sld [smem:[#allocation3 + %s2789_s5]] }
 0x528   : > { %s2776_s25 = sadd.s32 %s3941_s23, %s2773_s22  ;;  %s2800_s27 = sshra.s32 %s2789_s5, 3 }
 0x529   : > { %s2777_s30 = scalar_lea.vmem [#allocation14], %s2776_s25  ;;  %s2803_s10 = sand.u32 7, %s2789_s5 }
 0x52a   : > { %v2778_v37 = vld [vmem:[%s2777_s30] ss:$8 sm:$0x3]  ;;  %s3944_s9 = sshll.u32 %s2800_s27, 4  ;;  %s2786_s0 = scalar_lea.vmem [#allocation2], %s2785_s21 }
 0x52b   : > { %2787 = vst.msk [vmem:[%s2786_s0] ss:$8 sm:$0x3] %vm5103_vm2, %v2778_v37  ;;  %s2806_s11 = sadd.s32 %s3944_s9, %s2803_s10  ;;  %p2637_p3 = scmp.ge.s32.totalorder %s2640_s7, 16  }
 0x52c   : > { %s2807_s24 = scalar_lea.vmem [#allocation2], %s2806_s11  ;;  %v6391_v45 = vld [vmem:[#allocation51_spill] sm:$0xff] (%p2637_p3)  ;;  %v6392_v6 = vmov (%p2637_p3), 0.0   ;;  %v6394_v5 = vld [vmem:[#allocation52_spill] sm:$0xff] (%p2637_p3)  ;;  %v6399_v57 = vld [vmem:[#allocation53_spill] sm:$0xff] (%p2637_p3)  ;;  %v6402_v46 = vmov (%p2637_p3), 0  }
 0x52d   : > { %s2791_s29 = sshra.s32 %s2790_s26, 3  ;;  %s2794_s3 = sand.u32 7, %s2790_s26  ;;  %3002 = vmatprep.subr.bf16.mxu1 (%p2637_p3), %v6391_v45  ;;  %4182 = vmatprep.subr.bf16.mxu0 (%p2637_p3), %v6392_v6  ;;  %v6395_v1 = vld [vmem:[#allocation59_spill] sm:$0xff] (%p2637_p3)  ;;  %v6403_v60 = vld [vmem:[#allocation54_spill] sm:$0xff] (%p2637_p3)  ;;  %v6404_v16 = vld [vmem:[#allocation65_spill] sm:$0xff] (%p2637_p3) }
 0x52e   : > { %s3943_s15 = sshll.u32 %s2791_s29, 4  ;;  %2639 = sbr.rel (!%p2637_p3) target bundleno = 1279 (0x4ff), region = 167  ;;  %3003 = vmatpush1.bf16.msra.mxu1 (%p2637_p3), %v6394_v5  ;;  %4183 = vmatpush3.bf16.msra.mxu0 (%p2637_p3), %v6395_v1  ;;  %v6405_v62 = vld [vmem:[#allocation55_spill] sm:$0xff] (%p2637_p3)  ;;  %v6406_v37 = vld [vmem:[#allocation56_spill] sm:$0xff] (%p2637_p3) }
 0x52f   : > { %s2797_s6 = sadd.s32 %s3943_s15, %s2794_s3  ;;  %3004 = vmatprep.subr.bf16.mxu1 (%p2637_p3), %v6399_v57  ;;  %4184 = vmatprep.subr.bf16.mxu0 (%p2637_p3), %v6392_v6  ;;  %s4770_s7 = smov (%p2637_p3), [#allocation14]  }
 0x530   : > { %s2798_s4 = scalar_lea.vmem [#allocation14], %s2797_s6  ;;  %3034 = vmatprep.mubr.bf16.mxu1 (%p2637_p3), %v6402_v46  ;;  %4198 = vmatprep.mubr.msk.bf16.mxu0 (%p2637_p3), %vm4768_vm0, %v6392_v6  ;;  %s3500_s28 = sshll.u32 (%p2637_p3), %s4770_s7, 4  ;;  %s3501_s28 = int_to_ptr.vmem [resolvable:$true] %s3500_s28 }
 0x531   : > { %v2799_v43 = vld [vmem:[%s2798_s4] ss:$8 sm:$0x3]  ;;  %s4700_s2 = scalar_lea.vmem (%p2637_p3), %s3501_s28, 512  ;;  %p4705_p5 = scmp.lt.s32.totalorder (%p2637_p3), %s3501_s28, %s3501_s28 }
 0x532   : > { %2808 = vst.msk [vmem:[%s2807_s24] ss:$8 sm:$0x3] %vm5103_vm2, %v2799_v43  ;;  %3005 = vmatpush1.bf16.msra.mxu1 (%p2637_p3), %v6403_v60  ;;  %4185 = vmatpush3.bf16.msra.mxu0 (%p2637_p3), %v6404_v16  ;;  %v6407_v43 = vld [vmem:[#allocation69_spill] sm:$0xff] (%p2637_p3)  ;;  %p4701_p4 = scmp.ne.s32.totalorder (%p2637_p3), %s3501_s28, %s4700_s2  ;;  %p4706_p6 = scmp.lt.s32.totalorder (%p2637_p3), %s4700_s2, %s4700_s2 }
 0x533   :  { %3006 = vmatprep.subr.bf16.mxu1 (%p2637_p3), %v6405_v62  ;;  %4186 = vmatprep.subr.bf16.mxu0 (%p2637_p3), %v6392_v6 }
 0x534   :  { %p4707_p7 = por (%p2637_p3), %p4706_p6, %p4705_p5 }
 0x536   :  { %3007 = vmatpush1.bf16.msra.mxu1 %v6406_v37  ;;  %4187 = vmatpush3.bf16.msra.mxu0 %v6407_v43  ;;  %p4708_p8 = pnand %p4707_p7, %p4701_p4 }
 0x537   :  { %4188 = vmatprep.subr.bf16.mxu0 %v6392_v6 }
 0x539   :  { %v5873_v48 = vld [vmem:[#allocation2] sm:$0xff]  ;;  %v5875_v23 = vld [vmem:[#allocation2 + $0x10] sm:$0xff] }
 0x53a   :  { %v5877_v51 = vld [vmem:[#allocation2 + $0x20] sm:$0xff]  ;;  %v5881_v20 = vld [vmem:[#allocation2 + $0x30] sm:$0xff]  ;;  %v2842_v52 = vrot.slane %v5873_v48, 4  ;;  %v2848_v40 = vrot.slane %v5875_v23, 4 }
 0x53b   :  { %6393 = vst [vmem:[#allocation35_spill] sm:$0xff] %v5877_v51  ;;  %6396 = vst [vmem:[#allocation42_spill] sm:$0xff] %v5881_v20  ;;  %v5883_v38 = vld [vmem:[#allocation2 + $0x40] sm:$0xff]  ;;  %v5885_v49 = vld [vmem:[#allocation2 + $0x50] sm:$0xff]  ;;  %v2854_v53 = vrot.slane %v5877_v51, 4  ;;  %v2860_v33 = vrot.slane %v5881_v20, 4 }
 0x53c   :  { %6397 = vst [vmem:[#allocation44_spill] sm:$0xff] %v5883_v38  ;;  %6398 = vst [vmem:[#allocation43_spill] sm:$0xff] %v5885_v49  ;;  %v5892_v41 = vld [vmem:[#allocation2 + $0x60] sm:$0xff]  ;;  %v5894_v15 = vld [vmem:[#allocation2 + $0x70] sm:$0xff]  ;;  %v2866_v27 = vrot.slane %v5883_v38, 4  ;;  %v2872_v28 = vrot.slane %v5885_v49, 4  ;;  %v2843_v36 = vadd.f32 %v2842_v52, %v5873_v48  ;;  %v2849_v10 = vadd.f32 %v2848_v40, %v5875_v23 }
 0x53d   :  { %6400 = vst [vmem:[#allocation46_spill] sm:$0xff] %v5892_v41  ;;  %6401 = vst [vmem:[#allocation45_spill] sm:$0xff] %v5894_v15  ;;  %v2855_v30 = vadd.f32 %v2854_v53, %v5877_v51  ;;  %v2878_v11 = vrot.slane %v5892_v41, 4  ;;  %v2861_v4 = vadd.f32 %v2860_v33, %v5881_v20  ;;  %v2884_v32 = vrot.slane %v5894_v15, 4  ;;  %v6408_v40 = vld [vmem:[#allocation57_spill] sm:$0xff]  ;;  %v5922_v53 = vld [vmem:[#allocation2 + $0x80] sm:$0xff] }
 0x53e   :  { %v2867_v9 = vadd.f32 %v2866_v27, %v5883_v38  ;;  %v2873_v8 = vadd.f32 %v2872_v28, %v5885_v49  ;;  %v2844_v42 = vrot.slane %v2843_v36, 2  ;;  %v2850_v19 = vrot.slane %v2849_v10, 2  ;;  %3008 = vmatprep.subr.bf16.mxu1 %v6408_v40  ;;  %v5924_v57 = vld [vmem:[#allocation2 + $0x90] sm:$0xff]  ;;  %v5926_v33 = vld [vmem:[#allocation2 + $0xa0] sm:$0xff] }
 0x53f   :  { %v2856_v14 = vrot.slane %v2855_v30, 2  ;;  %v2879_v39 = vadd.f32 %v2878_v11, %v5892_v41  ;;  %v2862_v18 = vrot.slane %v2861_v4, 2  ;;  %v2885_v12 = vadd.f32 %v2884_v32, %v5894_v15  ;;  %v5934_v11 = vld [vmem:[#allocation2 + $0xd0] sm:$0xff] }
 0x540   :  { %v2868_v34 = vrot.slane %v2867_v9, 2  ;;  %v2874_v61 = vrot.slane %v2873_v8, 2  ;;  %v2845_v63 = vadd.f32 %v2844_v42, %v2843_v36  ;;  %v2851_v17 = vadd.f32 %v2850_v19, %v2849_v10  ;;  %v5930_v10 = vld [vmem:[#allocation2 + $0xb0] sm:$0xff]  ;;  %v6409_v19 = vld [vmem:[#allocation58_spill] sm:$0xff] }
 0x541   :  { %v2857_v22 = vadd.f32 %v2856_v14, %v2855_v30  ;;  %v2880_v24 = vrot.slane %v2879_v39, 2  ;;  %v2863_v13 = vadd.f32 %v2862_v18, %v2861_v4  ;;  %v2886_v31 = vrot.slane %v2885_v12, 2  ;;  %v5932_v30 = vld [vmem:[#allocation2 + $0xc0] sm:$0xff]  ;;  %3009 = vmatpush1.bf16.msra.mxu1 %v6409_v19 }
 0x542   :  { %v2869_v2 = vadd.f32 %v2868_v34, %v2867_v9  ;;  %v2875_v47 = vadd.f32 %v2874_v61, %v2873_v8  ;;  %v2846_v45 = vrot.slane %v2845_v63, 1  ;;  %v2852_v5 = vrot.slane %v2851_v17, 1  ;;  %v5940_v8 = vld [vmem:[#allocation2 + $0xe0] sm:$0xff] }
 0x543   :  { %v2858_v1 = vrot.slane %v2857_v22, 1  ;;  %v5918_v52 = vadd.f32 %v2880_v24, %v2879_v39  ;;  %v2864_v27 = vrot.slane %v2863_v13, 1  ;;  %v5928_v36 = vadd.f32 %v2886_v31, %v2885_v12  ;;  %v6410_v14 = vld [vmem:[#allocation71_spill] sm:$0xff]  ;;  %v5951_v39 = vld [vmem:[#allocation2 + $0xf0] sm:$0xff]  ;;  %v6411_v12 = vld [vmem:[#allocation62_spill] sm:$0xff] }
 0x544   :  { %v2870_v28 = vrot.slane %v2869_v2, 1  ;;  %v2876_v46 = vrot.slane %v2875_v47, 1  ;;  %v5936_v4 = vadd.f32 %v2846_v45, %v2845_v63  ;;  %v5938_v9 = vadd.f32 %v2852_v5, %v2851_v17  ;;  %4189 = vmatpush3.bf16.msra.mxu0 %v6410_v14  ;;  %3010 = vmatprep.subr.bf16.mxu1 %v6411_v12  ;;  %v6413_v19 = vld [vmem:[#allocation75_spill] sm:$0xff]  ;;  %v6414_v14 = vld [vmem:[#allocation64_spill] sm:$0xff] }
 0x545   :  { %v5942_v32 = vadd.f32 %v2858_v1, %v2857_v22  ;;  %v5944_v60 = vadd.f32 %v2864_v27, %v2863_v13  ;;  %v2882_v42 = vrot.slane %v5918_v52, 1  ;;  %v2890_v18 = vrot.slane %v5922_v53, 4  ;;  %4190 = vmatprep.subr.bf16.mxu0 %v6392_v6  ;;  %v6412_v1 = vld [vmem:[#allocation63_spill] sm:$0xff] }
 0x546   :  { %v5946_v16 = vadd.f32 %v2870_v28, %v2869_v2  ;;  %v5953_v62 = vadd.f32 %v2876_v46, %v2875_v47  ;;  %v2896_v34 = vrot.slane %v5924_v57, 4  ;;  %v2902_v61 = vrot.slane %v5926_v33, 4  ;;  %3011 = vmatpush1.bf16.msra.mxu1 %v6412_v1 }
 0x547   :  { %v2888_v63 = vrot.slane %v5928_v36, 1  ;;  %v2908_v17 = vrot.slane %v5930_v10, 4  ;;  %v2914_v22 = vrot.slane %v5932_v30, 4  ;;  %v2920_v24 = vrot.slane %v5934_v11, 4  ;;  %3012 = vmatprep.subr.bf16.mxu1 %v6414_v14 }
 0x548   :  { %v2891_v13 = vadd.f32 %v2890_v18, %v5922_v53  ;;  %v2897_v2 = vadd.f32 %v2896_v34, %v5924_v57  ;;  %v2903_v47 = vadd.f32 %v2902_v61, %v5926_v33  ;;  %v2926_v31 = vrot.slane %v5940_v8, 4  ;;  %4191 = vmatpush3.bf16.msra.mxu0 %v6413_v19 }
 0x549   :  { %v2909_v37 = vadd.f32 %v2908_v17, %v5930_v10  ;;  %v2915_v43 = vadd.f32 %v2914_v22, %v5932_v30  ;;  %v2921_v45 = vadd.f32 %v2920_v24, %v5934_v11  ;;  %v2932_v5 = vrot.slane %v5951_v39, 4  ;;  %4192 = vmatprep.subr.bf16.mxu0 %v6392_v6 }
 0x54a   :  { %v2892_v40 = vrot.slane %v2891_v13, 2  ;;  %v2898_v27 = vrot.slane %v2897_v2, 2  ;;  %v2904_v28 = vrot.slane %v2903_v47, 2  ;;  %v2927_v46 = vadd.f32 %v2926_v31, %v5940_v8  ;;  %3013 = vmatpush1.bf16.msra.mxu1 %v5205_v54 }
 0x54b   :  { %v2910_v18 = vrot.slane %v2909_v37, 2  ;;  %v2916_v34 = vrot.slane %v2915_v43, 2  ;;  %v2922_v61 = vrot.slane %v2921_v45, 2  ;;  %v2933_v12 = vadd.f32 %v2932_v5, %v5951_v39  ;;  %3014 = vmatprep.subr.bf16.mxu1 %v5209_v56 }
 0x54c   :  { %v2893_v17 = vadd.f32 %v2892_v40, %v2891_v13  ;;  %v2899_v22 = vadd.f32 %v2898_v27, %v2897_v2  ;;  %v2905_v24 = vadd.f32 %v2904_v28, %v2903_v47  ;;  %v2928_v1 = vrot.slane %v2927_v46, 2  ;;  %4193 = vmatpush3.bf16.msra.mxu0 %v5354_v55 }
 0x54d   :  { %v2911_v15 = vadd.f32 %v2910_v18, %v2909_v37  ;;  %v2917_v41 = vadd.f32 %v2916_v34, %v2915_v43  ;;  %v2923_v49 = vadd.f32 %v2922_v61, %v2921_v45  ;;  %v2934_v38 = vrot.slane %v2933_v12, 2  ;;  %4194 = vmatprep.subr.bf16.mxu0 %v6392_v6 }
 0x54e   :  { %v2894_v31 = vrot.slane %v2893_v17, 1  ;;  %v2900_v19 = vrot.slane %v2899_v22, 1  ;;  %v2906_v14 = vrot.slane %v2905_v24, 1  ;;  %v2929_v20 = vadd.f32 %v2928_v1, %v2927_v46  ;;  %3015 = vmatpush1.bf16.msra.mxu1 %v5258_v26 }
 0x54f   :  { %v2912_v5 = vrot.slane %v2911_v15, 1  ;;  %v2918_v51 = vrot.slane %v2917_v41, 1  ;;  %v2924_v13 = vrot.slane %v2923_v49, 1  ;;  %v2935_v2 = vadd.f32 %v2934_v38, %v2933_v12  ;;  %3016 = vmatprep.subr.bf16.mxu1 %v5262_v21 }
 0x550   :  { %v2883_v47 = vadd.f32 %v2882_v42, %v5918_v52  ;;  %v2895_v37 = vadd.f32 %v2894_v31, %v2893_v17  ;;  %v2901_v43 = vadd.f32 %v2900_v19, %v2899_v22  ;;  %v2930_v45 = vrot.slane %v2929_v20, 1  ;;  %4195 = vmatpush3.bf16.msra.mxu0 %v5367_v59 }
 0x551   :  { %v2907_v54 = vadd.f32 %v2906_v14, %v2905_v24  ;;  %v2913_v40 = vadd.f32 %v2912_v5, %v2911_v15  ;;  %v2919_v27 = vadd.f32 %v2918_v51, %v2917_v41  ;;  %v2936_v28 = vrot.slane %v2935_v2, 1  ;;  %4196 = vmatprep.subr.bf16.mxu0 %v6392_v6 }
 0x552   :  { %v2889_v55 = vadd.f32 %v2888_v63, %v5928_v36  ;;  %v2925_v56 = vadd.f32 %v2924_v13, %v2923_v49  ;;  %v2938_v46 = vpack.c.bf16 %v5936_v4, %v5936_v4  ;;  %v2939_v38 = vpack.c.bf16 %v5938_v9, %v5938_v9  ;;  %3017 = vmatpush1.bf16.msra.mxu1 %v5266_v29 }
 0x553   :  { %v2931_v52 = vadd.f32 %v2930_v45, %v2929_v20  ;;  %v2937_v42 = vadd.f32 %v2936_v28, %v2935_v2  ;;  %v2940_v15 = vpack.c.bf16 %v5942_v32, %v5942_v32  ;;  %v2941_v51 = vpack.c.bf16 %v5944_v60, %v5944_v60  ;;  %4202 = vmatprep.subr.bf16.mxu1 %v5344_v3 }
 0x554   :  { %v2942_v26 = vpack.c.bf16 %v5946_v16, %v5946_v16  ;;  %v2943_v49 = vpack.c.bf16 %v5953_v62, %v5953_v62  ;;  %v2946_v41 = vpack.c.bf16 %v2895_v37, %v2895_v37  ;;  %v2947_v36 = vpack.c.bf16 %v2901_v43, %v2901_v43  ;;  %4197 = vmatpush3.bf16.msra.mxu0 %v5388_v25 }
 0x555   :  { %v2944_v4 = vpack.c.bf16 %v2883_v47, %v2883_v47  ;;  %v2948_v21 = vpack.c.bf16 %v2907_v54, %v2907_v54  ;;  %v2949_v20 = vpack.c.bf16 %v2913_v40, %v2913_v40  ;;  %v2950_v9 = vpack.c.bf16 %v2919_v27, %v2919_v27 }
 0x556   :  { %v2945_v32 = vpack.c.bf16 %v2889_v55, %v2889_v55  ;;  %v2951_v60 = vpack.c.bf16 %v2925_v56, %v2925_v56  ;;  %v2970_v63 = vunpack.c.l.b16 %v2938_v46  ;;  %v2971_v18 = vunpack.c.l.b16 %v2939_v38 }
 0x557   :  { %v2952_v16 = vpack.c.bf16 %v2931_v52, %v2931_v52  ;;  %v2953_v34 = vpack.c.bf16 %v2937_v42, %v2937_v42  ;;  %v2972_v61 = vunpack.c.l.b16 %v2940_v15  ;;  %v2973_v62 = vunpack.c.l.b16 %v2941_v51 }
 0x558   :  { %v2974_v12 = vunpack.c.l.b16 %v2942_v26  ;;  %v2975_v59 = vunpack.c.l.b16 %v2943_v49  ;;  %v2978_v17 = vunpack.c.l.b16 %v2946_v41  ;;  %v2979_v22 = vunpack.c.l.b16 %v2947_v36  ;;  %v6423_v36 = vld [vmem:[#allocation38_spill] sm:$0xff] }
 0x559   :  { %v2976_v24 = vunpack.c.l.b16 %v2944_v4  ;;  %v2980_v6 = vunpack.c.l.b16 %v2948_v21  ;;  %v2981_v1 = vunpack.c.l.b16 %v2949_v20  ;;  %v2982_v29 = vunpack.c.l.b16 %v2950_v9 }
 0x55a   :  { %v2977_v31 = vunpack.c.l.b16 %v2945_v32  ;;  %v2983_v19 = vunpack.c.l.b16 %v2951_v60  ;;  %v2986_v14 = vsel %vm1003_vm3, %v2971_v18, %v2970_v63  ;;  %v2993_v5 = vsel %vm1003_vm3, %v2979_v22, %v2978_v17  ;;  %v6424_v32 = vld [vmem:[#allocation40_spill] sm:$0xff]  ;;  %v6425_v63 = vld [vmem:[#allocation41_spill] sm:$0xff] }
 0x55b   :  { %v2984_v13 = vunpack.c.l.b16 %v2952_v16  ;;  %v2985_v2 = vunpack.c.l.b16 %v2953_v34  ;;  %v2987_v47 = vsel %vm1005_vm4, %v2972_v61, %v2986_v14  ;;  %v2994_v37 = vsel %vm1005_vm4, %v2980_v6, %v2993_v5  ;;  %v6427_v14 = vld [vmem:[#allocation74_spill] sm:$0xff] }
 0x55c   :  { %v2988_v43 = vsel %vm1007_vm5, %v2973_v62, %v2987_v47  ;;  %v2995_v25 = vsel %vm1007_vm5, %v2981_v1, %v2994_v37  ;;  %v3122_v45 = vpack.c.bf16 %v5924_v57, %v5922_v53  ;;  %v3123_v54 = vpack.c.bf16 %v5930_v10, %v5926_v33  ;;  %v6428_v47 = vld [vmem:[#allocation22_spill] sm:$0xff] }
 0x55d   :  { %v2989_v40 = vsel %vm1009_vm6, %v2974_v12, %v2988_v43  ;;  %v2996_v27 = vsel %vm1009_vm6, %v2982_v29, %v2995_v25  ;;  %v3124_v28 = vpack.c.bf16 %v5934_v11, %v5932_v30  ;;  %v3125_v55 = vpack.c.bf16 %v5951_v39, %v5940_v8  ;;  %v6421_v11 = vld [vmem:[#allocation45_spill] sm:$0xff]  ;;  %v6422_v39 = vld [vmem:[#allocation36_spill] sm:$0xff] }
 0x55e   :  { %v2990_v56 = vsel %vm1011_vm7, %v2975_v59, %v2989_v40  ;;  %v2997_v46 = vsel %vm1011_vm7, %v2983_v19, %v2996_v27  ;;  %v3118_v10 = vpack.c.bf16 %v5875_v23, %v5873_v48  ;;  %v6419_v23 = vld [vmem:[#allocation43_spill] sm:$0xff]  ;;  %v6426_v29 = vld [vmem:[#allocation73_spill] sm:$0xff] }
 0x55f   :  { %v2991_v38 = vsel %vm1013_vm8, %v2976_v24, %v2990_v56  ;;  %v2998_v53 = vsel %vm1013_vm8, %v2984_v13, %v2997_v46  ;;  %v6431_v46 = vld [vmem:[#allocation24_spill] sm:$0xff] }
 0x560   :  { %v2992_v57 = vsel %vm1015_vm9, %v2977_v31, %v2991_v38  ;;  %v2999_v33 = vsel %vm1015_vm9, %v2985_v2, %v2998_v53 }
 0x561   :  { %v3000_v52 = vpack.c.b16 %v2999_v33, %v2992_v57  ;;  %v6432_v57 = vld [vmem:[#allocation23_spill] sm:$0xff] }
 0x563   :  { %3035 = vmatmul.mubr.bf16.vlgmr.msra.gmra.mrb[28].mxu1 %v3000_v52  ;;  %4199 = vmatmul.mubr.bf16.vlgmr.msra.gmra.mrb[32].mxu0 %v3000_v52 }
 0x564   :  { %4203 = vmatpush3.bf16.msra.mxu1 %v5344_v3  ;;  %4218 = vmatprep.mubr.bf16.mxu1 %v3118_v10  ;;  %v6415_v3 = vld [vmem:[#allocation72_spill] sm:$0xff] }
 0x565   :  { %4204 = vmatprep.subr.bf16.mxu1 %v5371_v7 }
 0x568   :  { %4205 = vmatpush3.bf16.msra.mxu1 %v5371_v7  ;;  %v6416_v7 = vld [vmem:[#allocation35_spill] sm:$0xff] }
 0x569   :  { %4206 = vmatprep.subr.bf16.mxu1 %v5393_v35 }
 0x56c   :  { %4207 = vmatpush3.bf16.msra.mxu1 %v5393_v35  ;;  %v6417_v35 = vld [vmem:[#allocation42_spill] sm:$0xff] }
 0x56d   :  { %4208 = vmatprep.subr.bf16.mxu1 %v5401_v50  ;;  %v3119_v48 = vpack.c.bf16 %v6417_v35, %v6416_v7 }
 0x570   :  { %4209 = vmatpush3.bf16.msra.mxu1 %v5401_v50  ;;  %v6418_v50 = vld [vmem:[#allocation44_spill] sm:$0xff] }
 0x571   :  { %4210 = vmatprep.subr.bf16.mxu1 %v5407_v0  ;;  %v3120_v30 = vpack.c.bf16 %v6419_v23, %v6418_v50  ;;  %v6434_v50 = vld [vmem:[#allocation25_spill] sm:$0xff] }
 0x574   :  { %4211 = vmatpush3.bf16.msra.mxu1 %v5407_v0  ;;  %v6420_v0 = vld [vmem:[#allocation46_spill] sm:$0xff] }
 0x575   :  { %4212 = vmatprep.subr.bf16.mxu1 %v5413_v58  ;;  %v3121_v8 = vpack.c.bf16 %v6421_v11, %v6420_v0 }
 0x578   :  { %4213 = vmatpush3.bf16.msra.mxu1 %v5413_v58 }
 0x579   :  { %4214 = vmatprep.subr.bf16.mxu1 %v5419_v44 }
 0x57c   :  { %4215 = vmatpush3.bf16.msra.mxu1 %v5419_v44 }
 0x57d   :  { %4216 = vmatprep.subr.bf16.mxu1 %v6415_v3 }
 0x580   :  { %4217 = vmatpush3.bf16.msra.mxu1 %v6415_v3  ;;  %v6433_v3 = vld [vmem:[#allocation26_spill] sm:$0xff] }
 0x583   :  { %4219 = vmatmul.mubr.bf16.vlgmr.msra.gmra.mrb[32].mxu1 %v3119_v48 }
 0x584   :  { %4222 = vmatprep.mubr.bf16.mxu1 %v3120_v30 }
 0x58b   :  { %4223 = vmatmul.mubr.bf16.gmra.mrb[36].mxu1 %v3121_v8 }
 0x58c   :  { %4226 = vmatprep.mubr.bf16.mxu1 %v3122_v45  ;;  %v6429_v45 = vld [vmem:[#allocation21_spill] sm:$0xff] }
 0x593   :  { %4227 = vmatmul.mubr.bf16.gmra.mrb[40].mxu1 %v3123_v54 }
 0x594   :  { %4230 = vmatprep.mubr.bf16.mxu1 %v3124_v28 }
 0x59b   :  { %4231 = vmatmul.mubr.bf16.gmra.mrb[44].mxu1 %v3125_v55  ;;  %v6430_v55 = vld [vmem:[#allocation37_spill] sm:$0xff] }
 0x636   :  { %v3036_v58 = vpop.f32.mrb[28].mxu1  ;;  %v3079_v44 = vpop.f32.mrb[32].mxu0 }
 0x637   :  { %v3086_v42 = vadd.f32 %v3036_v58, %v6422_v39  ;;  %v3038_v15 = vpop.f32.mrb[29].mxu1  ;;  %v4200_v51 = vpop.f32.mrb[33].mxu0  ;;  %v3088_v60 = vadd.f32 %v3079_v44, %v6424_v32 }
 0x638   :  { %v3040_v26 = vpop.f32.mrb[30].mxu1  ;;  %v3082_v49 = vpop.f32.mrb[34].mxu0  ;;  %v3087_v56 = vadd.f32 %v3038_v15, %v6430_v55  ;;  %v6435_v51 = vld [vmem:[#allocation28_spill] sm:$0xff]  ;;  %v6441_v55 = vld [vmem:[#allocation34_spill] sm:$0xff] }
 0x639   :  { %v3877_v41 = vmul.f32 -1.442695, %v3086_v42  ;;  %v3089_v4 = vadd.f32 %v3040_v26, %v6423_v36  ;;  %v6050_v21 = vpop.f32.mrb[31].mxu1  ;;  %v4201_v20 = vpop.f32.mrb[35].mxu0  ;;  %v3091_v18 = vadd.f32 %v3082_v49, %v6425_v63  ;;  %v6437_v63 = vld [vmem:[#allocation30_spill] sm:$0xff] }
 0x63a   :  { %v3879_v30 = vmul.f32 -1.442695, %v3087_v56 }
 0x63b   :  { %4492 = vpow2.f32 %v3877_v41  ;;  %v3878_v9 = vmul.f32 -1.442695, %v3089_v4  ;;  %v6436_v4 = vld [vmem:[#allocation27_spill] sm:$0xff] }
 0x63d   :  { %4494 = vpow2.f32 %v3878_v9 }
 0x63e   :  { %4496 = vtanh.f32 %v3088_v60 }
 0x63f   :  { %4498 = vtanh.f32 %v3091_v18 }
 0x645   :  { %v4493_v16 = vpop.eup %4492 }
 0x646   :  { %v3098_v34 = vadd.f32 1.0, %v4493_v16 }
 0x647   :  { %v4495_v61 = vpop.eup %4494 }
 0x648   :  { %4500 = vrcp.f32 %v3098_v34  ;;  %v3099_v62 = vadd.f32 1.0, %v4495_v61  ;;  %v4497_v12 = vpop.eup %4496  ;;  %v6438_v61 = vld [vmem:[#allocation29_spill] sm:$0xff] }
 0x649   :  { %v4499_v59 = vpop.eup %4498 }
 0x64a   :  { %4502 = vrcp.f32 %v3099_v62 }
 0x652   :  { %v4501_v17 = vpop.eup %4500 }
 0x653   :  { %v6054_v22 = vmul.f32 %v4501_v17, %v4497_v12 }
 0x654   :  { %v4503_v24 = vpop.eup %4502 }
 0x655   :  { %v6056_v6 = vmul.f32 %v4503_v24, %v4499_v59 }
 0x656   :  { %v4220_v1 = vpop.f32.mrb[32].mxu1 }
 0x657   :  { %v3225_v31 = vadd.f32 %v4220_v1, %v6426_v29  ;;  %v3160_v19 = vpop.f32.mrb[33].mxu1 }
 0x658   :  { %v3223_v5 = vadd.f32 %v3160_v19, %v6427_v14  ;;  %v4221_v13 = vpop.f32.mrb[34].mxu1  ;;  %v6439_v14 = vld [vmem:[#allocation32_spill] sm:$0xff] }
 0x659   :  { %v3883_v2 = vmul.f32 -1.442695, %v3225_v31  ;;  %v3226_v37 = vadd.f32 %v4221_v13, %v6428_v47  ;;  %v3163_v43 = vpop.f32.mrb[35].mxu1  ;;  %v2828_v47 = vld [vmem:[#allocation2 + $0x28] sm:$0xff] }
 0x65a   :  { %v3881_v25 = vmul.f32 -1.442695, %v3223_v5  ;;  %v3224_v54 = vadd.f32 %v3163_v43, %v6429_v45  ;;  %v6440_v43 = vld [vmem:[#allocation31_spill] sm:$0xff] }
 0x65b   :  { %4504 = vpow2.f32 %v3883_v2  ;;  %v3884_v40 = vmul.f32 -1.442695, %v3226_v37 }
 0x65c   :  { %4506 = vpow2.f32 %v3881_v25  ;;  %v3882_v27 = vmul.f32 -1.442695, %v3224_v54 }
 0x65d   :  { %4508 = vpow2.f32 %v3884_v40  ;;  %v2826_v40 = vld [vmem:[#allocation2 + $0x8] sm:$0xff] }
 0x65e   :  { %4510 = vpow2.f32 %v3882_v27  ;;  %v4224_v28 = vpop.f32.mrb[36].mxu1 }
 0x65f   :  { %v3229_v38 = vadd.f32 %v4224_v28, %v6431_v46  ;;  %v3176_v53 = vpop.f32.mrb[37].mxu1 }
 0x660   :  { %v3227_v33 = vadd.f32 %v3176_v53, %v6432_v57  ;;  %v4225_v10 = vpop.f32.mrb[38].mxu1  ;;  %v2829_v53 = vld [vmem:[#allocation2 + $0x38] sm:$0xff] }
 0x661   :  { %v3887_v52 = vmul.f32 -1.442695, %v3229_v38  ;;  %v3230_v7 = vadd.f32 %v4225_v10, %v6433_v3  ;;  %v3179_v35 = vpop.f32.mrb[39].mxu1 }
 0x662   :  { %v3885_v48 = vmul.f32 -1.442695, %v3227_v33  ;;  %v3228_v23 = vadd.f32 %v3179_v35, %v6434_v50  ;;  %v6442_v33 = vld [vmem:[#allocation33_spill] sm:$0xff]  ;;  %v6443_v50 = vld [vmem:[#allocation39_spill] sm:$0xff] }
 0x663   :  { %4512 = vpow2.f32 %v3887_v52  ;;  %v3888_v0 = vmul.f32 -1.442695, %v3230_v7  ;;  %v2827_v7 = vld [vmem:[#allocation2 + $0x18] sm:$0xff] }
 0x664   :  { %4514 = vpow2.f32 %v3885_v48  ;;  %v3886_v11 = vmul.f32 -1.442695, %v3228_v23  ;;  %v3090_v23 = vadd.f32 %v6050_v21, %v6443_v50 }
 0x665   :  { %v4505_v8 = vpop.eup %4504  ;;  %4516 = vpow2.f32 %v3888_v0 }
 0x666   :  { %v4507_v58 = vpop.eup %4506  ;;  %v3289_v44 = vadd.f32 1.0, %v4505_v8  ;;  %4518 = vpow2.f32 %v3886_v11  ;;  %v4228_v39 = vpop.f32.mrb[40].mxu1 }
 0x667   :  { %v4509_v42 = vpop.eup %4508  ;;  %4520 = vpow2.f32 %v3879_v30  ;;  %v3287_v15 = vadd.f32 1.0, %v4507_v58  ;;  %v3233_v26 = vadd.f32 %v4228_v39, %v6435_v51  ;;  %v3192_v49 = vpop.f32.mrb[41].mxu1 }
 0x668   :  { %v4511_v41 = vpop.eup %4510  ;;  %4522 = vrcp.f32 %v3289_v44  ;;  %v3290_v36 = vadd.f32 1.0, %v4509_v42  ;;  %v3231_v20 = vadd.f32 %v3192_v49, %v6436_v4  ;;  %v4229_v9 = vpop.f32.mrb[42].mxu1 }
 0x669   :  { %4524 = vrcp.f32 %v3287_v15  ;;  %v3288_v32 = vadd.f32 1.0, %v4511_v41  ;;  %v3891_v60 = vmul.f32 -1.442695, %v3233_v26  ;;  %v3234_v18 = vadd.f32 %v4229_v9, %v6437_v63  ;;  %v3195_v16 = vpop.f32.mrb[43].mxu1 }
 0x66a   :  { %4526 = vrcp.f32 %v3290_v36  ;;  %v3889_v34 = vmul.f32 -1.442695, %v3231_v20  ;;  %v3232_v62 = vadd.f32 %v3195_v16, %v6438_v61  ;;  %v6079_v36 = vmul.f32 -1.442695, %v3090_v23  ;;  %v2832_v20 = vld [vmem:[#allocation2 + $0x68] sm:$0xff] }
 0x66b   :  { %4528 = vrcp.f32 %v3288_v32  ;;  %v3892_v12 = vmul.f32 -1.442695, %v3234_v18  ;;  %v2830_v18 = vld [vmem:[#allocation2 + $0x48] sm:$0xff] }
 0x66c   :  { %4530 = vpow2.f32 %v3891_v60  ;;  %v3890_v59 = vmul.f32 -1.442695, %v3232_v62  ;;  %v2836_v23 = vld [vmem:[#allocation2 + $0xa8] sm:$0xff] }
 0x66d   :  { %v4513_v17 = vpop.eup %4512  ;;  %4532 = vpow2.f32 %v3889_v34 }
 0x66e   :  { %v4515_v24 = vpop.eup %4514  ;;  %v3293_v1 = vadd.f32 1.0, %v4513_v17  ;;  %4534 = vpow2.f32 %v3892_v12  ;;  %v4232_v29 = vpop.f32.mrb[44].mxu1  ;;  %v2833_v12 = vld [vmem:[#allocation2 + $0x78] sm:$0xff] }
 0x66f   :  { %v4517_v31 = vpop.eup %4516  ;;  %v3291_v19 = vadd.f32 1.0, %v4515_v24  ;;  %4536 = vpow2.f32 %v3890_v59  ;;  %v3237_v5 = vadd.f32 %v4232_v29, %v6439_v14  ;;  %v3208_v13 = vpop.f32.mrb[45].mxu1 }
 0x670   :  { %v4519_v2 = vpop.eup %4518  ;;  %4538 = vrcp.f32 %v3293_v1  ;;  %v3294_v37 = vadd.f32 1.0, %v4517_v31  ;;  %v3235_v25 = vadd.f32 %v3208_v13, %v6440_v43  ;;  %v4233_v45 = vpop.f32.mrb[46].mxu1  ;;  %v2831_v31 = vld [vmem:[#allocation2 + $0x58] sm:$0xff] }
 0x671   :  { %v6073_v54 = vpop.eup %4520  ;;  %4540 = vrcp.f32 %v3291_v19  ;;  %v3292_v27 = vadd.f32 1.0, %v4519_v2  ;;  %v3895_v28 = vmul.f32 -1.442695, %v3237_v5  ;;  %v3238_v56 = vadd.f32 %v4233_v45, %v6441_v55  ;;  %v3211_v46 = vpop.f32.mrb[47].mxu1 }
 0x672   :  { %v4523_v38 = vpop.eup %4522  ;;  %4542 = vrcp.f32 %v3294_v37  ;;  %v3893_v57 = vmul.f32 -1.442695, %v3235_v25  ;;  %v3236_v10 = vadd.f32 %v3211_v46, %v6442_v33  ;;  %v6082_v46 = vadd.f32 1.0, %v6073_v54 }
 0x673   :  { %v4525_v52 = vpop.eup %4524  ;;  %v3337_v3 = vmul.f32 %v4523_v38, %v2828_v47  ;;  %4544 = vrcp.f32 %v3292_v27  ;;  %v3896_v35 = vmul.f32 -1.442695, %v3238_v56 }
 0x674   :  { %v4527_v48 = vpop.eup %4526  ;;  %v3335_v30 = vmul.f32 %v4525_v52, %v2826_v40  ;;  %4546 = vpow2.f32 %v3895_v28  ;;  %v3894_v0 = vmul.f32 -1.442695, %v3236_v10 }
 0x675   :  { %v4529_v11 = vpop.eup %4528  ;;  %v3363_v8 = vrot.slane %v3337_v3, 4  ;;  %v3338_v58 = vmul.f32 %v4527_v48, %v2829_v53  ;;  %4548 = vpow2.f32 %v3893_v57 }
 0x676   :  { %v4531_v44 = vpop.eup %4530  ;;  %v3351_v39 = vrot.slane %v3335_v30, 4  ;;  %v3336_v42 = vmul.f32 %v4529_v11, %v2827_v7  ;;  %4550 = vpow2.f32 %v3896_v35 }
 0x677   :  { %v4533_v15 = vpop.eup %4532  ;;  %v3364_v51 = vadd.f32 %v3363_v8, %v3337_v3  ;;  %v3369_v26 = vrot.slane %v3338_v58, 4  ;;  %v3297_v49 = vadd.f32 1.0, %v4531_v44  ;;  %4552 = vpow2.f32 %v3894_v0  ;;  %v2834_v44 = vld [vmem:[#allocation2 + $0x88] sm:$0xff] }
 0x678   :  { %v4535_v41 = vpop.eup %4534  ;;  %v3352_v21 = vadd.f32 %v3351_v39, %v3335_v30  ;;  %v3357_v4 = vrot.slane %v3336_v42, 4  ;;  %v3295_v9 = vadd.f32 1.0, %v4533_v15 }
 0x679   :  { %v4537_v32 = vpop.eup %4536  ;;  %v3365_v60 = vrot.slane %v3364_v51, 2  ;;  %v3370_v63 = vadd.f32 %v3369_v26, %v3338_v58  ;;  %4554 = vrcp.f32 %v3297_v49  ;;  %v3298_v16 = vadd.f32 1.0, %v4535_v41 }
 0x67a   :  { %v4539_v34 = vpop.eup %4538  ;;  %v3353_v61 = vrot.slane %v3352_v21, 2  ;;  %v3358_v62 = vadd.f32 %v3357_v4, %v3336_v42  ;;  %4556 = vrcp.f32 %v3295_v9  ;;  %v3296_v59 = vadd.f32 1.0, %v4537_v32 }
 0x67b   :  { %v4541_v17 = vpop.eup %4540  ;;  %v3366_v24 = vadd.f32 %v3365_v60, %v3364_v51  ;;  %v3371_v1 = vrot.slane %v3370_v63, 2  ;;  %v3341_v29 = vmul.f32 %v4539_v34, %v2832_v20  ;;  %4558 = vrcp.f32 %v3298_v16  ;;  %v2837_v51 = vld [vmem:[#allocation2 + $0xb8] sm:$0xff] }
 0x67c   :  { %v4543_v19 = vpop.eup %4542  ;;  %v3354_v14 = vadd.f32 %v3353_v61, %v3352_v21  ;;  %v3359_v5 = vrot.slane %v3358_v62, 2  ;;  %v3339_v13 = vmul.f32 %v4541_v17, %v2830_v18  ;;  %4560 = vrcp.f32 %v3296_v59  ;;  %v2835_v20 = vld [vmem:[#allocation2 + $0x98] sm:$0xff] }
 0x67d   :  { %v4545_v2 = vpop.eup %4544  ;;  %v3367_v47 = vrot.slane %v3366_v24, 1  ;;  %v3372_v37 = vadd.f32 %v3371_v1, %v3370_v63  ;;  %v3387_v43 = vrot.slane %v3341_v29, 4  ;;  %v3342_v25 = vmul.f32 %v4543_v19, %v2833_v12 }
 0x67e   :  { %v4547_v45 = vpop.eup %4546  ;;  %v3355_v40 = vrot.slane %v3354_v14, 1  ;;  %v3360_v27 = vadd.f32 %v3359_v5, %v3358_v62  ;;  %v3375_v28 = vrot.slane %v3339_v13, 4  ;;  %v3340_v55 = vmul.f32 %v4545_v2, %v2831_v31 }
 0x67f   :  { %v4549_v56 = vpop.eup %4548  ;;  %v3368_v38 = vadd.f32 %v3367_v47, %v3366_v24  ;;  %v3388_v53 = vadd.f32 %v3387_v43, %v3341_v29  ;;  %v3393_v57 = vrot.slane %v3342_v25, 4  ;;  %v3373_v10 = vrot.slane %v3372_v37, 1 }
 0x680   :  { %v4551_v33 = vpop.eup %4550  ;;  %v3361_v52 = vrot.slane %v3360_v27, 1  ;;  %v3376_v3 = vadd.f32 %v3375_v28, %v3339_v13  ;;  %v3381_v7 = vrot.slane %v3340_v55, 4  ;;  %v3301_v30 = vadd.f32 1.0, %v4547_v45 }
 0x681   :  { %v4553_v35 = vpop.eup %4552  ;;  %v3389_v48 = vrot.slane %v3388_v53, 2  ;;  %v3394_v50 = vadd.f32 %v3393_v57, %v3342_v25  ;;  %v3299_v0 = vadd.f32 1.0, %v4549_v56  ;;  %v3356_v11 = vadd.f32 %v3355_v40, %v3354_v14  ;;  %v2840_v40 = vld [vmem:[#allocation2 + $0xe8] sm:$0xff] }
 0x682   :  { %v3377_v8 = vrot.slane %v3376_v3, 2  ;;  %v3382_v58 = vadd.f32 %v3381_v7, %v3340_v55  ;;  %v3302_v54 = vadd.f32 1.0, %v4551_v33  ;;  %v3362_v42 = vadd.f32 %v3361_v52, %v3360_v27  ;;  %v2841_v7 = vld [vmem:[#allocation2 + $0xf8] sm:$0xff] }
 0x683   :  { %v4555_v39 = vpop.eup %4554  ;;  %v3390_v15 = vadd.f32 %v3389_v48, %v3388_v53  ;;  %4562 = vrcp.f32 %v3301_v30  ;;  %v3300_v26 = vadd.f32 1.0, %v4553_v35  ;;  %v3395_v32 = vrot.slane %v3394_v50, 2  ;;  %v2838_v53 = vld [vmem:[#allocation2 + $0xc8] sm:$0xff] }
 0x684   :  { %v4557_v49 = vpop.eup %4556  ;;  %v3378_v41 = vadd.f32 %v3377_v8, %v3376_v3  ;;  %v3383_v21 = vrot.slane %v3382_v58, 2  ;;  %v3345_v4 = vmul.f32 %v4555_v39, %v2836_v23  ;;  %4564 = vrcp.f32 %v3299_v0 }
 0x685   :  { %v4559_v9 = vpop.eup %4558  ;;  %v3343_v60 = vmul.f32 %v4557_v49, %v2834_v44  ;;  %4566 = vrcp.f32 %v3302_v54  ;;  %v3374_v63 = vadd.f32 %v3373_v10, %v3372_v37  ;;  %v3391_v17 = vrot.slane %v3390_v15, 1  ;;  %v2839_v44 = vld [vmem:[#allocation2 + $0xd8] sm:$0xff] }
 0x686   :  { %v4561_v18 = vpop.eup %4560  ;;  %v3379_v16 = vrot.slane %v3378_v41, 1  ;;  %v3384_v34 = vadd.f32 %v3383_v21, %v3382_v58  ;;  %v3411_v61 = vrot.slane %v3345_v4, 4  ;;  %v3346_v62 = vmul.f32 %v4559_v9, %v2837_v51 }
 0x687   :  { %v3399_v12 = vrot.slane %v3343_v60, 4  ;;  %v3344_v59 = vmul.f32 %v4561_v18, %v2835_v20  ;;  %4568 = vrcp.f32 %v3300_v26  ;;  %v3396_v5 = vadd.f32 %v3395_v32, %v3394_v50 }
 0x688   :  { %v3412_v24 = vadd.f32 %v3411_v61, %v3345_v4  ;;  %v3417_v1 = vrot.slane %v3346_v62, 4  ;;  %v3380_v29 = vadd.f32 %v3379_v16, %v3378_v41  ;;  %v3385_v31 = vrot.slane %v3384_v34, 1 }
 0x689   :  { %v3400_v19 = vadd.f32 %v3399_v12, %v3343_v60  ;;  %v3405_v14 = vrot.slane %v3344_v59, 4  ;;  %v3465_v13 = vsel %vm1003_vm3, %v3362_v42, %v3356_v11  ;;  %v3397_v27 = vrot.slane %v3396_v5, 1 }
 0x68a   :  { %v3413_v2 = vrot.slane %v3412_v24, 2  ;;  %v3418_v47 = vadd.f32 %v3417_v1, %v3346_v62  ;;  %v3386_v37 = vadd.f32 %v3385_v31, %v3384_v34  ;;  %v3466_v43 = vsel %vm1005_vm4, %v3368_v38, %v3465_v13 }
 0x68b   :  { %v3401_v25 = vrot.slane %v3400_v19, 2  ;;  %v3406_v45 = vadd.f32 %v3405_v14, %v3344_v59  ;;  %v3467_v28 = vsel %vm1007_vm5, %v3374_v63, %v3466_v43  ;;  %v3392_v57 = vadd.f32 %v3391_v17, %v3390_v15  ;;  %v6444_v63 = vld [vmem:[#allocation20_spill] sm:$0xff] }
 0x68c   :  { %v3414_v55 = vadd.f32 %v3413_v2, %v3412_v24  ;;  %v3419_v56 = vrot.slane %v3418_v47, 2  ;;  %v3468_v33 = vsel %vm1009_vm6, %v3380_v29, %v3467_v28  ;;  %v3398_v35 = vadd.f32 %v3397_v27, %v3396_v5 }
 0x68d   :  { %v4563_v10 = vpop.eup %4562  ;;  %v3402_v52 = vadd.f32 %v3401_v25, %v3400_v19  ;;  %v3407_v3 = vrot.slane %v3406_v45, 2  ;;  %v3469_v48 = vsel %vm1011_vm7, %v3386_v37, %v3468_v33  ;;  %4570 = vpow2.f32 %v6079_v36 }
 0x68e   :  { %v4565_v38 = vpop.eup %4564  ;;  %v3420_v50 = vadd.f32 %v3419_v56, %v3418_v47  ;;  %v3349_v23 = vmul.f32 %v4563_v10, %v2840_v40  ;;  %v3470_v30 = vsel %vm1013_vm8, %v3392_v57, %v3469_v48  ;;  %4572 = vrcp.f32 %v6082_v46 }
 0x68f   :  { %v4567_v0 = vpop.eup %4566  ;;  %v3403_v11 = vrot.slane %v3402_v52, 1  ;;  %v3408_v8 = vadd.f32 %v3407_v3, %v3406_v45  ;;  %v3347_v58 = vmul.f32 %v4565_v38, %v2838_v53  ;;  %v3471_v54 = vsel %vm1015_vm9, %v3398_v35, %v3470_v30 }
 0x690   :  { %v3415_v39 = vrot.slane %v3414_v55, 1  ;;  %v3435_v42 = vrot.slane %v3349_v23, 4  ;;  %v3350_v15 = vmul.f32 %v4567_v0, %v2841_v7  ;;  %v3421_v26 = vrot.slane %v3420_v50, 1 }
 0x691   :  { %v4569_v51 = vpop.eup %4568  ;;  %v3409_v49 = vrot.slane %v3408_v8, 1  ;;  %v3423_v36 = vrot.slane %v3347_v58, 4  ;;  %v3481_v41 = vadd.f32 %v3471_v54, %v6054_v22  ;;  %v3404_v21 = vadd.f32 %v3403_v11, %v3402_v52 }
 0x692   :  { %v3436_v4 = vadd.f32 %v3435_v42, %v3349_v23  ;;  %v3441_v20 = vrot.slane %v3350_v15, 4  ;;  %v3348_v9 = vmul.f32 %v4569_v51, %v2839_v44  ;;  %v3416_v61 = vadd.f32 %v3415_v39, %v3414_v55 }
 0x693   :  { %v3410_v32 = vadd.f32 %v3409_v49, %v3408_v8  ;;  %v3424_v60 = vadd.f32 %v3423_v36, %v3347_v58  ;;  %4574 = vtanh.f32 %v3481_v41  ;;  %v3491_v18 = vmul.f32 %v6444_v63, %v3481_v41 }
 0x694   :  { %v3437_v16 = vrot.slane %v3436_v4, 2  ;;  %v3442_v46 = vadd.f32 %v3441_v20, %v3350_v15  ;;  %v3429_v34 = vrot.slane %v3348_v9, 4  ;;  %v3422_v12 = vadd.f32 %v3421_v26, %v3420_v50 }
 0x695   :  { %v3425_v62 = vrot.slane %v3424_v60, 2  ;;  %v3472_v59 = vsel %vm1003_vm3, %v3410_v32, %v3404_v21  ;;  %3493 = vst [vmem:[#allocation14 + $0x8] sm:$0xff] %v3491_v18 }
 0x696   :  { %v3443_v17 = vrot.slane %v3442_v46, 2  ;;  %v3430_v22 = vadd.f32 %v3429_v34, %v3348_v9  ;;  %v3473_v24 = vsel %vm1005_vm4, %v3416_v61, %v3472_v59  ;;  %v3438_v29 = vadd.f32 %v3437_v16, %v3436_v4 }
 0x697   :  { %v3426_v1 = vadd.f32 %v3425_v62, %v3424_v60  ;;  %v3474_v31 = vsel %vm1007_vm5, %v3422_v12, %v3473_v24  ;;  %v4571_v19 = vpop.eup %4570 }
 0x698   :  { %v3431_v14 = vrot.slane %v3430_v22, 2  ;;  %v3444_v5 = vadd.f32 %v3443_v17, %v3442_v46  ;;  %v4573_v2 = vpop.eup %4572  ;;  %v3439_v43 = vrot.slane %v3438_v29, 1  ;;  %v3111_v53 = vadd.f32 1.0, %v4571_v19 }
 0x699   :  { %v3427_v13 = vrot.slane %v3426_v1, 1 }
 0x69a   :  { %v3432_v47 = vadd.f32 %v3431_v14, %v3430_v22  ;;  %v3445_v45 = vrot.slane %v3444_v5, 1  ;;  %v3440_v56 = vadd.f32 %v3439_v43, %v3438_v29  ;;  %4576 = vrcp.f32 %v3111_v53 }
 0x69b   :  { %v3428_v37 = vadd.f32 %v3427_v13, %v3426_v1 }
 0x69c   :  { %v3433_v25 = vrot.slane %v3432_v47, 1  ;;  %v3446_v57 = vadd.f32 %v3445_v45, %v3444_v5 }
 0x69d   :  { %v4575_v40 = vpop.eup %4574  ;;  %v3475_v27 = vsel %vm1009_vm6, %v3428_v37, %v3474_v31 }
 0x69e   :  { %v3434_v28 = vadd.f32 %v3433_v25, %v3432_v47  ;;  %v3485_v55 = vmul.f32 %v4575_v40, %v4573_v2 }
 0x6a0   :  { %v3476_v33 = vsel %vm1011_vm7, %v3434_v28, %v3475_v27  ;;  %v3487_v10 = vmul.f32 %v6444_v63, %v3485_v55 }
 0x6a1   :  { %v3477_v52 = vsel %vm1013_vm8, %v3440_v56, %v3476_v33 }
 0x6a2   :  { %v3478_v3 = vsel %vm1015_vm9, %v3446_v57, %v3477_v52  ;;  %3489 = vst [vmem:[#allocation14] sm:$0xff] %v3487_v10 }
 0x6a3   :  { %v3482_v7 = vadd.f32 %v3478_v3, %v6056_v6 }
 0x6a4   :  { %v4577_v35 = vpop.eup %4576 }
 0x6a5   :  { %4578 = vtanh.f32 %v3482_v7  ;;  %3494 = vst [vmem:[#allocation14 + $0x18] sm:$0xff] %v3482_v7 }
 0x6af   :  { %v4579_v48 = vpop.eup %4578 }
 0x6b0   :  { %v3486_v38 = vmul.f32 %v4579_v48, %v4577_v35 }
 0x6b2   :  { %3490 = vst [vmem:[#allocation14 + $0x10] sm:$0xff] %v3486_v38 }
 0x6b3   :  { %4711 = shalt.err (!%p4708_p8)
}
 0x6b4   :  { %s4712_s14 = scalar_lea.hbm %s6124_s8, 512 }
 0x6b5   :  { %p4713_p9 = scmp.ne.s32.totalorder %s6124_s8, %s4712_s14  ;;  %p4716_p10 = scmp.lt.u32.totalorder %s4712_s14, %s6124_s8 }
 0x6b7   :  { %p4718_p11 = pnand %p4716_p10, %p4713_p9 }
 0x6b9   :  { %4721 = shalt.err (!%p4718_p11)
}
 0x6ba   :  { %s4771_s1 = smov 256   ;;  %s4772_s19 = smov 16  }
 0x6bb   :  { %3506 = dma.vmem_to_hbm [thread:$0]  %s3501_s28, 512, %s6124_s8, [#allocation5], %s4771_s1, %s4771_s1, %s4772_s19  }
 0x6bc   :  { %4742 = dma.done.wait [#allocation5], 512  }
 0x6bd   :  { %4743 = vsyncadd [#allocation5], 4294966784 }
 0x6be   :  { %3510 = vsyncpa [#allocation4], 1 }
 0x6bf   :  { %3511 = vsyncpa [#allocation9], 1 }
 0x6c0   :  { %3512 = vsyncpa [#allocation12], 1 }
 0x6c1   :  { %3513 = vsyncpa [#allocation5], 1 }
 0x6c2   :  { %3514 = vsyncpa [#allocation6], 1 }

</bundles_post_ra>
